<compile_context>
chip_gen: v5e
topology: v5e:2x2
jax: 0.10.0
libtpu: 0.0.40
codegen_flags: <defaults>
</compile_context>

<pallas_src>
import numpy as np
from functools import partial

import jax
import jax.numpy as jnp
from jax.experimental import pallas as pl
from jax.experimental.pallas import tpu as pltpu

# ---------------- dims implied by the PyTorch module ----------------
# fc1 expects 256 = 16 * 4 * 4  =>  input spatial must be 10x10 (1 channel)
H = W = 10
C1_OUT, C2_OUT = 8, 16
K = 4
H1 = H - 1               # 9   after conv1 (pad=1, k=4)
H2 = H1 - 1              # 8   after conv2
HP = H2 // 2             # 4   after 2x2 max-pool
FLAT = C2_OUT * HP * HP  # 256
FC1, FC2, FC3 = 150, 84, 100

# 128-padded lane widths used inside the kernel
XIN_P = 128              # 100 -> 128 (flattened 10x10 input)
C1_P = 768               # 648 -> 768 (conv1 output cols)
POOL4 = 4 * FLAT         # 1024 (four folded pool slabs, already aligned)
FC1_P, FC2_P, FC3_P = 256, 128, 128

SUB = 16                 # bf16 sublane tile -> minimum batch-tile granularity


def _round_up(x, m):
    return ((x + m - 1) // m) * m


def init_params(seed=0):
    """Deterministic, PyTorch-default-style U(-1/sqrt(fan_in), +1/sqrt(fan_in)) init."""
    rng = np.random.default_rng(seed)

    def u(shape, fan_in):
        b = 1.0 / np.sqrt(fan_in)
        return rng.uniform(-b, b, size=shape).astype(np.float32)

    p = {}
    p["w1"] = u((C1_OUT, 1, K, K), 1 * K * K)
    p["b1"] = u((C1_OUT,), 1 * K * K)
    p["w2"] = u((C2_OUT, C1_OUT, K, K), C1_OUT * K * K)
    p["b2"] = u((C2_OUT,), C1_OUT * K * K)
    # conv3 exists in __init__ but is unused in forward(); not materialized.
    p["wf1"] = u((FC1, FLAT), FLAT); p["bf1"] = u((FC1,), FLAT)
    p["wf2"] = u((FC2, FC1), FC1);   p["bf2"] = u((FC2,), FC1)
    p["wf3"] = u((FC3, FC2), FC2);   p["bf3"] = u((FC3,), FC2)
    return p


def build_kernel_operands(p):
    """Build lane-aligned GEMM operands:
       - W1: conv1 Toeplitz against the raw 10x10 input (128 x 768),
       - W2S: conv2 Toeplitz with the 2x2 max-pool selection folded in
              (768 x 1024, four 256-wide slabs, one per pool-window element),
         with a SINGLE 256-wide conv2 bias (identical across the 4 slabs,
         added after the max, before tanh),
       - fc weights transposed and zero-padded to 128-multiples.
       Weights are cast to bf16 (f32 accumulation in-kernel), biases stay f32."""
    # conv1 as GEMM: rows index the *unpadded* 10x10 image (h*10 + w),
    #                cols index conv1 output in (i, j, co) channel-fastest order.
    W1 = np.zeros((XIN_P, C1_P), np.float32)
    for co in range(C1_OUT):
        for i in range(H1):
            for j in range(H1):
                col = (i * H1 + j) * C1_OUT + co
                for ki in range(K):
                    for kj in range(K):
                        pi, pj = i + ki - 1, j + kj - 1
                        if 0 <= pi < H and 0 <= pj < W:
                            W1[pi * W + pj, col] = p["w1"][co, 0, ki, kj]
    b1 = np.zeros((1, C1_P), np.float32)
    b1[0, :H1 * H1 * C1_OUT] = np.tile(p["b1"], H1 * H1)

    # conv2 + pool-selection folded: column k*256 + (c*16 + ip*4 + jp) holds the
    # conv2 weights producing pool-window element (di,dj)=(k//2,k%2) of pooled/
    # flattened output column (PyTorch NCHW flatten order). No bias here.
    W2S = np.zeros((C1_P, POOL4), np.float32)
    for c in range(C2_OUT):
        for ip in range(HP):
            for jp in range(HP):
                outcol = c * HP * HP + ip * HP + jp
                for di in range(2):
                    for dj in range(2):
                        col = (di * 2 + dj) * FLAT + outcol
                        i2, j2 = 2 * ip + di, 2 * jp + dj
                        for ki in range(K):
                            for kj in range(K):
                                pi, pj = i2 + ki - 1, j2 + kj - 1
                                if 0 <= pi < H1 and 0 <= pj < H1:
                                    for ci in range(C1_OUT):
                                        W2S[(pi * H1 + pj) * C1_OUT + ci, col] = \
                                            p["w2"][c, ci, ki, kj]
    # 256-wide conv2 bias in pooled/flattened column order (c*16 + ip*4 + jp).
    b2p = np.repeat(p["b2"], HP * HP)[None, :].astype(np.float32)     # (1, 256)

    # fc layers, transposed and zero-padded to 128-multiples.
    wf1 = np.zeros((FLAT, FC1_P), np.float32); wf1[:, :FC1] = p["wf1"].T
    bf1 = np.zeros((1, FC1_P), np.float32);    bf1[0, :FC1] = p["bf1"]
    wf2 = np.zeros((FC1_P, FC2_P), np.float32); wf2[:FC1, :FC2] = p["wf2"].T
    bf2 = np.zeros((1, FC2_P), np.float32);     bf2[0, :FC2] = p["bf2"]
    wf3 = np.zeros((FC2_P, FC3_P), np.float32); wf3[:FC2, :FC3] = p["wf3"].T
    bf3 = np.zeros((1, FC3_P), np.float32);     bf3[0, :FC3] = p["bf3"]

    bf16 = jnp.bfloat16
    return dict(
        w1=jnp.asarray(W1, bf16), b1=jnp.asarray(b1),
        w2=jnp.asarray(W2S, bf16), b2=jnp.asarray(b2p),
        wf1=jnp.asarray(wf1, bf16), bf1=jnp.asarray(bf1),
        wf2=jnp.asarray(wf2, bf16), bf2=jnp.asarray(bf2),
        wf3=jnp.asarray(wf3, bf16), bf3=jnp.asarray(bf3),
    )


# ---------------------------- Pallas kernel ----------------------------
def net_kernel(x_ref, w1_ref, b1_ref, w2_ref, b2_ref,
               wf1_ref, bf1_ref, wf2_ref, bf2_ref, wf3_ref, bf3_ref, o_ref,
               *, act_dtype):
    f32, bf16 = jnp.float32, jnp.bfloat16

    def mm(lhs, w_ref, b_ref=None):
        y = jnp.dot(lhs.astype(bf16), w_ref[...], preferred_element_type=f32)
        return y if b_ref is None else y + b_ref[...]

    def act(pre):
        # bf16 tanh on v6e/v7x (bf16 EUP), f32 tanh on v5e/older.
        return jnp.tanh(pre.astype(act_dtype))

    # conv1 + tanh:  (TM,128) @ (128,768)
    h1 = act(mm(x_ref[...], w1_ref, b1_ref))
    # conv2 with folded pool selection (no bias yet):  (TM,768) @ (768,1024)
    z = mm(h1, w2_ref)
    # 2x2 max-pool + flatten = elementwise max over four 256-lane slabs,
    # applied BEFORE bias + tanh (tanh monotone, identical bias per slab).
    zmax = jnp.maximum(jnp.maximum(z[:, 0:FLAT], z[:, FLAT:2 * FLAT]),
                       jnp.maximum(z[:, 2 * FLAT:3 * FLAT], z[:, 3 * FLAT:]))
    pooled = act(zmax + b2_ref[...])
    # fc1 + tanh, fc2 + tanh, fc3 (all lane dims 128-aligned)
    h3 = act(mm(pooled, wf1_ref, bf1_ref))
    h4 = act(mm(h3, wf2_ref, bf2_ref))
    o_ref[...] = mm(h4, wf3_ref, bf3_ref).astype(o_ref.dtype)


def _const_spec(shape):
    nd = len(shape)
    return pl.BlockSpec(shape, lambda i, nd=nd: (0,) * nd)


def net_forward(x_nchw, ops, tm=None):
    n = x_nchw.shape[0]

    kind = jax.devices()[0].device_kind.lower()
    modern = ("v6" in kind) or ("v7" in kind)        # bf16 EUP / big MXU
    two_cores = "v7" in kind                         # 2 TensorCores per chip

    act_dtype = jnp.bfloat16 if modern else jnp.float32
    if tm is None:
        tm = 1024 if modern else 512
    # headroom above the default scoped-VMEM limit; stay under v7x's 64 MiB.
    vmem_limit = (48 << 20) if two_cores else (64 << 20)

    # batch tiling: multiples of 16 (bf16 input sublane tile); on v7x make sure
    # batches spanning more than one minimal tile give >= 2 parallel grid steps.
    n_min = _round_up(max(n, SUB), SUB)
    tm_eff = min(_round_up(tm, SUB), n_min)
    if two_cores and n_min >= 2 * SUB:
        tm_eff = min(tm_eff, _round_up((n_min + 1) // 2, SUB))
    n_pad = _round_up(n, tm_eff)

    # glue: flatten NCHW (C=1) to (N, 100) rows = h*10 + w, pad to (n_pad, 128),
    # store in bf16 (halves the only recurring input DMA).
    x_flat = x_nchw.reshape(n, H * W).astype(jnp.float32)
    x_p = jnp.pad(x_flat, ((0, n_pad - n), (0, XIN_P - H * W))).astype(jnp.bfloat16)

    order = ("w1", "b1", "w2", "b2", "wf1", "bf1", "wf2", "bf2", "wf3", "bf3")
    weights = [ops[k] for k in order]

    in_specs = [pl.BlockSpec((tm_eff, XIN_P), lambda i: (i, 0))] + \
               [_const_spec(w.shape) for w in weights]
    out_specs = pl.BlockSpec((tm_eff, FC3_P), lambda i: (i, 0))

    flops_per_row = 2 * (XIN_P * C1_P + C1_P * POOL4 + FLAT * FC1_P
                         + FC1_P * FC2_P + FC2_P * FC3_P)
    trans_per_row = C1_P + FLAT + FC1_P + FC2_P          # pool-before-tanh
    weight_bytes = sum(int(np.prod(w.shape)) * w.dtype.itemsize for w in weights)
    cost = pl.CostEstimate(
        flops=n_pad * flops_per_row,
        transcendentals=n_pad * trans_per_row,
        bytes_accessed=n_pad * XIN_P * 2 + weight_bytes + n_pad * FC3_P * 4,
    )

    out = pl.pallas_call(
        partial(net_kernel, act_dtype=act_dtype),
        out_shape=jax.ShapeDtypeStruct((n_pad, FC3_P), jnp.float32),
        grid=(n_pad // tm_eff,),
        in_specs=in_specs,
        out_specs=out_specs,
        compiler_params=pltpu.CompilerParams(
            dimension_semantics=("parallel",),
            vmem_limit_bytes=vmem_limit),
        cost_estimate=cost,
    )(x_p, *weights)
    return out[:n, :FC3]


# ---------------------- pure-JAX reference (for checking) ----------------------
def reference_forward(x, p):
    dn = ("NCHW", "OIHW", "NCHW")
    y = jax.lax.conv_general_dilated(x, jnp.asarray(p["w1"]), (1, 1),
                                     ((1, 1), (1, 1)), dimension_numbers=dn)
    y = jnp.tanh(y + jnp.asarray(p["b1"])[None, :, None, None])
    y = jax.lax.conv_general_dilated(y, jnp.asarray(p["w2"]), (1, 1),
                                     ((1, 1), (1, 1)), dimension_numbers=dn)
    y = jnp.tanh(y + jnp.asarray(p["b2"])[None, :, None, None])
    y = jax.lax.reduce_window(y, -jnp.inf, jax.lax.max,
                              (1, 1, 2, 2), (1, 1, 2, 2), "VALID")
    y = y.reshape(y.shape[0], -1)
    y = jnp.tanh(y @ jnp.asarray(p["wf1"]).T + jnp.asarray(p["bf1"]))
    y = jnp.tanh(y @ jnp.asarray(p["wf2"]).T + jnp.asarray(p["bf2"]))
    y = y @ jnp.asarray(p["wf3"]).T + jnp.asarray(p["bf3"])
    return y


if __name__ == "__main__":
    key = jax.random.PRNGKey(0)
    x = jax.random.normal(key, (2, 1, 10, 10), dtype=jnp.float32)  # NCHW like PyTorch

    params = init_params(0)
    ops = build_kernel_operands(params)

    out = net_forward(x, ops)
    out = jax.block_until_ready(out)
    assert out.shape == (2, 100), out.shape

    ref = reference_forward(x, params)
    ref = jax.block_until_ready(ref)
    if not np.allclose(np.asarray(out), np.asarray(ref), rtol=5e-2, atol=5e-2):
        max_err = float(np.max(np.abs(np.asarray(out) - np.asarray(ref))))
        raise SystemExit(f"mismatch vs reference, max abs err = {max_err}")

    print("KERNEL_OK")
</pallas_src>

<mosaic_0001>
module attributes {stable_mosaic.version = 11 : i64} {
  func.func @net_kernel(%arg0: i32, %arg1: memref<16x128xbf16, #tpu.memory_space<vmem>>, %arg2: memref<128x768xbf16, #tpu.memory_space<vmem>>, %arg3: memref<1x768xf32, #tpu.memory_space<vmem>>, %arg4: memref<768x1024xbf16, #tpu.memory_space<vmem>>, %arg5: memref<1x256xf32, #tpu.memory_space<vmem>>, %arg6: memref<256x256xbf16, #tpu.memory_space<vmem>>, %arg7: memref<1x256xf32, #tpu.memory_space<vmem>>, %arg8: memref<256x128xbf16, #tpu.memory_space<vmem>>, %arg9: memref<1x128xf32, #tpu.memory_space<vmem>>, %arg10: memref<128x128xbf16, #tpu.memory_space<vmem>>, %arg11: memref<1x128xf32, #tpu.memory_space<vmem>>, %arg12: memref<16x128xf32, #tpu.memory_space<vmem>>) attributes {dimension_semantics = [#tpu.dimension_semantics<parallel>], iteration_bounds = array<i64: 1>, scalar_prefetch = 0 : i64, scratch_operands = 0 : i64, tpu.core_type = #tpu.core_type<tc>, window_params = [{transform_indices = @transform_0, window_bounds = array<i64: 16, 128>}, {pipeline_mode = #tpu.pipeline_mode<synchronous>, transform_indices = @transform_1, window_bounds = array<i64: 128, 768>}, {pipeline_mode = #tpu.pipeline_mode<synchronous>, transform_indices = @transform_2, window_bounds = array<i64: 1, 768>}, {pipeline_mode = #tpu.pipeline_mode<synchronous>, transform_indices = @transform_3, window_bounds = array<i64: 768, 1024>}, {pipeline_mode = #tpu.pipeline_mode<synchronous>, transform_indices = @transform_4, window_bounds = array<i64: 1, 256>}, {pipeline_mode = #tpu.pipeline_mode<synchronous>, transform_indices = @transform_5, window_bounds = array<i64: 256, 256>}, {pipeline_mode = #tpu.pipeline_mode<synchronous>, transform_indices = @transform_6, window_bounds = array<i64: 1, 256>}, {pipeline_mode = #tpu.pipeline_mode<synchronous>, transform_indices = @transform_7, window_bounds = array<i64: 256, 128>}, {pipeline_mode = #tpu.pipeline_mode<synchronous>, transform_indices = @transform_8, window_bounds = array<i64: 1, 128>}, {pipeline_mode = #tpu.pipeline_mode<synchronous>, transform_indices = @transform_9, window_bounds = array<i64: 128, 128>}, {pipeline_mode = #tpu.pipeline_mode<synchronous>, transform_indices = @transform_10, window_bounds = array<i64: 1, 128>}, {transform_indices = @transform_11, window_bounds = array<i64: 16, 128>}]} {
    %c0 = arith.constant 0 : index
    %c0_0 = arith.constant 0 : index
    %0 = vector.load %arg1[%c0, %c0_0] : memref<16x128xbf16, #tpu.memory_space<vmem>>, vector<16x128xbf16>
    %c0_1 = arith.constant 0 : index
    %c0_2 = arith.constant 0 : index
    %1 = vector.load %arg2[%c0_1, %c0_2] : memref<128x768xbf16, #tpu.memory_space<vmem>>, vector<128x768xbf16>
    %cst = arith.constant dense<0.000000e+00> : vector<16x768xf32>
    %2 = tpu.matmul %0, %1, %cst {dimension_numbers = #tpu.dot_dimension_numbers<[1], [0], [0], [1], [0, 0, 1, 1], [], []>} : vector<16x128xbf16>, vector<128x768xbf16>, vector<16x768xf32> -> vector<16x768xf32>
    %c0_3 = arith.constant 0 : index
    %c0_4 = arith.constant 0 : index
    %3 = vector.load %arg3[%c0_3, %c0_4] : memref<1x768xf32, #tpu.memory_space<vmem>>, vector<1x768xf32>
    %4 = vector.broadcast %3 : vector<1x768xf32> to vector<16x768xf32>
    %5 = arith.addf %2, %4 : vector<16x768xf32>
    %6 = math.tanh %5 : vector<16x768xf32>
    %7 = arith.truncf %6 : vector<16x768xf32> to vector<16x768xbf16>
    %c0_5 = arith.constant 0 : index
    %c0_6 = arith.constant 0 : index
    %8 = vector.load %arg4[%c0_5, %c0_6] : memref<768x1024xbf16, #tpu.memory_space<vmem>>, vector<768x1024xbf16>
    %cst_7 = arith.constant dense<0.000000e+00> : vector<16x1024xf32>
    %9 = tpu.matmul %7, %8, %cst_7 {dimension_numbers = #tpu.dot_dimension_numbers<[1], [0], [0], [1], [0, 0, 1, 1], [], []>} : vector<16x768xbf16>, vector<768x1024xbf16>, vector<16x1024xf32> -> vector<16x1024xf32>
    %10 = vector.extract_strided_slice %9 {offsets = [0, 0], sizes = [16, 256], strides = [1, 1]} : vector<16x1024xf32> to vector<16x256xf32>
    %11 = vector.extract_strided_slice %9 {offsets = [0, 256], sizes = [16, 256], strides = [1, 1]} : vector<16x1024xf32> to vector<16x256xf32>
    %12 = arith.maximumf %10, %11 : vector<16x256xf32>
    %13 = vector.extract_strided_slice %9 {offsets = [0, 512], sizes = [16, 256], strides = [1, 1]} : vector<16x1024xf32> to vector<16x256xf32>
    %14 = vector.extract_strided_slice %9 {offsets = [0, 768], sizes = [16, 256], strides = [1, 1]} : vector<16x1024xf32> to vector<16x256xf32>
    %15 = arith.maximumf %13, %14 : vector<16x256xf32>
    %16 = arith.maximumf %12, %15 : vector<16x256xf32>
    %c0_8 = arith.constant 0 : index
    %c0_9 = arith.constant 0 : index
    %17 = vector.load %arg5[%c0_8, %c0_9] : memref<1x256xf32, #tpu.memory_space<vmem>>, vector<1x256xf32>
    %18 = vector.broadcast %17 : vector<1x256xf32> to vector<16x256xf32>
    %19 = arith.addf %16, %18 : vector<16x256xf32>
    %20 = math.tanh %19 : vector<16x256xf32>
    %21 = arith.truncf %20 : vector<16x256xf32> to vector<16x256xbf16>
    %c0_10 = arith.constant 0 : index
    %c0_11 = arith.constant 0 : index
    %22 = vector.load %arg6[%c0_10, %c0_11] : memref<256x256xbf16, #tpu.memory_space<vmem>>, vector<256x256xbf16>
    %cst_12 = arith.constant dense<0.000000e+00> : vector<16x256xf32>
    %23 = tpu.matmul %21, %22, %cst_12 {dimension_numbers = #tpu.dot_dimension_numbers<[1], [0], [0], [1], [0, 0, 1, 1], [], []>} : vector<16x256xbf16>, vector<256x256xbf16>, vector<16x256xf32> -> vector<16x256xf32>
    %c0_13 = arith.constant 0 : index
    %c0_14 = arith.constant 0 : index
    %24 = vector.load %arg7[%c0_13, %c0_14] : memref<1x256xf32, #tpu.memory_space<vmem>>, vector<1x256xf32>
    %25 = vector.broadcast %24 : vector<1x256xf32> to vector<16x256xf32>
    %26 = arith.addf %23, %25 : vector<16x256xf32>
    %27 = math.tanh %26 : vector<16x256xf32>
    %28 = arith.truncf %27 : vector<16x256xf32> to vector<16x256xbf16>
    %c0_15 = arith.constant 0 : index
    %c0_16 = arith.constant 0 : index
    %29 = vector.load %arg8[%c0_15, %c0_16] : memref<256x128xbf16, #tpu.memory_space<vmem>>, vector<256x128xbf16>
    %cst_17 = arith.constant dense<0.000000e+00> : vector<16x128xf32>
    %30 = tpu.matmul %28, %29, %cst_17 {dimension_numbers = #tpu.dot_dimension_numbers<[1], [0], [0], [1], [0, 0, 1, 1], [], []>} : vector<16x256xbf16>, vector<256x128xbf16>, vector<16x128xf32> -> vector<16x128xf32>
    %c0_18 = arith.constant 0 : index
    %c0_19 = arith.constant 0 : index
    %31 = vector.load %arg9[%c0_18, %c0_19] : memref<1x128xf32, #tpu.memory_space<vmem>>, vector<1x128xf32>
    %32 = vector.broadcast %31 : vector<1x128xf32> to vector<16x128xf32>
    %33 = arith.addf %30, %32 : vector<16x128xf32>
    %34 = math.tanh %33 : vector<16x128xf32>
    %35 = arith.truncf %34 : vector<16x128xf32> to vector<16x128xbf16>
    %c0_20 = arith.constant 0 : index
    %c0_21 = arith.constant 0 : index
    %36 = vector.load %arg10[%c0_20, %c0_21] : memref<128x128xbf16, #tpu.memory_space<vmem>>, vector<128x128xbf16>
    %cst_22 = arith.constant dense<0.000000e+00> : vector<16x128xf32>
    %37 = tpu.matmul %35, %36, %cst_22 {dimension_numbers = #tpu.dot_dimension_numbers<[1], [0], [0], [1], [0, 0, 1, 1], [], []>} : vector<16x128xbf16>, vector<128x128xbf16>, vector<16x128xf32> -> vector<16x128xf32>
    %c0_23 = arith.constant 0 : index
    %c0_24 = arith.constant 0 : index
    %38 = vector.load %arg11[%c0_23, %c0_24] : memref<1x128xf32, #tpu.memory_space<vmem>>, vector<1x128xf32>
    %39 = vector.broadcast %38 : vector<1x128xf32> to vector<16x128xf32>
    %40 = arith.addf %37, %39 : vector<16x128xf32>
    %c0_25 = arith.constant 0 : index
    %c0_26 = arith.constant 0 : index
    %41 = vector.load %arg12[%c0_25, %c0_26] : memref<16x128xf32, #tpu.memory_space<vmem>>, vector<16x128xf32>
    tpu.vector_store %arg12[%c0_25, %c0_26], %40 {strides = array<i32>} : memref<16x128xf32, #tpu.memory_space<vmem>>, vector<16x128xf32>,
    return
  }
  func.func @transform_0(%arg0: i32) -> (i32, i32) {
    %c0_i32 = arith.constant 0 : i32
    %c0_i32_0 = arith.constant 0 : i32
    return %arg0, %c0_i32 : i32, i32
  }
  func.func @transform_1(%arg0: i32) -> (i32, i32) {
    %c0_i32 = arith.constant 0 : i32
    %c0_i32_0 = arith.constant 0 : i32
    %c0_i32_1 = arith.constant 0 : i32
    return %c0_i32, %c0_i32_0 : i32, i32
  }
  func.func @transform_2(%arg0: i32) -> (i32, i32) {
    %c0_i32 = arith.constant 0 : i32
    %c0_i32_0 = arith.constant 0 : i32
    %c0_i32_1 = arith.constant 0 : i32
    return %c0_i32, %c0_i32_0 : i32, i32
  }
  func.func @transform_3(%arg0: i32) -> (i32, i32) {
    %c0_i32 = arith.constant 0 : i32
    %c0_i32_0 = arith.constant 0 : i32
    %c0_i32_1 = arith.constant 0 : i32
    return %c0_i32, %c0_i32_0 : i32, i32
  }
  func.func @transform_4(%arg0: i32) -> (i32, i32) {
    %c0_i32 = arith.constant 0 : i32
    %c0_i32_0 = arith.constant 0 : i32
    %c0_i32_1 = arith.constant 0 : i32
    return %c0_i32, %c0_i32_0 : i32, i32
  }
  func.func @transform_5(%arg0: i32) -> (i32, i32) {
    %c0_i32 = arith.constant 0 : i32
    %c0_i32_0 = arith.constant 0 : i32
    %c0_i32_1 = arith.constant 0 : i32
    return %c0_i32, %c0_i32_0 : i32, i32
  }
  func.func @transform_6(%arg0: i32) -> (i32, i32) {
    %c0_i32 = arith.constant 0 : i32
    %c0_i32_0 = arith.constant 0 : i32
    %c0_i32_1 = arith.constant 0 : i32
    return %c0_i32, %c0_i32_0 : i32, i32
  }
  func.func @transform_7(%arg0: i32) -> (i32, i32) {
    %c0_i32 = arith.constant 0 : i32
    %c0_i32_0 = arith.constant 0 : i32
    %c0_i32_1 = arith.constant 0 : i32
    return %c0_i32, %c0_i32_0 : i32, i32
  }
  func.func @transform_8(%arg0: i32) -> (i32, i32) {
    %c0_i32 = arith.constant 0 : i32
    %c0_i32_0 = arith.constant 0 : i32
    %c0_i32_1 = arith.constant 0 : i32
    return %c0_i32, %c0_i32_0 : i32, i32
  }
  func.func @transform_9(%arg0: i32) -> (i32, i32) {
    %c0_i32 = arith.constant 0 : i32
    %c0_i32_0 = arith.constant 0 : i32
    %c0_i32_1 = arith.constant 0 : i32
    return %c0_i32, %c0_i32_0 : i32, i32
  }
  func.func @transform_10(%arg0: i32) -> (i32, i32) {
    %c0_i32 = arith.constant 0 : i32
    %c0_i32_0 = arith.constant 0 : i32
    %c0_i32_1 = arith.constant 0 : i32
    return %c0_i32, %c0_i32_0 : i32, i32
  }
  func.func @transform_11(%arg0: i32) -> (i32, i32) {
    %c0_i32 = arith.constant 0 : i32
    %c0_i32_0 = arith.constant 0 : i32
    return %arg0, %c0_i32 : i32, i32
  }
}

</mosaic_0001>

<bundles_post_ra>
// kernel: tpu_custom_call.1
= control target key start
LH: loop header
LB: loop body
LE: loop exit
PB: predicated region body
PF: predicated region fallthrough
CT: control target
= control target key end

     0   :  { %16 = vsyncpa [#allocation3], 0  ;;  %s7294_s0 = inlined_call_operand.hbm [shape: bf16[16,128], index: 0, kind: input, shape index: {}]   ;;  %s7295_s1 = inlined_call_operand.hbm [shape: bf16[128,768], index: 1, kind: input, shape index: {}]   ;;  %s7296_s2 = inlined_call_operand.hbm [shape: f32[1,768], index: 2, kind: input, shape index: {}]   ;;  %s7297_s3 = inlined_call_operand.hbm [shape: bf16[768,1024], index: 3, kind: input, shape index: {}]   ;;  %s7298_s4 = inlined_call_operand.hbm [shape: f32[1,256], index: 4, kind: input, shape index: {}]   ;;  %s7299_s5 = inlined_call_operand.hbm [shape: bf16[256,256], index: 5, kind: input, shape index: {}]   ;;  %s7300_s6 = inlined_call_operand.hbm [shape: f32[1,256], index: 6, kind: input, shape index: {}]   ;;  %s7301_s7 = inlined_call_operand.hbm [shape: bf16[256,128], index: 7, kind: input, shape index: {}]   ;;  %s7302_s8 = inlined_call_operand.hbm [shape: f32[1,128], index: 8, kind: input, shape index: {}]   ;;  %s7303_s9 = inlined_call_operand.hbm [shape: bf16[128,128], index: 9, kind: input, shape index: {}]   ;;  %s7304_s10 = inlined_call_operand.hbm [shape: f32[1,128], index: 10, kind: input, shape index: {}]   ;;  %s7305_s11 = inlined_call_operand.hbm [shape: f32[16,128], index: 11, kind: output, shape index: {}]  }
   0x1   :  { %17 = vsyncpa [#allocation6], 0 }
   0x2   :  { %18 = vsyncpa [#allocation9], 0 }
   0x3   :  { %19 = vsyncpa [#allocation12], 0 }
   0x4   :  { %20 = vsyncpa [#allocation15], 0 }
   0x5   :  { %21 = vsyncpa [#allocation18], 0  ;;  %s40_s19 = sshll.u32 %s7295_s1, 4  ;;  %s41_s19 = int_to_ptr.hbm [resolvable:$true] %s40_s19 }
   0x6   :  { %22 = vsyncpa [#allocation4], 0  ;;  %s6960_s20 = smov [#allocation5]   ;;  %s64_s24 = sshll.u32 %s7297_s3, 4  ;;  %s65_s24 = int_to_ptr.hbm [resolvable:$true] %s64_s24 }
   0x7   :  { %s42_s21 = sshll.u32 %s6960_s20, 4  ;;  %s6961_s25 = smov 384   ;;  %s43_s21 = int_to_ptr.vmem [resolvable:$true] %s42_s21 }
   0x8   :  { %s6962_s26 = smov 24   ;;  %s6963_s27 = smov [#allocation8]  }
   0x9   :  { %48 = dma.hbm_to_vmem [thread:$0]  %s41_s19, 6144, %s43_s21, [#allocation6], %s6961_s25, %s6961_s25, %s6962_s26  }
   0xa   :  { %s66_s28 = sshll.u32 %s6963_s27, 4  ;;  %s6964_s29 = smov 512   ;;  %s67_s28 = int_to_ptr.vmem [resolvable:$true] %s66_s28 }
   0xb   :  { %s6965_s30 = smov 32   ;;  %s88_s13 = sshll.u32 %s7299_s5, 4  ;;  %s89_s13 = int_to_ptr.hbm [resolvable:$true] %s88_s13 }
   0xc   :  { %72 = dma.hbm_to_vmem [thread:$0]  %s65_s24, 49152, %s67_s28, [#allocation9], %s6964_s29, %s6964_s29, %s6965_s30  }
   0xd   :  { %s6966_s14 = smov [#allocation11]   ;;  %s6967_s16 = smov 128  }
   0xe   :  { %s90_s15 = sshll.u32 %s6966_s14, 4  ;;  %s6968_s3 = smov 8   ;;  %s91_s15 = int_to_ptr.vmem [resolvable:$true] %s90_s15 }
   0xf   :  { %96 = dma.hbm_to_vmem [thread:$0]  %s89_s13, 4096, %s91_s15, [#allocation12], %s6967_s16, %s6967_s16, %s6968_s3  }
  0x10   :  { %s112_s19 = sshll.u32 %s7301_s7, 4  ;;  %s6969_s20 = smov [#allocation14]   ;;  %s113_s19 = int_to_ptr.hbm [resolvable:$true] %s112_s19 }
  0x11   :  { %s114_s21 = sshll.u32 %s6969_s20, 4  ;;  %s136_s5 = sshll.u32 %s7303_s9, 4  ;;  %s115_s21 = int_to_ptr.vmem [resolvable:$true] %s114_s21  ;;  %s137_s5 = int_to_ptr.hbm [resolvable:$true] %s136_s5 }
  0x12   :  { %s6970_s24 = smov 64   ;;  %s6971_s25 = smov 4  }
  0x13   :  { %120 = dma.hbm_to_vmem [thread:$0]  %s113_s19, 2048, %s115_s21, [#allocation15], %s6970_s24, %s6970_s24, %s6971_s25  }
  0x14   :  { %s27_s28 = sshll.u32 %s7294_s0, 4  ;;  %s6972_s29 = smov [#allocation17]   ;;  %s28_s28 = int_to_ptr.hbm [resolvable:$true] %s27_s28 }
  0x15   :  { %s138_s30 = sshll.u32 %s6972_s29, 4  ;;  %s6973_s7 = smov [#allocation2]   ;;  %s139_s30 = int_to_ptr.vmem [resolvable:$true] %s138_s30 }
  0x16   :  { %144 = dma.hbm_to_vmem [thread:$0]  %s137_s5, 1024, %s139_s30, [#allocation18], %s6970_s24, %s6970_s24, %s6971_s25  }
  0x17   :  { %s29_s1 = sshll.u32 %s6973_s7, 4  ;;  %s54_s9 = sshll.u32 %s7296_s2, 4  ;;  %s30_s1 = int_to_ptr.vmem [resolvable:$true] %s29_s1  ;;  %s55_s9 = int_to_ptr.hbm [resolvable:$true] %s54_s9 }
  0x18   :  { %35 = dma.hbm_to_vmem [thread:$0]  %s28_s28, 128, %s30_s1, [#allocation3], %s6970_s24, %s6970_s24, %s6971_s25  }
  0x19   :  { %s78_s17 = sshll.u32 %s7298_s4, 4  ;;  %s6974_s18 = smov [#allocation7]   ;;  %s79_s17 = int_to_ptr.hbm [resolvable:$true] %s78_s17 }
  0x1a   :  { %s56_s0 = sshll.u32 %s6974_s18, 4  ;;  %s6975_s19 = smov [#allocation10]   ;;  %s57_s0 = int_to_ptr.vmem [resolvable:$true] %s56_s0 }
  0x1b   :  { %59 = dma.hbm_to_vmem [thread:$0]  %s55_s9, 96, %s57_s0, [#allocation6]  }
  0x1c   :  { %s80_s20 = sshll.u32 %s6975_s19, 4  ;;  %s102_s23 = sshll.u32 %s7300_s6, 4  ;;  %s81_s20 = int_to_ptr.vmem [resolvable:$true] %s80_s20  ;;  %s103_s23 = int_to_ptr.hbm [resolvable:$true] %s102_s23 }
  0x1d   :  { %83 = dma.hbm_to_vmem [thread:$0]  %s79_s17, 32, %s81_s20, [#allocation9]  }
  0x1e   :  { %s126_s24 = sshll.u32 %s7302_s8, 4  ;;  %s6976_s25 = smov [#allocation13]   ;;  %s127_s24 = int_to_ptr.hbm [resolvable:$true] %s126_s24 }
  0x1f   :  { %s104_s4 = sshll.u32 %s6976_s25, 4  ;;  %s6977_s26 = smov [#allocation16]   ;;  %s105_s4 = int_to_ptr.vmem [resolvable:$true] %s104_s4 }
  0x20   :  { %107 = dma.hbm_to_vmem [thread:$0]  %s103_s23, 32, %s105_s4, [#allocation12]  }
  0x21   :  { %s128_s27 = sshll.u32 %s6977_s26, 4  ;;  %s150_s30 = sshll.u32 %s7304_s10, 4  ;;  %s129_s27 = int_to_ptr.vmem [resolvable:$true] %s128_s27  ;;  %s151_s30 = int_to_ptr.hbm [resolvable:$true] %s150_s30 }
  0x22   :  { %131 = dma.hbm_to_vmem [thread:$0]  %s127_s24, 16, %s129_s27, [#allocation15]  }
  0x23   :  { %s6978_s6 = smov [#allocation19]  }
  0x24   :  { %s152_s7 = sshll.u32 %s6978_s6, 4  ;;  %s153_s7 = int_to_ptr.vmem [resolvable:$true] %s152_s7 }
  0x25   :  { %155 = dma.hbm_to_vmem [thread:$0]  %s151_s30, 16, %s153_s7, [#allocation18]  }
  0x26   :  { %6946 = dma.done.wait [#allocation3], 128  }
  0x27   :  { %6947 = vsyncadd [#allocation3], 4294967168 }
  0x28   :  { %6948 = dma.done.wait [#allocation6], 6240  }
  0x29   :  { %6949 = vsyncadd [#allocation6], 4294961056 }
  0x2a   :  { %6950 = dma.done.wait [#allocation9], 49184  }
  0x2b   :  { %6951 = vsyncadd [#allocation9], 4294918112 }
  0x2c   :  { %6952 = dma.done.wait [#allocation12], 4128  }
  0x2d   :  { %6953 = vsyncadd [#allocation12], 4294963168 }
  0x2e   :  { %6954 = dma.done.wait [#allocation15], 2064  }
  0x2f   :  { %6955 = vsyncadd [#allocation15], 4294965232 }
  0x30   :  { %6956 = dma.done.wait [#allocation18], 1040  }
  0x31   :  { %6957 = vsyncadd [#allocation18], 4294966256  ;;  %v4321_v0 = vld [vmem:[#allocation5 + $0x150] sm:$0xf]  ;;  %v6149_v1 = vld [vmem:[#allocation5 + $0x164] sm:$0xf0] }
  0x32   :  { %v6146_v2 = vld [vmem:[#allocation5 + $0x154] sm:$0xf]  ;;  %v4322_v3 = vor.u32 %v6149_v1, %v4321_v0  ;;  %v4323_v4 = vld [vmem:[#allocation5 + $0x168] sm:$0xf0]  ;;  %v4329_v5 = vld [vmem:[#allocation5 + $0x158] sm:$0xf] }
  0x33   :  { %v6150_v6 = vld [vmem:[#allocation5 + $0x16c] sm:$0xf0]  ;;  %v4326_v7 = vor.u32 %v6146_v2, %v4323_v4  ;;  %v6147_v9 = vld [vmem:[#allocation5 + $0x15c] sm:$0xf]  ;;  %v4331_v10 = vld [vmem:[#allocation5 + $0x170] sm:$0xf0] }
  0x34   :  { %v4330_v8 = vor.u32 %v6150_v6, %v4329_v5  ;;  %v4297_v11 = vld [vmem:[#allocation5 + $0x120] sm:$0xf]  ;;  %510 = vmatpush.bf16.msra.mxu0 %v4322_v3  ;;  %v4334_v12 = vor.u32 %v6147_v9, %v4331_v10  ;;  %v6143_v13 = vld [vmem:[#allocation5 + $0x134] sm:$0xf0]  ;;  %v6140_v14 = vld [vmem:[#allocation5 + $0x124] sm:$0xf] }
  0x35   :  { %v4299_v15 = vld [vmem:[#allocation5 + $0x138] sm:$0xf0]  ;;  %524 = vmatpush.bf16.msra.mxu1 %v4326_v7  ;;  %v4298_v16 = vor.u32 %v6143_v13, %v4297_v11  ;;  %v4305_v18 = vld [vmem:[#allocation5 + $0x128] sm:$0xf]  ;;  %v6144_v19 = vld [vmem:[#allocation5 + $0x13c] sm:$0xf0] }
  0x36   :  { %538 = vmatpush.bf16.msra.mxu2 %v4330_v8  ;;  %v4302_v17 = vor.u32 %v6140_v14, %v4299_v15  ;;  %v6141_v20 = vld [vmem:[#allocation5 + $0x12c] sm:$0xf]  ;;  %552 = vmatpush.bf16.msra.mxu3 %v4334_v12  ;;  %v4306_v21 = vor.u32 %v6144_v19, %v4305_v18  ;;  %v4307_v22 = vld [vmem:[#allocation5 + $0x140] sm:$0xf0]  ;;  %v4273_v23 = vld [vmem:[#allocation5 + $0xf0] sm:$0xf] }
  0x37   :  { %v6137_v24 = vld [vmem:[#allocation5 + $0x104] sm:$0xf0]  ;;  %v4310_v25 = vor.u32 %v6141_v20, %v4307_v22  ;;  %v6134_v26 = vld [vmem:[#allocation5 + $0xf4] sm:$0xf]  ;;  %v4275_v27 = vld [vmem:[#allocation5 + $0x108] sm:$0xf0] }
  0x38   :  { %v4281_v28 = vld [vmem:[#allocation5 + $0xf8] sm:$0xf]  ;;  %511 = vmatpush.bf16.msra.mxu0 %v4298_v16  ;;  %v4274_v29 = vor.u32 %v6137_v24, %v4273_v23  ;;  %v6138_v30 = vld [vmem:[#allocation5 + $0x10c] sm:$0xf0]  ;;  %v6135_v31 = vld [vmem:[#allocation5 + $0xfc] sm:$0xf]  ;;  %v4278_v33 = vor.u32 %v6134_v26, %v4275_v27 }
  0x39   :  { %v4283_v32 = vld [vmem:[#allocation5 + $0x110] sm:$0xf0]  ;;  %525 = vmatpush.bf16.msra.mxu1 %v4302_v17  ;;  %v4282_v34 = vor.u32 %v6138_v30, %v4281_v28  ;;  %v4249_v35 = vld [vmem:[#allocation5 + $0xc0] sm:$0xf]  ;;  %v6131_v36 = vld [vmem:[#allocation5 + $0xd4] sm:$0xf0] }
  0x3a   :  { %539 = vmatpush.bf16.msra.mxu2 %v4306_v21  ;;  %v6128_v37 = vld [vmem:[#allocation5 + $0xc4] sm:$0xf]  ;;  %553 = vmatpush.bf16.msra.mxu3 %v4310_v25  ;;  %v4286_v38 = vor.u32 %v6135_v31, %v4283_v32  ;;  %v4251_v39 = vld [vmem:[#allocation5 + $0xd8] sm:$0xf0]  ;;  %v4257_v40 = vld [vmem:[#allocation5 + $0xc8] sm:$0xf]  ;;  %v4250_v44 = vor.u32 %v6131_v36, %v4249_v35 }
  0x3b   :  { %v6132_v41 = vld [vmem:[#allocation5 + $0xdc] sm:$0xf0]  ;;  %v6129_v42 = vld [vmem:[#allocation5 + $0xcc] sm:$0xf]  ;;  %v4259_v43 = vld [vmem:[#allocation5 + $0xe0] sm:$0xf0]  ;;  %v4254_v45 = vor.u32 %v6128_v37, %v4251_v39 }
  0x3c   :  { %512 = vmatpush.bf16.msra.mxu0 %v4274_v29  ;;  %v4258_v46 = vor.u32 %v6132_v41, %v4257_v40  ;;  %v4225_v47 = vld [vmem:[#allocation5 + $0x90] sm:$0xf]  ;;  %v6125_v48 = vld [vmem:[#allocation5 + $0xa4] sm:$0xf0]  ;;  %v6122_v49 = vld [vmem:[#allocation5 + $0x94] sm:$0xf]  ;;  %v4262_v50 = vor.u32 %v6129_v42, %v4259_v43 }
  0x3d   :  { %526 = vmatpush.bf16.msra.mxu1 %v4278_v33  ;;  %v4227_v51 = vld [vmem:[#allocation5 + $0xa8] sm:$0xf0]  ;;  %v4233_v52 = vld [vmem:[#allocation5 + $0x98] sm:$0xf]  ;;  %v6126_v53 = vld [vmem:[#allocation5 + $0xac] sm:$0xf0]  ;;  %v4226_v56 = vor.u32 %v6125_v48, %v4225_v47 }
  0x3e   :  { %540 = vmatpush.bf16.msra.mxu2 %v4282_v34  ;;  %554 = vmatpush.bf16.msra.mxu3 %v4286_v38  ;;  %v6123_v54 = vld [vmem:[#allocation5 + $0x9c] sm:$0xf]  ;;  %v4235_v55 = vld [vmem:[#allocation5 + $0xb0] sm:$0xf0]  ;;  %v4230_v57 = vor.u32 %v6122_v49, %v4227_v51  ;;  %v4234_v58 = vor.u32 %v6126_v53, %v4233_v52  ;;  %v4201_v59 = vld [vmem:[#allocation5 + $0x60] sm:$0xf] }
  0x3f   :  { %v6119_v60 = vld [vmem:[#allocation5 + $0x74] sm:$0xf0]  ;;  %v6116_v61 = vld [vmem:[#allocation5 + $0x64] sm:$0xf]  ;;  %v4238_v62 = vor.u32 %v6123_v54, %v4235_v55  ;;  %v4203_v63 = vld [vmem:[#allocation5 + $0x78] sm:$0xf0] }
  0x40   :  { %513 = vmatpush.bf16.msra.mxu0 %v4250_v44  ;;  %v4209_v0 = vld [vmem:[#allocation5 + $0x68] sm:$0xf]  ;;  %v6120_v1 = vld [vmem:[#allocation5 + $0x7c] sm:$0xf0]  ;;  %v6117_v2 = vld [vmem:[#allocation5 + $0x6c] sm:$0xf]  ;;  %v4202_v4 = vor.u32 %v6119_v60, %v4201_v59  ;;  %v4206_v5 = vor.u32 %v6116_v61, %v4203_v63 }
  0x41   :  { %527 = vmatpush.bf16.msra.mxu1 %v4254_v45  ;;  %v4211_v3 = vld [vmem:[#allocation5 + $0x80] sm:$0xf0]  ;;  %v4210_v6 = vor.u32 %v6120_v1, %v4209_v0  ;;  %v4177_v7 = vld [vmem:[#allocation5 + $0x30] sm:$0xf]  ;;  %v6113_v8 = vld [vmem:[#allocation5 + $0x44] sm:$0xf0] }
  0x42   :  { %541 = vmatpush.bf16.msra.mxu2 %v4258_v46  ;;  %555 = vmatpush.bf16.msra.mxu3 %v4262_v50  ;;  %v6110_v9 = vld [vmem:[#allocation5 + $0x34] sm:$0xf]  ;;  %v4214_v10 = vor.u32 %v6117_v2, %v4211_v3  ;;  %v4179_v11 = vld [vmem:[#allocation5 + $0x48] sm:$0xf0]  ;;  %v4185_v12 = vld [vmem:[#allocation5 + $0x38] sm:$0xf]  ;;  %v4178_v16 = vor.u32 %v6113_v8, %v4177_v7 }
  0x43   :  { %v6114_v13 = vld [vmem:[#allocation5 + $0x4c] sm:$0xf0]  ;;  %v6111_v14 = vld [vmem:[#allocation5 + $0x3c] sm:$0xf]  ;;  %v4187_v15 = vld [vmem:[#allocation5 + $0x50] sm:$0xf0]  ;;  %v4182_v18 = vor.u32 %v6110_v9, %v4179_v11 }
  0x44   :  { %514 = vmatpush.bf16.msra.mxu0 %v4226_v56  ;;  %v4153_v17 = vld [vmem:[#allocation5] sm:$0xf]  ;;  %v4186_v19 = vor.u32 %v6114_v13, %v4185_v12  ;;  %v6107_v20 = vld [vmem:[#allocation5 + $0x14] sm:$0xf0]  ;;  %v6104_v21 = vld [vmem:[#allocation5 + $0x4] sm:$0xf]  ;;  %v4190_v23 = vor.u32 %v6111_v14, %v4187_v15 }
  0x45   :  { %528 = vmatpush.bf16.msra.mxu1 %v4230_v57  ;;  %v4155_v22 = vld [vmem:[#allocation5 + $0x18] sm:$0xf0]  ;;  %v4161_v24 = vld [vmem:[#allocation5 + $0x8] sm:$0xf]  ;;  %v6108_v25 = vld [vmem:[#allocation5 + $0x1c] sm:$0xf0]  ;;  %v4154_v30 = vor.u32 %v6107_v20, %v4153_v17 }
  0x46   :  { %542 = vmatpush.bf16.msra.mxu2 %v4234_v58  ;;  %556 = vmatpush.bf16.msra.mxu3 %v4238_v62  ;;  %v6105_v26 = vld [vmem:[#allocation5 + $0xc] sm:$0xf]  ;;  %v4163_v27 = vld [vmem:[#allocation5 + $0x20] sm:$0xf0]  ;;  %v4337_v28 = vld [vmem:[#allocation5 + $0x160] sm:$0xf]  ;;  %v4158_v33 = vor.u32 %v6104_v21, %v4155_v22  ;;  %v4162_v34 = vor.u32 %v6108_v25, %v4161_v24 }
  0x47   :  { %v6151_v29 = vld [vmem:[#allocation5 + $0x174] sm:$0xf0]  ;;  %v6148_v31 = vld [vmem:[#allocation5 + $0x164] sm:$0xf]  ;;  %v4339_v32 = vld [vmem:[#allocation5 + $0x178] sm:$0xf0]  ;;  %v4166_v35 = vor.u32 %v6105_v26, %v4163_v27 }
  0x48   :  { %515 = vmatpush.bf16.msra.mxu0 %v4202_v4  ;;  %v4338_v36 = vor.u32 %v6151_v29, %v4337_v28  ;;  %v4342_v37 = vor.u32 %v6148_v31, %v4339_v32  ;;  %v7076_v38 = vld [vmem:[#allocation2] sm:$0xff]  ;;  %v4313_v39 = vld [vmem:[#allocation5 + $0x130] sm:$0xf]  ;;  %v6145_v40 = vld [vmem:[#allocation5 + $0x144] sm:$0xf0]  ;;  %s6979_s8 = smov [#allocation20]  }
  0x49   :  { %529 = vmatpush.bf16.msra.mxu1 %v4206_v5  ;;  %v6142_v41 = vld [vmem:[#allocation5 + $0x134] sm:$0xf]  ;;  %v4315_v42 = vld [vmem:[#allocation5 + $0x148] sm:$0xf0]  ;;  %v4289_v43 = vld [vmem:[#allocation5 + $0x100] sm:$0xf]  ;;  %v4314_v45 = vor.u32 %v6145_v40, %v4313_v39 }
  0x4a   :  { %543 = vmatpush.bf16.msra.mxu2 %v4210_v6  ;;  %557 = vmatpush.bf16.msra.mxu3 %v4214_v10  ;;  %v6139_v44 = vld [vmem:[#allocation5 + $0x114] sm:$0xf0]  ;;  %v6136_v46 = vld [vmem:[#allocation5 + $0x104] sm:$0xf]  ;;  %v4318_v50 = vor.u32 %v6142_v41, %v4315_v42  ;;  %v4291_v55 = vld [vmem:[#allocation5 + $0x118] sm:$0xf0] }
  0x4b   :  { %v4569_v47 = vld [vmem:[#allocation8 + $0x1c0] sm:$0xf]  ;;  %v4290_v60 = vor.u32 %v6139_v44, %v4289_v43  ;;  %v4265_v61 = vld [vmem:[#allocation5 + $0xd0] sm:$0xf]  ;;  %v4294_v1 = vor.u32 %v6136_v46, %v4291_v55  ;;  %v6130_v5 = vld [vmem:[#allocation5 + $0xd4] sm:$0xf] }
  0x4c   :  { %516 = vmatpush.bf16.msra.mxu0 %v4178_v16  ;;  %v6212_v48 = vld [vmem:[#allocation8 + $0x1dc] sm:$0xf0]  ;;  %v4267_v6 = vld [vmem:[#allocation5 + $0xe8] sm:$0xf0]  ;;  %v4241_v9 = vld [vmem:[#allocation5 + $0xa0] sm:$0xf] }
  0x4d   :  { %530 = vmatpush.bf16.msra.mxu1 %v4182_v18  ;;  %v4825_v49 = vld [vmem:[#allocation8 + $0x3c0] sm:$0xf]  ;;  %v4570_v51 = vor.u32 %v6212_v48, %v4569_v47  ;;  %v4270_v13 = vor.u32 %v6130_v5, %v4267_v6  ;;  %v6127_v14 = vld [vmem:[#allocation5 + $0xb4] sm:$0xf0]  ;;  %v4243_v18 = vld [vmem:[#allocation5 + $0xb8] sm:$0xf0] }
  0x4e   :  { %544 = vmatpush.bf16.msra.mxu2 %v4186_v19  ;;  %558 = vmatpush.bf16.msra.mxu3 %v4190_v23  ;;  %v6276_v52 = vld [vmem:[#allocation8 + $0x3dc] sm:$0xf0]  ;;  %v4242_v20 = vor.u32 %v6127_v14, %v4241_v9  ;;  %v4217_v21 = vld [vmem:[#allocation5 + $0x70] sm:$0xf]  ;;  %v6118_v29 = vld [vmem:[#allocation5 + $0x74] sm:$0xf] }
  0x4f   :  { %v4537_v53 = vld [vmem:[#allocation8 + $0x180] sm:$0xf]  ;;  %v4826_v56 = vor.u32 %v6276_v52, %v4825_v49  ;;  %v6115_v39 = vld [vmem:[#allocation5 + $0x54] sm:$0xf0]  ;;  %v4195_v43 = vld [vmem:[#allocation5 + $0x58] sm:$0xf0] }
  0x50   :  { %517 = vmatpush.bf16.msra.mxu0 %v4154_v30  ;;  %v6204_v54 = vld [vmem:[#allocation8 + $0x19c] sm:$0xf0]  ;;  %v4219_v30 = vld [vmem:[#allocation5 + $0x88] sm:$0xf0]  ;;  %v4169_v44 = vld [vmem:[#allocation5 + $0x10] sm:$0xf] }
  0x51   :  { %531 = vmatpush.bf16.msra.mxu1 %v4158_v33  ;;  %v4793_v57 = vld [vmem:[#allocation8 + $0x380] sm:$0xf]  ;;  %v4538_v59 = vor.u32 %v6204_v54, %v4537_v53  ;;  %v4193_v33 = vld [vmem:[#allocation5 + $0x40] sm:$0xf]  ;;  %v6106_v52 = vld [vmem:[#allocation5 + $0x14] sm:$0xf] }
  0x52   :  { %545 = vmatpush.bf16.msra.mxu2 %v4162_v34  ;;  %559 = vmatpush.bf16.msra.mxu3 %v4166_v35  ;;  %v6268_v58 = vld [vmem:[#allocation8 + $0x39c] sm:$0xf0]  ;;  %v4194_v46 = vor.u32 %v6115_v39, %v4193_v33  ;;  %v4171_v55 = vld [vmem:[#allocation5 + $0x28] sm:$0xf0]  ;;  %s4127_s10 = sshll.u32 %s6979_s8, 4  ;;  %s4129_s13 = sshll.u32 %s7305_s11, 4  ;;  %s4128_s10 = int_to_ptr.vmem [resolvable:$true] %s4127_s10  ;;  %s4130_s13 = int_to_ptr.hbm [resolvable:$true] %s4129_s13 }
  0x53   :  { %518 = vmatmul.bf16.vlgmr.msra.gmra.mxu0 %v7076_v38  ;;  %v4794_v62 = vor.u32 %v6268_v58, %v4793_v57  ;;  %v4505_v63 = vld [vmem:[#allocation8 + $0x140] sm:$0xf] }
  0x54   :  { %566 = vmatpush.bf16.msrb.mxu0 %v4338_v36  ;;  %532 = vmatmul.bf16.vlgmr.msra.gmra.mxu1 %v7076_v38  ;;  %v6196_v0 = vld [vmem:[#allocation8 + $0x15c] sm:$0xf0] }
  0x55   :  { %580 = vmatpush.bf16.msrb.mxu1 %v4342_v37  ;;  %546 = vmatmul.bf16.vlgmr.msra.gmra.mxu2 %v7076_v38  ;;  %v6133_v2 = vld [vmem:[#allocation5 + $0xe4] sm:$0xf0]  ;;  %v4506_v7 = vor.u32 %v6196_v0, %v4505_v63  ;;  %v6124_v17 = vld [vmem:[#allocation5 + $0xa4] sm:$0xf]  ;;  %v4222_v37 = vor.u32 %v6118_v29, %v4219_v30 }
  0x56   :  { %560 = vmatmul.bf16.vlgmr.msra.gmra.mxu3 %v7076_v38  ;;  %2916 = vmatpush.bf16.msrb.mxu2 %v4570_v51  ;;  %v4761_v3 = vld [vmem:[#allocation8 + $0x340] sm:$0xf]  ;;  %v4266_v8 = vor.u32 %v6133_v2, %v4265_v61  ;;  %v4246_v25 = vor.u32 %v6124_v17, %v4243_v18  ;;  %v4174_v2 = vor.u32 %v6106_v52, %v4171_v55 }
  0x57   :  { %2930 = vmatpush.bf16.msrb.mxu3 %v4826_v56  ;;  %v6260_v4 = vld [vmem:[#allocation8 + $0x35c] sm:$0xf0] }
  0x58   :  { %567 = vmatpush.bf16.msrb.mxu0 %v4314_v45  ;;  %v4762_v10 = vor.u32 %v6260_v4, %v4761_v3  ;;  %v4473_v11 = vld [vmem:[#allocation8 + $0x100] sm:$0xf] }
  0x59   :  { %581 = vmatpush.bf16.msrb.mxu1 %v4318_v50  ;;  %v6188_v12 = vld [vmem:[#allocation8 + $0x11c] sm:$0xf0] }
  0x5a   :  { %2917 = vmatpush.bf16.msrb.mxu2 %v4538_v59  ;;  %v4729_v15 = vld [vmem:[#allocation8 + $0x300] sm:$0xf]  ;;  %v4474_v19 = vor.u32 %v6188_v12, %v4473_v11 }
  0x5b   :  { %2931 = vmatpush.bf16.msrb.mxu3 %v4794_v62  ;;  %v6252_v16 = vld [vmem:[#allocation8 + $0x31c] sm:$0xf0] }
  0x5c   :  { %568 = vmatpush.bf16.msrb.mxu0 %v4290_v60  ;;  %v4730_v22 = vor.u32 %v6252_v16, %v4729_v15  ;;  %v4441_v23 = vld [vmem:[#allocation8 + $0xc0] sm:$0xf] }
  0x5d   :  { %582 = vmatpush.bf16.msrb.mxu1 %v4294_v1  ;;  %v6180_v24 = vld [vmem:[#allocation8 + $0xdc] sm:$0xf0] }
  0x5e   :  { %2918 = vmatpush.bf16.msrb.mxu2 %v4506_v7  ;;  %v6121_v26 = vld [vmem:[#allocation5 + $0x84] sm:$0xf0]  ;;  %v4442_v31 = vor.u32 %v6180_v24, %v4441_v23  ;;  %v6112_v42 = vld [vmem:[#allocation5 + $0x44] sm:$0xf] }
  0x5f   :  { %2932 = vmatpush.bf16.msrb.mxu3 %v4762_v10  ;;  %v4697_v27 = vld [vmem:[#allocation8 + $0x2c0] sm:$0xf]  ;;  %v4218_v32 = vor.u32 %v6121_v26, %v4217_v21  ;;  %v4198_v51 = vor.u32 %v6112_v42, %v4195_v43 }
  0x60   :  { %569 = vmatpush.bf16.msrb.mxu0 %v4266_v8  ;;  %v6244_v28 = vld [vmem:[#allocation8 + $0x2dc] sm:$0xf0] }
  0x61   :  { %583 = vmatpush.bf16.msrb.mxu1 %v4270_v13  ;;  %v4698_v34 = vor.u32 %v6244_v28, %v4697_v27  ;;  %v4409_v35 = vld [vmem:[#allocation8 + $0x80] sm:$0xf] }
  0x62   :  { %2919 = vmatpush.bf16.msrb.mxu2 %v4474_v19  ;;  %v6172_v36 = vld [vmem:[#allocation8 + $0x9c] sm:$0xf0] }
  0x63   :  { %2933 = vmatpush.bf16.msrb.mxu3 %v4730_v22  ;;  %v4665_v40 = vld [vmem:[#allocation8 + $0x280] sm:$0xf]  ;;  %v4410_v45 = vor.u32 %v6172_v36, %v4409_v35 }
  0x64   :  { %570 = vmatpush.bf16.msrb.mxu0 %v4242_v20  ;;  %v6236_v41 = vld [vmem:[#allocation8 + $0x29c] sm:$0xf0] }
  0x65   :  { %584 = vmatpush.bf16.msrb.mxu1 %v4246_v25  ;;  %v6109_v47 = vld [vmem:[#allocation5 + $0x24] sm:$0xf0]  ;;  %v4666_v48 = vor.u32 %v6236_v41, %v4665_v40 }
  0x66   :  { %2920 = vmatpush.bf16.msrb.mxu2 %v4442_v31  ;;  %v4377_v49 = vld [vmem:[#allocation8 + $0x40] sm:$0xf]  ;;  %v4170_v61 = vor.u32 %v6109_v47, %v4169_v44 }
  0x67   :  { %2934 = vmatpush.bf16.msrb.mxu3 %v4698_v34  ;;  %v6164_v50 = vld [vmem:[#allocation8 + $0x5c] sm:$0xf0] }
  0x68   :  { %571 = vmatpush.bf16.msrb.mxu0 %v4218_v32  ;;  %v4633_v53 = vld [vmem:[#allocation8 + $0x240] sm:$0xf]  ;;  %v4378_v60 = vor.u32 %v6164_v50, %v4377_v49 }
  0x69   :  { %585 = vmatpush.bf16.msrb.mxu1 %v4222_v37  ;;  %v6228_v54 = vld [vmem:[#allocation8 + $0x25c] sm:$0xf0] }
  0x6a   :  { %v5081_v56 = vld [vmem:[#allocation8 + $0x5c0] sm:$0xf]  ;;  %2921 = vmatpush.bf16.msrb.mxu2 %v4410_v45  ;;  %v4634_v63 = vor.u32 %v6228_v54, %v4633_v53 }
  0x6b   :  { %v6340_v57 = vld [vmem:[#allocation8 + $0x5dc] sm:$0xf0]  ;;  %2935 = vmatpush.bf16.msrb.mxu3 %v4666_v48 }
  0x6c   :  { %v5337_v58 = vld [vmem:[#allocation8 + $0x7c0] sm:$0xf]  ;;  %572 = vmatpush.bf16.msrb.mxu0 %v4194_v46  ;;  %v5082_v3 = vor.u32 %v6340_v57, %v5081_v56 }
  0x6d   :  { %v6404_v59 = vld [vmem:[#allocation8 + $0x7dc] sm:$0xf0]  ;;  %586 = vmatpush.bf16.msrb.mxu1 %v4198_v51 }
  0x6e   :  { %v5049_v62 = vld [vmem:[#allocation8 + $0x580] sm:$0xf]  ;;  %v5338_v7 = vor.u32 %v6404_v59, %v5337_v58  ;;  %2922 = vmatpush.bf16.msrb.mxu2 %v4378_v60 }
  0x6f   :  { %v4345_v0 = vld [vmem:[#allocation8] sm:$0xf]  ;;  %2936 = vmatpush.bf16.msrb.mxu3 %v4634_v63 }
  0x70   :  { %v6156_v1 = vld [vmem:[#allocation8 + $0x1c] sm:$0xf0]  ;;  %573 = vmatpush.bf16.msrb.mxu0 %v4170_v61 }
  0x71   :  { %v6332_v4 = vld [vmem:[#allocation8 + $0x59c] sm:$0xf0]  ;;  %v4346_v12 = vor.u32 %v6156_v1, %v4345_v0  ;;  %587 = vmatpush.bf16.msrb.mxu1 %v4174_v2  ;;  %v6208_v2 = vld [vmem:[#allocation8 + $0x1c4] sm:$0xf] }
  0x72   :  { %v4601_v5 = vld [vmem:[#allocation8 + $0x200] sm:$0xf]  ;;  %v5050_v16 = vor.u32 %v6332_v4, %v5049_v62  ;;  %v6272_v4 = vld [vmem:[#allocation8 + $0x3c4] sm:$0xf] }
  0x73   :  { %v6220_v6 = vld [vmem:[#allocation8 + $0x21c] sm:$0xf0]  ;;  %574 = vmatmul.bf16.vlgmr.msrb.gmra.mxu0 %v7076_v38  ;;  %2923 = vmatpush.bf16.msrb.mxu2 %v4346_v12  ;;  %v6264_v12 = vld [vmem:[#allocation8 + $0x384] sm:$0xf] }
  0x74   :  { %v5305_v8 = vld [vmem:[#allocation8 + $0x780] sm:$0xf]  ;;  %v4602_v15 = vor.u32 %v6220_v6, %v4601_v5  ;;  %2944 = vmatpush.bf16.msra.mxu0 %v5082_v3  ;;  %588 = vmatmul.bf16.vlgmr.msrb.gmra.mxu1 %v7076_v38  ;;  %v4571_v3 = vld [vmem:[#allocation8 + $0x1e0] sm:$0xf0] }
  0x75   :  { %v5593_v9 = vld [vmem:[#allocation8 + $0x9c0] sm:$0xf]  ;;  %2958 = vmatpush.bf16.msra.mxu1 %v5338_v7  ;;  %v4827_v5 = vld [vmem:[#allocation8 + $0x3e0] sm:$0xf0] }
  0x76   :  { %v6468_v10 = vld [vmem:[#allocation8 + $0x9dc] sm:$0xf0]  ;;  %2937 = vmatpush.bf16.msrb.mxu3 %v4602_v15 }
  0x77   :  { %v6396_v11 = vld [vmem:[#allocation8 + $0x79c] sm:$0xf0]  ;;  %v5594_v19 = vor.u32 %v6468_v10, %v5593_v9  ;;  %v4830_v9 = vor.u32 %v6272_v4, %v4827_v5  ;;  %v6200_v10 = vld [vmem:[#allocation8 + $0x184] sm:$0xf] }
  0x78   :  { %v5849_v13 = vld [vmem:[#allocation8 + $0xbc0] sm:$0xf]  ;;  %v5306_v20 = vor.u32 %v6396_v11, %v5305_v8  ;;  %2945 = vmatpush.bf16.msra.mxu0 %v5050_v16  ;;  %v4574_v8 = vor.u32 %v6208_v2, %v4571_v3  ;;  %v4539_v11 = vld [vmem:[#allocation8 + $0x1a0] sm:$0xf0] }
  0x79   :  { %v6532_v14 = vld [vmem:[#allocation8 + $0xbdc] sm:$0xf0]  ;;  %2972 = vmatpush.bf16.msra.mxu2 %v5594_v19 }
  0x7a   :  { %v5017_v17 = vld [vmem:[#allocation8 + $0x540] sm:$0xf]  ;;  %v5850_v22 = vor.u32 %v6532_v14, %v5849_v13  ;;  %2959 = vmatpush.bf16.msra.mxu1 %v5306_v20  ;;  %v4542_v13 = vor.u32 %v6200_v10, %v4539_v11  ;;  %v4795_v14 = vld [vmem:[#allocation8 + $0x3a0] sm:$0xf0] }
  0x7b   :  { %v6324_v18 = vld [vmem:[#allocation8 + $0x55c] sm:$0xf0]  ;;  %v4798_v15 = vor.u32 %v6264_v12, %v4795_v14  ;;  %v4635_v10 = vld [vmem:[#allocation8 + $0x260] sm:$0xf0] }
  0x7c   :  { %v5273_v21 = vld [vmem:[#allocation8 + $0x740] sm:$0xf]  ;;  %v5018_v28 = vor.u32 %v6324_v18, %v5017_v17  ;;  %2986 = vmatpush.bf16.msra.mxu3 %v5850_v22  ;;  %v6192_v22 = vld [vmem:[#allocation8 + $0x144] sm:$0xf] }
  0x7d   :  { %v5561_v23 = vld [vmem:[#allocation8 + $0x980] sm:$0xf]  ;;  %v6152_v12 = vld [vmem:[#allocation8 + $0x4] sm:$0xf] }
  0x7e   :  { %v6460_v24 = vld [vmem:[#allocation8 + $0x99c] sm:$0xf0]  ;;  %2946 = vmatpush.bf16.msra.mxu0 %v5018_v28 }
  0x7f   :  { %v6388_v25 = vld [vmem:[#allocation8 + $0x75c] sm:$0xf0]  ;;  %v5562_v31 = vor.u32 %v6460_v24, %v5561_v23  ;;  %v4507_v23 = vld [vmem:[#allocation8 + $0x160] sm:$0xf0] }
  0x80   :  { %v5817_v26 = vld [vmem:[#allocation8 + $0xb80] sm:$0xf]  ;;  %v5274_v32 = vor.u32 %v6388_v25, %v5273_v21  ;;  %v6256_v24 = vld [vmem:[#allocation8 + $0x344] sm:$0xf]  ;;  %v4510_v25 = vor.u32 %v6192_v22, %v4507_v23 }
  0x81   :  { %v6524_v27 = vld [vmem:[#allocation8 + $0xb9c] sm:$0xf0]  ;;  %2973 = vmatpush.bf16.msra.mxu2 %v5562_v31 }
  0x82   :  { %v4985_v29 = vld [vmem:[#allocation8 + $0x500] sm:$0xf]  ;;  %v5818_v34 = vor.u32 %v6524_v27, %v5817_v26  ;;  %2960 = vmatpush.bf16.msra.mxu1 %v5274_v32  ;;  %v4763_v26 = vld [vmem:[#allocation8 + $0x360] sm:$0xf0] }
  0x83   :  { %v6316_v30 = vld [vmem:[#allocation8 + $0x51c] sm:$0xf0]  ;;  %v4766_v27 = vor.u32 %v6256_v24, %v4763_v26 }
  0x84   :  { %v5241_v33 = vld [vmem:[#allocation8 + $0x700] sm:$0xf]  ;;  %v4986_v41 = vor.u32 %v6316_v30, %v4985_v29  ;;  %2987 = vmatpush.bf16.msra.mxu3 %v5818_v34  ;;  %v6184_v34 = vld [vmem:[#allocation8 + $0x104] sm:$0xf] }
  0x85   :  { %v5529_v35 = vld [vmem:[#allocation8 + $0x940] sm:$0xf] }
  0x86   :  { %v6452_v36 = vld [vmem:[#allocation8 + $0x95c] sm:$0xf0]  ;;  %2947 = vmatpush.bf16.msra.mxu0 %v4986_v41 }
  0x87   :  { %v6380_v37 = vld [vmem:[#allocation8 + $0x71c] sm:$0xf0]  ;;  %v5530_v38 = vor.u32 %v6452_v36, %v5529_v35  ;;  %v4475_v35 = vld [vmem:[#allocation8 + $0x120] sm:$0xf0] }
  0x88   :  { %v5785_v39 = vld [vmem:[#allocation8 + $0xb40] sm:$0xf]  ;;  %v5242_v42 = vor.u32 %v6380_v37, %v5241_v33  ;;  %v6248_v36 = vld [vmem:[#allocation8 + $0x304] sm:$0xf]  ;;  %v4478_v37 = vor.u32 %v6184_v34, %v4475_v35 }
  0x89   :  { %v6516_v40 = vld [vmem:[#allocation8 + $0xb5c] sm:$0xf0]  ;;  %2974 = vmatpush.bf16.msra.mxu2 %v5530_v38 }
  0x8a   :  { %v4953_v43 = vld [vmem:[#allocation8 + $0x4c0] sm:$0xf]  ;;  %v5786_v45 = vor.u32 %v6516_v40, %v5785_v39  ;;  %2961 = vmatpush.bf16.msra.mxu1 %v5242_v42  ;;  %v4731_v39 = vld [vmem:[#allocation8 + $0x320] sm:$0xf0] }
  0x8b   :  { %v6308_v44 = vld [vmem:[#allocation8 + $0x4dc] sm:$0xf0]  ;;  %v4734_v40 = vor.u32 %v6248_v36, %v4731_v39  ;;  %v6336_v36 = vld [vmem:[#allocation8 + $0x5c4] sm:$0xf] }
  0x8c   :  { %v5209_v46 = vld [vmem:[#allocation8 + $0x6c0] sm:$0xf]  ;;  %v4954_v48 = vor.u32 %v6308_v44, %v4953_v43  ;;  %2988 = vmatpush.bf16.msra.mxu3 %v5786_v45 }
  0x8d   :  { %v6372_v47 = vld [vmem:[#allocation8 + $0x6dc] sm:$0xf0] }
  0x8e   :  { %v5210_v49 = vor.u32 %v6372_v47, %v5209_v46  ;;  %v4921_v50 = vld [vmem:[#allocation8 + $0x480] sm:$0xf]  ;;  %2948 = vmatpush.bf16.msra.mxu0 %v4954_v48  ;;  %v6176_v46 = vld [vmem:[#allocation8 + $0xc4] sm:$0xf] }
  0x8f   :  { %v6300_v51 = vld [vmem:[#allocation8 + $0x49c] sm:$0xf0]  ;;  %v4443_v47 = vld [vmem:[#allocation8 + $0xe0] sm:$0xf0] }
  0x90   :  { %v5177_v52 = vld [vmem:[#allocation8 + $0x680] sm:$0xf]  ;;  %v4922_v54 = vor.u32 %v6300_v51, %v4921_v50  ;;  %2962 = vmatpush.bf16.msra.mxu1 %v5210_v49  ;;  %v6240_v48 = vld [vmem:[#allocation8 + $0x2c4] sm:$0xf]  ;;  %v4446_v49 = vor.u32 %v6176_v46, %v4443_v47 }
  0x91   :  { %v6364_v53 = vld [vmem:[#allocation8 + $0x69c] sm:$0xf0]  ;;  %v4699_v50 = vld [vmem:[#allocation8 + $0x2e0] sm:$0xf0] }
  0x92   :  { %v5178_v55 = vor.u32 %v6364_v53, %v5177_v52  ;;  %v4889_v56 = vld [vmem:[#allocation8 + $0x440] sm:$0xf]  ;;  %2949 = vmatpush.bf16.msra.mxu0 %v4922_v54  ;;  %v4702_v51 = vor.u32 %v6240_v48, %v4699_v50  ;;  %v6328_v50 = vld [vmem:[#allocation8 + $0x584] sm:$0xf] }
  0x93   :  { %v6292_v57 = vld [vmem:[#allocation8 + $0x45c] sm:$0xf0] }
  0x94   :  { %v5145_v58 = vld [vmem:[#allocation8 + $0x640] sm:$0xf]  ;;  %v4890_v60 = vor.u32 %v6292_v57, %v4889_v56  ;;  %2963 = vmatpush.bf16.msra.mxu1 %v5178_v55 }
  0x95   :  { %v6356_v59 = vld [vmem:[#allocation8 + $0x65c] sm:$0xf0] }
  0x96   :  { %v5146_v61 = vor.u32 %v6356_v59, %v5145_v58  ;;  %v4857_v62 = vld [vmem:[#allocation8 + $0x400] sm:$0xf]  ;;  %2950 = vmatpush.bf16.msra.mxu0 %v4890_v60  ;;  %v6168_v58 = vld [vmem:[#allocation8 + $0x84] sm:$0xf] }
  0x97   :  { %v6284_v63 = vld [vmem:[#allocation8 + $0x41c] sm:$0xf0]  ;;  %v4411_v59 = vld [vmem:[#allocation8 + $0xa0] sm:$0xf0] }
  0x98   :  { %v5113_v0 = vld [vmem:[#allocation8 + $0x600] sm:$0xf]  ;;  %v4858_v6 = vor.u32 %v6284_v63, %v4857_v62  ;;  %2964 = vmatpush.bf16.msra.mxu1 %v5146_v61  ;;  %v6232_v60 = vld [vmem:[#allocation8 + $0x284] sm:$0xf]  ;;  %v4414_v61 = vor.u32 %v6168_v58, %v4411_v59 }
  0x99   :  { %v6348_v1 = vld [vmem:[#allocation8 + $0x61c] sm:$0xf0]  ;;  %v4667_v62 = vld [vmem:[#allocation8 + $0x2a0] sm:$0xf0] }
  0x9a   :  { %v5114_v7 = vor.u32 %v6348_v1, %v5113_v0  ;;  %2951 = vmatpush.bf16.msra.mxu0 %v4858_v6  ;;  %v5497_v16 = vld [vmem:[#allocation8 + $0x900] sm:$0xf]  ;;  %v4670_v63 = vor.u32 %v6232_v60, %v4667_v62  ;;  %v6160_v6 = vld [vmem:[#allocation8 + $0x44] sm:$0xf] }
  0x9b   :  { %v6444_v17 = vld [vmem:[#allocation8 + $0x91c] sm:$0xf0]  ;;  %v6528_v59 = vld [vmem:[#allocation8 + $0xbc4] sm:$0xf] }
  0x9c   :  { %2965 = vmatpush.bf16.msra.mxu1 %v5114_v7  ;;  %v5753_v18 = vld [vmem:[#allocation8 + $0xb00] sm:$0xf]  ;;  %v5498_v19 = vor.u32 %v6444_v17, %v5497_v16  ;;  %v4379_v7 = vld [vmem:[#allocation8 + $0x60] sm:$0xf0] }
  0x9d   :  { %v6508_v20 = vld [vmem:[#allocation8 + $0xb1c] sm:$0xf0]  ;;  %v4603_v16 = vld [vmem:[#allocation8 + $0x220] sm:$0xf0] }
  0x9e   :  { %3000 = vmatpush.bf16.msrb.mxu0 %v4574_v8  ;;  %v5754_v21 = vor.u32 %v6508_v20, %v5753_v18  ;;  %2975 = vmatpush.bf16.msra.mxu2 %v5498_v19  ;;  %v5465_v28 = vld [vmem:[#allocation8 + $0x8c0] sm:$0xf]  ;;  %v6224_v8 = vld [vmem:[#allocation8 + $0x244] sm:$0xf]  ;;  %v7084_v18 = vld [vmem:[#allocation7] sm:$0x3f] }
  0x9f   :  { %v6436_v29 = vld [vmem:[#allocation8 + $0x8dc] sm:$0xf0]  ;;  %v4638_v11 = vor.u32 %v6224_v8, %v4635_v10  ;;  %v253_v22 = vperm.slane %v7084_v18, 1  ;;  %v254_v26 = vperm.slane %v7084_v18, 2  ;;  %v5851_v60 = vld [vmem:[#allocation8 + $0xbe0] sm:$0xf0] }
  0xa0   :  { %3014 = vmatpush.bf16.msrb.mxu1 %v4830_v9  ;;  %2989 = vmatpush.bf16.msra.mxu3 %v5754_v21  ;;  %v5721_v30 = vld [vmem:[#allocation8 + $0xac0] sm:$0xf]  ;;  %v5466_v31 = vor.u32 %v6436_v29, %v5465_v28  ;;  %v4382_v9 = vor.u32 %v6160_v6, %v4379_v7  ;;  %v252_v21 = vperm.slane %v7084_v18, 0  ;;  %v255_v29 = vperm.slane %v7084_v18, 3  ;;  %v6456_v8 = vld [vmem:[#allocation8 + $0x984] sm:$0xf] }
  0xa1   :  { %v6500_v32 = vld [vmem:[#allocation8 + $0xadc] sm:$0xf0]  ;;  %v5854_v7 = vor.u32 %v6528_v59, %v5851_v60 }
  0xa2   :  { %3001 = vmatpush.bf16.msrb.mxu0 %v4542_v13  ;;  %v5722_v33 = vor.u32 %v6500_v32, %v5721_v30  ;;  %2976 = vmatpush.bf16.msra.mxu2 %v5466_v31  ;;  %v5433_v41 = vld [vmem:[#allocation8 + $0x880] sm:$0xf]  ;;  %v4347_v13 = vld [vmem:[#allocation8 + $0x20] sm:$0xf0] }
  0xa3   :  { %v6428_v38 = vld [vmem:[#allocation8 + $0x89c] sm:$0xf0]  ;;  %v4350_v14 = vor.u32 %v6152_v12, %v4347_v13  ;;  %v6520_v12 = vld [vmem:[#allocation8 + $0xb84] sm:$0xf] }
  0xa4   :  { %3015 = vmatpush.bf16.msrb.mxu1 %v4798_v15  ;;  %2990 = vmatpush.bf16.msra.mxu3 %v5722_v33  ;;  %v5434_v42 = vor.u32 %v6428_v38, %v5433_v41  ;;  %v5689_v43 = vld [vmem:[#allocation8 + $0xa80] sm:$0xf]  ;;  %v6216_v15 = vld [vmem:[#allocation8 + $0x204] sm:$0xf] }
  0xa5   :  { %v6492_v44 = vld [vmem:[#allocation8 + $0xa9c] sm:$0xf0]  ;;  %v4606_v17 = vor.u32 %v6216_v15, %v4603_v16  ;;  %v6400_v38 = vld [vmem:[#allocation8 + $0x7c4] sm:$0xf] }
  0xa6   :  { %3002 = vmatpush.bf16.msrb.mxu0 %v4510_v25  ;;  %v5690_v45 = vor.u32 %v6492_v44, %v5689_v43  ;;  %2977 = vmatpush.bf16.msra.mxu2 %v5434_v42  ;;  %v5401_v52 = vld [vmem:[#allocation8 + $0x840] sm:$0xf]  ;;  %v5339_v42 = vld [vmem:[#allocation8 + $0x7e0] sm:$0xf0] }
  0xa7   :  { %v6420_v53 = vld [vmem:[#allocation8 + $0x85c] sm:$0xf0]  ;;  %v5819_v13 = vld [vmem:[#allocation8 + $0xba0] sm:$0xf0] }
  0xa8   :  { %3016 = vmatpush.bf16.msrb.mxu1 %v4766_v27  ;;  %2991 = vmatpush.bf16.msra.mxu3 %v5690_v45  ;;  %v5657_v54 = vld [vmem:[#allocation8 + $0xa40] sm:$0xf]  ;;  %v5402_v55 = vor.u32 %v6420_v53, %v5401_v52  ;;  %v6392_v53 = vld [vmem:[#allocation8 + $0x784] sm:$0xf] }
  0xa9   :  { %v6484_v56 = vld [vmem:[#allocation8 + $0xa5c] sm:$0xf0]  ;;  %v6312_v15 = vld [vmem:[#allocation8 + $0x504] sm:$0xf] }
  0xaa   :  { %3003 = vmatpush.bf16.msrb.mxu0 %v4478_v37  ;;  %v5658_v57 = vor.u32 %v6484_v56, %v5657_v54  ;;  %2978 = vmatpush.bf16.msra.mxu2 %v5402_v55  ;;  %v5369_v0 = vld [vmem:[#allocation8 + $0x800] sm:$0xf]  ;;  %v5083_v37 = vld [vmem:[#allocation8 + $0x5e0] sm:$0xf0] }
  0xab   :  { %v6412_v1 = vld [vmem:[#allocation8 + $0x81c] sm:$0xf0]  ;;  %v5086_v46 = vor.u32 %v6336_v36, %v5083_v37  ;;  %v5307_v54 = vld [vmem:[#allocation8 + $0x7a0] sm:$0xf0] }
  0xac   :  { %3017 = vmatpush.bf16.msrb.mxu1 %v4734_v40  ;;  %2992 = vmatpush.bf16.msra.mxu3 %v5658_v57  ;;  %v5625_v2 = vld [vmem:[#allocation8 + $0xa00] sm:$0xf]  ;;  %v5370_v3 = vor.u32 %v6412_v1, %v5369_v0  ;;  %v6464_v55 = vld [vmem:[#allocation8 + $0x9c4] sm:$0xf]  ;;  %v5310_v62 = vor.u32 %v6392_v53, %v5307_v54 }
  0xad   :  { %v6476_v4 = vld [vmem:[#allocation8 + $0xa1c] sm:$0xf0]  ;;  %v5595_v56 = vld [vmem:[#allocation8 + $0x9e0] sm:$0xf0] }
  0xae   :  { %3004 = vmatpush.bf16.msrb.mxu0 %v4446_v49  ;;  %v5626_v5 = vor.u32 %v6476_v4, %v5625_v2  ;;  %2979 = vmatpush.bf16.msra.mxu2 %v5370_v3  ;;  %v5342_v49 = vor.u32 %v6400_v38, %v5339_v42  ;;  %v5019_v0 = vld [vmem:[#allocation8 + $0x560] sm:$0xf0]  ;;  %v5598_v2 = vor.u32 %v6464_v55, %v5595_v56 }
  0xaf   :  { %v6384_v3 = vld [vmem:[#allocation8 + $0x744] sm:$0xf] }
  0xb0   :  { %3018 = vmatpush.bf16.msrb.mxu1 %v4702_v51  ;;  %2993 = vmatpush.bf16.msra.mxu3 %v5626_v5  ;;  %v5051_v51 = vld [vmem:[#allocation8 + $0x5a0] sm:$0xf0] }
  0xb1   :  { %v5054_v58 = vor.u32 %v6328_v50, %v5051_v51  ;;  %v5275_v4 = vld [vmem:[#allocation8 + $0x760] sm:$0xf0] }
  0xb2   :  { %3005 = vmatpush.bf16.msrb.mxu0 %v4414_v61  ;;  %v4987_v16 = vld [vmem:[#allocation8 + $0x520] sm:$0xf0] }
  0xb3   :  { %v5211_v36 = vld [vmem:[#allocation8 + $0x6e0] sm:$0xf0] }
  0xb4   :  { %3019 = vmatpush.bf16.msrb.mxu1 %v4670_v63  ;;  %v6320_v63 = vld [vmem:[#allocation8 + $0x544] sm:$0xf] }
  0xb5   :  { %v6504_v38 = vld [vmem:[#allocation8 + $0xb04] sm:$0xf] }
  0xb6   :  { %3006 = vmatpush.bf16.msrb.mxu0 %v4382_v9  ;;  %v5563_v9 = vld [vmem:[#allocation8 + $0x9a0] sm:$0xf0] }
  0xb7   :  { %v5755_v42 = vld [vmem:[#allocation8 + $0xb20] sm:$0xf0] }
  0xb8   :  { %3020 = vmatpush.bf16.msrb.mxu1 %v4638_v11  ;;  %v5022_v11 = vor.u32 %v6320_v63, %v5019_v0  ;;  %v5179_v50 = vld [vmem:[#allocation8 + $0x6a0] sm:$0xf0]  ;;  %v5758_v51 = vor.u32 %v6504_v38, %v5755_v42  ;;  %v4801_v38 = vld [vmem:[#allocation8 + $0x388] sm:$0xf] }
  0xb9   :  { %v6432_v53 = vld [vmem:[#allocation8 + $0x8c4] sm:$0xf]  ;;  %v6269_v42 = vld [vmem:[#allocation8 + $0x3a4] sm:$0xf0] }
  0xba   :  { %3007 = vmatpush.bf16.msrb.mxu0 %v4350_v14  ;;  %v5278_v14 = vor.u32 %v6384_v3, %v5275_v4  ;;  %v5467_v54 = vld [vmem:[#allocation8 + $0x8e0] sm:$0xf0] }
  0xbb   :  { %v4891_v63 = vld [vmem:[#allocation8 + $0x460] sm:$0xf0] }
  0xbc   :  { %3021 = vmatpush.bf16.msrb.mxu1 %v4606_v17  ;;  %v5566_v17 = vor.u32 %v6456_v8, %v5563_v9  ;;  %v5147_v3 = vld [vmem:[#allocation8 + $0x660] sm:$0xf0] }
  0xbd   :  { %v6488_v9 = vld [vmem:[#allocation8 + $0xa84] sm:$0xf] }
  0xd0   :  { %v519_v19 = vpop.f32.mrf.mxu0 }
  0xd1   :  { %v533_v20 = vpop.f32.mrf.mxu1  ;;  %v520_v23 = vadd.f32 %v519_v19, %v252_v21  ;;  %v6376_v19 = vld [vmem:[#allocation8 + $0x704] sm:$0xf] }
  0xd2   :  { %v534_v24 = vadd.f32 %v533_v20, %v253_v22  ;;  %v5243_v20 = vld [vmem:[#allocation8 + $0x720] sm:$0xf0] }
  0xd3   :  { %6614 = vtanh.f32 %v520_v23  ;;  %v5531_v23 = vld [vmem:[#allocation8 + $0x960] sm:$0xf0] }
  0xd4   :  { %6616 = vtanh.f32 %v534_v24 }
  0xd8   :  { %v547_v25 = vpop.f32.mrf.mxu2  ;;  %v521_v28 = vpop.f32.mrf.mxu0 }
  0xd9   :  { %v561_v27 = vpop.f32.mrf.mxu3  ;;  %v522_v30 = vadd.f32 %v521_v28, %v252_v21  ;;  %v535_v31 = vpop.f32.mrf.mxu1  ;;  %v548_v33 = vadd.f32 %v547_v25, %v254_v26  ;;  %v5822_v21 = vor.u32 %v6520_v12, %v5819_v13  ;;  %v4990_v25 = vor.u32 %v6312_v15, %v4987_v16  ;;  %v6280_v13 = vld [vmem:[#allocation8 + $0x404] sm:$0xf] }
  0xda   :  { %v536_v32 = vadd.f32 %v535_v31, %v253_v22  ;;  %v562_v34 = vadd.f32 %v561_v27, %v255_v29  ;;  %v6615_v39 = vpop.eup %6614  ;;  %v6448_v22 = vld [vmem:[#allocation8 + $0x944] sm:$0xf]  ;;  %v256_v28 = vperm.slane %v7084_v18, 4 }
  0xdb   :  { %6618 = vtanh.f32 %v522_v30  ;;  %v6617_v43 = vpop.eup %6616  ;;  %v5787_v27 = vld [vmem:[#allocation8 + $0xb60] sm:$0xf0]  ;;  %v5246_v30 = vor.u32 %v6376_v19, %v5243_v20 }
  0xdc   :  { %6620 = vtanh.f32 %v536_v32  ;;  %v6304_v31 = vld [vmem:[#allocation8 + $0x4c4] sm:$0xf] }
  0xdd   :  { %6622 = vtanh.f32 %v548_v33  ;;  %v4955_v32 = vld [vmem:[#allocation8 + $0x4e0] sm:$0xf0]  ;;  %v257_v33 = vperm.slane %v7084_v18, 5 }
  0xde   :  { %6624 = vtanh.f32 %v562_v34  ;;  %v5534_v34 = vor.u32 %v6448_v22, %v5531_v23  ;;  %v6344_v16 = vld [vmem:[#allocation8 + $0x604] sm:$0xf]  ;;  %v6213_v22 = vld [vmem:[#allocation8 + $0x1e4] sm:$0xf0] }
  0xdf   :  { %v4833_v23 = vld [vmem:[#allocation8 + $0x3c8] sm:$0xf] }
  0xe0   :  { %v549_v35 = vpop.f32.mrf.mxu2 }
  0xe1   :  { %v550_v40 = vadd.f32 %v549_v35, %v254_v26  ;;  %v563_v41 = vpop.f32.mrf.mxu3  ;;  %v6619_v45 = vpop.eup %6618  ;;  %v6512_v26 = vld [vmem:[#allocation8 + $0xb44] sm:$0xf] }
  0xe2   :  { %v564_v44 = vadd.f32 %v563_v41, %v255_v29  ;;  %v6621_v47 = vpop.eup %6620  ;;  %v7090_v48 = vpack.c.bf16 %v6619_v45, %v6615_v39  ;;  %v6368_v35 = vld [vmem:[#allocation8 + $0x6c4] sm:$0xf]  ;;  %v5790_v37 = vor.u32 %v6512_v26, %v5787_v27  ;;  %v4958_v41 = vor.u32 %v6304_v31, %v4955_v32  ;;  %v6277_v26 = vld [vmem:[#allocation8 + $0x3e4] sm:$0xf0] }
  0xe3   :  { %6626 = vtanh.f32 %v550_v40  ;;  %v7092_v52 = vpack.c.bf16 %v6621_v47, %v6617_v43  ;;  %v6623_v57 = vpop.eup %6622  ;;  %v6440_v39 = vld [vmem:[#allocation8 + $0x904] sm:$0xf] }
  0xe4   :  { %6628 = vtanh.f32 %v564_v44  ;;  %2924 = vmatmul.bf16.vlgmr.msrb.gmra.mxu2 %v7090_v48  ;;  %v6625_v61 = vpop.eup %6624  ;;  %v5499_v40 = vld [vmem:[#allocation8 + $0x920] sm:$0xf0]  ;;  %v5214_v44 = vor.u32 %v6368_v35, %v5211_v36  ;;  %v4545_v36 = vld [vmem:[#allocation8 + $0x188] sm:$0xf] }
  0xe5   :  { %2938 = vmatmul.bf16.vlgmr.msrb.gmra.mxu3 %v7092_v52  ;;  %3028 = vmatpush.bf16.msrb.mxu2 %v5086_v46  ;;  %v6296_v45 = vld [vmem:[#allocation8 + $0x484] sm:$0xf]  ;;  %v5502_v18 = vor.u32 %v6440_v39, %v5499_v40  ;;  %v4834_v39 = vor.u32 %v6277_v26, %v4833_v23  ;;  %v4705_v23 = vld [vmem:[#allocation8 + $0x2c8] sm:$0xf] }
  0xe6   :  { %3042 = vmatpush.bf16.msrb.mxu3 %v5342_v49  ;;  %v4923_v46 = vld [vmem:[#allocation8 + $0x4a0] sm:$0xf0]  ;;  %v4993_v26 = vld [vmem:[#allocation8 + $0x508] sm:$0xf] }
  0xe7   :  { %v6360_v49 = vld [vmem:[#allocation8 + $0x684] sm:$0xf]  ;;  %v4926_v56 = vor.u32 %v6296_v45, %v4923_v46 }
  0xe8   :  { %v6416_v27 = vld [vmem:[#allocation8 + $0x844] sm:$0xf] }
  0xe9   :  { %v6627_v1 = vpop.eup %6626  ;;  %3029 = vmatpush.bf16.msrb.mxu2 %v5054_v58  ;;  %v5723_v58 = vld [vmem:[#allocation8 + $0xae0] sm:$0xf0] }
  0xea   :  { %v6629_v5 = vpop.eup %6628  ;;  %v7096_v6 = vpack.c.bf16 %v6627_v1, %v6623_v57  ;;  %3043 = vmatpush.bf16.msrb.mxu3 %v5310_v62  ;;  %v6496_v57 = vld [vmem:[#allocation8 + $0xac4] sm:$0xf]  ;;  %v5470_v1 = vor.u32 %v6432_v53, %v5467_v54  ;;  %v6405_v53 = vld [vmem:[#allocation8 + $0x7e4] sm:$0xf0]  ;;  %v4802_v54 = vor.u32 %v6269_v42, %v4801_v38 }
  0xeb   :  { %v7098_v10 = vpack.c.bf16 %v6629_v5, %v6625_v61  ;;  %v5182_v61 = vor.u32 %v6360_v49, %v5179_v50  ;;  %v6288_v62 = vld [vmem:[#allocation8 + $0x444] sm:$0xf]  ;;  %v5726_v4 = vor.u32 %v6496_v57, %v5723_v58  ;;  %v6341_v49 = vld [vmem:[#allocation8 + $0x5e4] sm:$0xf0] }
  0xec   :  { %2952 = vmatmul.bf16.vlgmr.msra.gmra.mxu0 %v7096_v6  ;;  %v6424_v5 = vld [vmem:[#allocation8 + $0x884] sm:$0xf]  ;;  %v4894_v8 = vor.u32 %v6288_v62, %v4891_v63  ;;  %v6197_v57 = vld [vmem:[#allocation8 + $0x164] sm:$0xf0] }
  0xed   :  { %2966 = vmatmul.bf16.vlgmr.msra.gmra.mxu1 %v7098_v10  ;;  %3056 = vmatpush.bf16.msra.mxu0 %v5598_v2  ;;  %v6352_v2 = vld [vmem:[#allocation8 + $0x644] sm:$0xf]  ;;  %v5057_v63 = vld [vmem:[#allocation8 + $0x588] sm:$0xf] }
  0xee   :  { %3070 = vmatpush.bf16.msra.mxu1 %v5854_v7  ;;  %3030 = vmatpush.bf16.msrb.mxu2 %v5022_v11  ;;  %v5435_v7 = vld [vmem:[#allocation8 + $0x8a0] sm:$0xf0]  ;;  %v5150_v12 = vor.u32 %v6352_v2, %v5147_v3  ;;  %v5313_v2 = vld [vmem:[#allocation8 + $0x788] sm:$0xf] }
  0xef   :  { %3044 = vmatpush.bf16.msrb.mxu3 %v5278_v14  ;;  %v5691_v11 = vld [vmem:[#allocation8 + $0xaa0] sm:$0xf0]  ;;  %v5438_v15 = vor.u32 %v6424_v5, %v5435_v7  ;;  %v6397_v3 = vld [vmem:[#allocation8 + $0x7a4] sm:$0xf0] }
  0xf0   :  { %v575_v24 = vpop.f32.mrf.mxu0  ;;  %v4859_v14 = vld [vmem:[#allocation8 + $0x420] sm:$0xf0]  ;;  %v5694_v20 = vor.u32 %v6488_v9, %v5691_v11  ;;  %v4481_v5 = vld [vmem:[#allocation8 + $0x108] sm:$0xf] }
  0xf1   :  { %v589_v29 = vpop.f32.mrf.mxu1  ;;  %3057 = vmatpush.bf16.msra.mxu0 %v5566_v17  ;;  %v576_v43 = vadd.f32 %v575_v24, %v256_v28  ;;  %v5115_v17 = vld [vmem:[#allocation8 + $0x620] sm:$0xf0]  ;;  %v6189_v7 = vld [vmem:[#allocation8 + $0x124] sm:$0xf0] }
  0xf2   :  { %3071 = vmatpush.bf16.msra.mxu1 %v5822_v21  ;;  %3031 = vmatpush.bf16.msrb.mxu2 %v4990_v25  ;;  %v590_v47 = vadd.f32 %v589_v29, %v257_v33  ;;  %v4577_v21 = vld [vmem:[#allocation8 + $0x1c8] sm:$0xf]  ;;  %v4862_v25 = vor.u32 %v6280_v13, %v4859_v14  ;;  %v6480_v31 = vld [vmem:[#allocation8 + $0xa44] sm:$0xf] }
  0xf3   :  { %3045 = vmatpush.bf16.msrb.mxu3 %v5246_v30  ;;  %6630 = vtanh.f32 %v576_v43  ;;  %v5118_v30 = vor.u32 %v6344_v16, %v5115_v17  ;;  %v5659_v32 = vld [vmem:[#allocation8 + $0xa60] sm:$0xf0]  ;;  %v4578_v35 = vor.u32 %v6213_v22, %v4577_v21  ;;  %v4737_v9 = vld [vmem:[#allocation8 + $0x308] sm:$0xf] }
  0xf4   :  { %6632 = vtanh.f32 %v590_v47  ;;  %v5662_v43 = vor.u32 %v6480_v31, %v5659_v32  ;;  %v5371_v45 = vld [vmem:[#allocation8 + $0x820] sm:$0xf0]  ;;  %v6253_v11 = vld [vmem:[#allocation8 + $0x324] sm:$0xf0] }
  0xf5   :  { %3058 = vmatpush.bf16.msra.mxu0 %v5534_v34  ;;  %v6472_v46 = vld [vmem:[#allocation8 + $0xa04] sm:$0xf]  ;;  %v5025_v13 = vld [vmem:[#allocation8 + $0x548] sm:$0xf] }
  0xf6   :  { %3072 = vmatpush.bf16.msra.mxu1 %v5790_v37  ;;  %3032 = vmatpush.bf16.msrb.mxu2 %v4958_v41  ;;  %v6205_v41 = vld [vmem:[#allocation8 + $0x1a4] sm:$0xf0]  ;;  %v5627_v47 = vld [vmem:[#allocation8 + $0xa20] sm:$0xf0] }
  0xf7   :  { %3046 = vmatpush.bf16.msrb.mxu3 %v5214_v44  ;;  %v6408_v44 = vld [vmem:[#allocation8 + $0x804] sm:$0xf]  ;;  %v4546_v50 = vor.u32 %v6205_v41, %v4545_v36  ;;  %v5630_v58 = vor.u32 %v6472_v46, %v5627_v47  ;;  %v6325_v14 = vld [vmem:[#allocation8 + $0x564] sm:$0xf0] }
  0xf8   :  { %v577_v55 = vpop.f32.mrf.mxu0  ;;  %v5281_v16 = vld [vmem:[#allocation8 + $0x748] sm:$0xf]  ;;  %v5026_v22 = vor.u32 %v6325_v14, %v5025_v13 }
  0xf9   :  { %v578_v59 = vadd.f32 %v577_v55, %v256_v28  ;;  %v591_v60 = vpop.f32.mrf.mxu1  ;;  %3059 = vmatpush.bf16.msra.mxu0 %v5502_v18  ;;  %v6631_v19 = vpop.eup %6630  ;;  %v5403_v28 = vld [vmem:[#allocation8 + $0x860] sm:$0xf0]  ;;  %v5089_v18 = vld [vmem:[#allocation8 + $0x5c8] sm:$0xf]  ;;  %v5374_v55 = vor.u32 %v6408_v44, %v5371_v45 }
  0xfa   :  { %v592_v0 = vadd.f32 %v591_v60, %v257_v33  ;;  %3073 = vmatpush.bf16.msra.mxu1 %v5758_v51  ;;  %3033 = vmatpush.bf16.msrb.mxu2 %v4926_v56  ;;  %v6633_v24 = vpop.eup %6632  ;;  %v5406_v40 = vor.u32 %v6416_v27, %v5403_v28  ;;  %v5345_v51 = vld [vmem:[#allocation8 + $0x7c8] sm:$0xf] }
  0xfb   :  { %6634 = vtanh.f32 %v578_v59  ;;  %3047 = vmatpush.bf16.msrb.mxu3 %v5182_v61  ;;  %v4513_v56 = vld [vmem:[#allocation8 + $0x148] sm:$0xf]  ;;  %v5090_v59 = vor.u32 %v6341_v49, %v5089_v18  ;;  %v5346_v62 = vor.u32 %v6405_v53, %v5345_v51 }
  0xfc   :  { %6636 = vtanh.f32 %v592_v0  ;;  %3008 = vmatmul.bf16.vlgmr.msrb.gmra.mxu0 %v7090_v48  ;;  %v4769_v60 = vld [vmem:[#allocation8 + $0x348] sm:$0xf] }
  0xfd   :  { %3022 = vmatmul.bf16.vlgmr.msrb.gmra.mxu1 %v7092_v52  ;;  %3060 = vmatpush.bf16.msra.mxu0 %v5470_v1  ;;  %v6261_v61 = vld [vmem:[#allocation8 + $0x364] sm:$0xf0]  ;;  %v4514_v1 = vor.u32 %v6197_v57, %v4513_v56 }
  0xfe   :  { %3074 = vmatpush.bf16.msra.mxu1 %v5726_v4  ;;  %3034 = vmatpush.bf16.msrb.mxu2 %v4894_v8  ;;  %v6333_v0 = vld [vmem:[#allocation8 + $0x5a4] sm:$0xf0]  ;;  %v4770_v4 = vor.u32 %v6261_v61, %v4769_v60 }
  0xff   :  { %3048 = vmatpush.bf16.msrb.mxu3 %v5150_v12  ;;  %v5058_v8 = vor.u32 %v6333_v0, %v5057_v63  ;;  %v5314_v12 = vor.u32 %v6397_v3, %v5313_v2  ;;  %v6389_v17 = vld [vmem:[#allocation8 + $0x764] sm:$0xf0] }
 0x100   :  { %v6181_v21 = vld [vmem:[#allocation8 + $0xe4] sm:$0xf0] }
 0x101   :  { %v6635_v29 = vpop.eup %6634  ;;  %3061 = vmatpush.bf16.msra.mxu0 %v5438_v15  ;;  %v4482_v15 = vor.u32 %v6189_v7, %v4481_v5  ;;  %v6317_v27 = vld [vmem:[#allocation8 + $0x524] sm:$0xf0] }
 0x102   :  { %v6637_v33 = vpop.eup %6636  ;;  %v7106_v34 = vpack.c.bf16 %v6635_v29, %v6631_v19  ;;  %3075 = vmatpush.bf16.msra.mxu1 %v5694_v20  ;;  %3035 = vmatpush.bf16.msrb.mxu2 %v4862_v25  ;;  %v4738_v19 = vor.u32 %v6253_v11, %v4737_v9  ;;  %v4449_v20 = vld [vmem:[#allocation8 + $0xc8] sm:$0xf]  ;;  %v5282_v25 = vor.u32 %v6389_v17, %v5281_v16 }
 0x103   :  { %v7108_v37 = vpack.c.bf16 %v6637_v33, %v6633_v24  ;;  %3049 = vmatpush.bf16.msrb.mxu3 %v5118_v30  ;;  %v6245_v24 = vld [vmem:[#allocation8 + $0x2e4] sm:$0xf0]  ;;  %v4450_v28 = vor.u32 %v6181_v21, %v4449_v20 }
 0x104   :  { %2980 = vmatmul.bf16.vlgmr.msra.gmra.mxu2 %v7106_v34  ;;  %v5249_v29 = vld [vmem:[#allocation8 + $0x708] sm:$0xf]  ;;  %v4706_v31 = vor.u32 %v6245_v24, %v4705_v23 }
 0x105   :  { %2994 = vmatmul.bf16.vlgmr.msra.gmra.mxu3 %v7108_v37  ;;  %3062 = vmatpush.bf16.msra.mxu0 %v5406_v40  ;;  %v6381_v30 = vld [vmem:[#allocation8 + $0x724] sm:$0xf0] }
 0x106   :  { %3084 = vmatpush.bf16.msra.mxu2 %v4578_v35  ;;  %3076 = vmatpush.bf16.msra.mxu1 %v5662_v43  ;;  %v4417_v32 = vld [vmem:[#allocation8 + $0x88] sm:$0xf]  ;;  %v4994_v35 = vor.u32 %v6317_v27, %v4993_v26  ;;  %v5250_v40 = vor.u32 %v6381_v30, %v5249_v29  ;;  %v6209_v26 = vld [vmem:[#allocation8 + $0x1cc] sm:$0xf] }
 0x107   :  { %3098 = vmatpush.bf16.msra.mxu3 %v4834_v39  ;;  %v6173_v33 = vld [vmem:[#allocation8 + $0xa4] sm:$0xf0]  ;;  %v4579_v27 = vld [vmem:[#allocation8 + $0x1e8] sm:$0xf0] }
 0x108   :  { %v4673_v36 = vld [vmem:[#allocation8 + $0x288] sm:$0xf]  ;;  %v4418_v42 = vor.u32 %v6173_v33, %v4417_v32  ;;  %v6273_v29 = vld [vmem:[#allocation8 + $0x3cc] sm:$0xf] }
 0x109   :  { %3063 = vmatpush.bf16.msra.mxu0 %v5374_v55  ;;  %v6237_v39 = vld [vmem:[#allocation8 + $0x2a4] sm:$0xf0]  ;;  %v4835_v30 = vld [vmem:[#allocation8 + $0x3e8] sm:$0xf0] }
 0x10a   :  { %3085 = vmatpush.bf16.msra.mxu2 %v4546_v50  ;;  %3077 = vmatpush.bf16.msra.mxu1 %v5630_v58  ;;  %v4961_v41 = vld [vmem:[#allocation8 + $0x4c8] sm:$0xf]  ;;  %v4674_v45 = vor.u32 %v6237_v39, %v4673_v36  ;;  %v4582_v39 = vor.u32 %v6209_v26, %v4579_v27 }
 0x10b   :  { %3099 = vmatpush.bf16.msra.mxu3 %v4802_v54  ;;  %v6309_v38 = vld [vmem:[#allocation8 + $0x4e4] sm:$0xf0] }
 0x10c   :  { %3064 = vmatmul.bf16.vlgmr.msra.gmra.mxu0 %v7106_v34  ;;  %v5217_v43 = vld [vmem:[#allocation8 + $0x6c8] sm:$0xf]  ;;  %v4962_v18 = vor.u32 %v6309_v38, %v4961_v41  ;;  %v4838_v38 = vor.u32 %v6273_v29, %v4835_v30  ;;  %v6169_v30 = vld [vmem:[#allocation8 + $0x8c] sm:$0xf] }
 0x10d   :  { %3112 = vmatpush.bf16.msrb.mxu0 %v5090_v59  ;;  %3078 = vmatmul.bf16.vlgmr.msra.gmra.mxu1 %v7108_v37  ;;  %v6373_v44 = vld [vmem:[#allocation8 + $0x6e4] sm:$0xf0] }
 0x10e   :  { %3126 = vmatpush.bf16.msrb.mxu1 %v5346_v62  ;;  %3086 = vmatpush.bf16.msra.mxu2 %v4514_v1  ;;  %v4385_v46 = vld [vmem:[#allocation8 + $0x48] sm:$0xf]  ;;  %v5218_v51 = vor.u32 %v6373_v44, %v5217_v43  ;;  %v4547_v43 = vld [vmem:[#allocation8 + $0x1a8] sm:$0xf0] }
 0x10f   :  { %3100 = vmatpush.bf16.msra.mxu3 %v4770_v4  ;;  %v6165_v47 = vld [vmem:[#allocation8 + $0x64] sm:$0xf0] }
 0x110   :  { %v4641_v49 = vld [vmem:[#allocation8 + $0x248] sm:$0xf]  ;;  %v4386_v55 = vor.u32 %v6165_v47, %v4385_v46  ;;  %v4803_v46 = vld [vmem:[#allocation8 + $0x3a8] sm:$0xf0] }
 0x111   :  { %3113 = vmatpush.bf16.msrb.mxu0 %v5058_v8  ;;  %v6229_v50 = vld [vmem:[#allocation8 + $0x264] sm:$0xf0] }
 0x112   :  { %3127 = vmatpush.bf16.msrb.mxu1 %v5314_v12  ;;  %3087 = vmatpush.bf16.msra.mxu2 %v4482_v15  ;;  %v4929_v53 = vld [vmem:[#allocation8 + $0x488] sm:$0xf]  ;;  %v4642_v59 = vor.u32 %v6229_v50, %v4641_v49 }
 0x113   :  { %3101 = vmatpush.bf16.msra.mxu3 %v4738_v19  ;;  %v6301_v54 = vld [vmem:[#allocation8 + $0x4a4] sm:$0xf0] }
 0x114   :  { %3036 = vmatmul.bf16.vlgmr.msrb.gmra.mxu2 %v7096_v6  ;;  %v5185_v56 = vld [vmem:[#allocation8 + $0x688] sm:$0xf]  ;;  %v4930_v63 = vor.u32 %v6301_v54, %v4929_v53 }
 0x115   :  { %3114 = vmatpush.bf16.msrb.mxu0 %v5026_v22  ;;  %3050 = vmatmul.bf16.vlgmr.msrb.gmra.mxu3 %v7098_v10  ;;  %v6365_v57 = vld [vmem:[#allocation8 + $0x6a4] sm:$0xf0] }
 0x116   :  { %3128 = vmatpush.bf16.msrb.mxu1 %v5282_v25  ;;  %3088 = vmatpush.bf16.msra.mxu2 %v4450_v28  ;;  %v4353_v58 = vld [vmem:[#allocation8 + $0x8] sm:$0xf]  ;;  %v5186_v3 = vor.u32 %v6365_v57, %v5185_v56  ;;  %v4515_v56 = vld [vmem:[#allocation8 + $0x168] sm:$0xf0] }
 0x117   :  { %3102 = vmatpush.bf16.msra.mxu3 %v4706_v31  ;;  %v6157_v60 = vld [vmem:[#allocation8 + $0x24] sm:$0xf0] }
 0x118   :  { %v4609_v61 = vld [vmem:[#allocation8 + $0x208] sm:$0xf]  ;;  %v4354_v8 = vor.u32 %v6157_v60, %v4353_v58  ;;  %v6257_v58 = vld [vmem:[#allocation8 + $0x34c] sm:$0xf] }
 0x119   :  { %3115 = vmatpush.bf16.msrb.mxu0 %v4994_v35  ;;  %v6221_v62 = vld [vmem:[#allocation8 + $0x224] sm:$0xf0] }
 0x11a   :  { %3129 = vmatpush.bf16.msrb.mxu1 %v5250_v40  ;;  %3089 = vmatpush.bf16.msra.mxu2 %v4418_v42  ;;  %v5601_v0 = vld [vmem:[#allocation8 + $0x9c8] sm:$0xf]  ;;  %v4610_v12 = vor.u32 %v6221_v62, %v4609_v61  ;;  %v6201_v42 = vld [vmem:[#allocation8 + $0x18c] sm:$0xf] }
 0x11b   :  { %3103 = vmatpush.bf16.msra.mxu3 %v4674_v45  ;;  %v6469_v1 = vld [vmem:[#allocation8 + $0x9e4] sm:$0xf0]  ;;  %v6265_v45 = vld [vmem:[#allocation8 + $0x38c] sm:$0xf]  ;;  %v4550_v50 = vor.u32 %v6201_v42, %v4547_v43 }
 0x11c   :  { %v5857_v2 = vld [vmem:[#allocation8 + $0xbc8] sm:$0xf]  ;;  %v5602_v13 = vor.u32 %v6469_v1, %v5601_v0  ;;  %v4806_v54 = vor.u32 %v6265_v45, %v4803_v46  ;;  %v6337_v43 = vld [vmem:[#allocation8 + $0x5cc] sm:$0xf] }
 0x11d   :  { %3116 = vmatpush.bf16.msrb.mxu0 %v4962_v18  ;;  %v6533_v4 = vld [vmem:[#allocation8 + $0xbe4] sm:$0xf0]  ;;  %v6401_v45 = vld [vmem:[#allocation8 + $0x7cc] sm:$0xf] }
 0x11e   :  { %3130 = vmatpush.bf16.msrb.mxu1 %v5218_v51  ;;  %v4897_v5 = vld [vmem:[#allocation8 + $0x448] sm:$0xf]  ;;  %3090 = vmatpush.bf16.msra.mxu2 %v4386_v55  ;;  %v5858_v15 = vor.u32 %v6533_v4, %v5857_v2  ;;  %v6193_v55 = vld [vmem:[#allocation8 + $0x14c] sm:$0xf] }
 0x11f   :  { %v6293_v7 = vld [vmem:[#allocation8 + $0x464] sm:$0xf0]  ;;  %3104 = vmatpush.bf16.msra.mxu3 %v4642_v59  ;;  %v4771_v59 = vld [vmem:[#allocation8 + $0x368] sm:$0xf0] }
 0x120   :  { %v5153_v9 = vld [vmem:[#allocation8 + $0x648] sm:$0xf]  ;;  %v4898_v16 = vor.u32 %v6293_v7, %v4897_v5  ;;  %v4774_v2 = vor.u32 %v6257_v58, %v4771_v59  ;;  %v4483_v4 = vld [vmem:[#allocation8 + $0x128] sm:$0xf0] }
 0x121   :  { %v6357_v11 = vld [vmem:[#allocation8 + $0x664] sm:$0xf0]  ;;  %3117 = vmatpush.bf16.msrb.mxu0 %v4930_v63  ;;  %v4518_v63 = vor.u32 %v6193_v55, %v4515_v56  ;;  %v6249_v7 = vld [vmem:[#allocation8 + $0x30c] sm:$0xf] }
 0x122   :  { %v5569_v14 = vld [vmem:[#allocation8 + $0x988] sm:$0xf]  ;;  %3131 = vmatpush.bf16.msrb.mxu1 %v5186_v3  ;;  %v5154_v21 = vor.u32 %v6357_v11, %v5153_v9  ;;  %3091 = vmatpush.bf16.msra.mxu2 %v4354_v8  ;;  %v6185_v3 = vld [vmem:[#allocation8 + $0x10c] sm:$0xf] }
 0x123   :  { %v6461_v17 = vld [vmem:[#allocation8 + $0x9a4] sm:$0xf0]  ;;  %3105 = vmatpush.bf16.msra.mxu3 %v4610_v12  ;;  %v4739_v8 = vld [vmem:[#allocation8 + $0x328] sm:$0xf0] }
 0x124   :  { %v5825_v19 = vld [vmem:[#allocation8 + $0xb88] sm:$0xf]  ;;  %v5570_v28 = vor.u32 %v6461_v17, %v5569_v14  ;;  %v6177_v17 = vld [vmem:[#allocation8 + $0xcc] sm:$0xf] }
 0x125   :  { %v6525_v20 = vld [vmem:[#allocation8 + $0xba4] sm:$0xf0]  ;;  %3118 = vmatpush.bf16.msrb.mxu0 %v4898_v16  ;;  %3092 = vmatmul.bf16.vlgmr.msra.gmra.mxu2 %v7090_v48  ;;  %v4742_v16 = vor.u32 %v6249_v7, %v4739_v8  ;;  %v6329_v56 = vld [vmem:[#allocation8 + $0x58c] sm:$0xf] }
 0x126   :  { %v4865_v22 = vld [vmem:[#allocation8 + $0x408] sm:$0xf]  ;;  %3140 = vmatpush.bf16.msrb.mxu2 %v5602_v13  ;;  %v5826_v31 = vor.u32 %v6525_v20, %v5825_v19  ;;  %3132 = vmatpush.bf16.msrb.mxu1 %v5154_v21  ;;  %v4486_v13 = vor.u32 %v6185_v3, %v4483_v4  ;;  %v4451_v19 = vld [vmem:[#allocation8 + $0xe8] sm:$0xf0] }
 0x127   :  { %v6285_v23 = vld [vmem:[#allocation8 + $0x424] sm:$0xf0]  ;;  %3154 = vmatpush.bf16.msrb.mxu3 %v5858_v15  ;;  %v6241_v21 = vld [vmem:[#allocation8 + $0x2cc] sm:$0xf]  ;;  %v4454_v26 = vor.u32 %v6177_v17, %v4451_v19 }
 0x128   :  { %v5121_v24 = vld [vmem:[#allocation8 + $0x608] sm:$0xf]  ;;  %v4866_v32 = vor.u32 %v6285_v23, %v4865_v22  ;;  %3106 = vmatmul.bf16.vlgmr.msra.gmra.mxu3 %v7092_v52  ;;  %v4707_v22 = vld [vmem:[#allocation8 + $0x2e8] sm:$0xf0] }
 0x129   :  { %v6349_v25 = vld [vmem:[#allocation8 + $0x624] sm:$0xf0]  ;;  %v4710_v29 = vor.u32 %v6241_v21, %v4707_v22  ;;  %v5059_v59 = vld [vmem:[#allocation8 + $0x5a8] sm:$0xf0] }
 0x12a   :  { %v5537_v33 = vld [vmem:[#allocation8 + $0x948] sm:$0xf]  ;;  %v5122_v36 = vor.u32 %v6349_v25, %v5121_v24  ;;  %3141 = vmatpush.bf16.msrb.mxu2 %v5570_v28  ;;  %3119 = vmatpush.bf16.msrb.mxu0 %v4866_v32  ;;  %v6465_v3 = vld [vmem:[#allocation8 + $0x9cc] sm:$0xf] }
 0x12b   :  { %v6453_v35 = vld [vmem:[#allocation8 + $0x964] sm:$0xf0]  ;;  %3155 = vmatpush.bf16.msrb.mxu3 %v5826_v31  ;;  %v4419_v31 = vld [vmem:[#allocation8 + $0xa8] sm:$0xf0] }
 0x12c   :  { %v5793_v40 = vld [vmem:[#allocation8 + $0xb48] sm:$0xf]  ;;  %v5538_v44 = vor.u32 %v6453_v35, %v5537_v33  ;;  %3133 = vmatpush.bf16.msrb.mxu1 %v5122_v36  ;;  %v6233_v33 = vld [vmem:[#allocation8 + $0x28c] sm:$0xf]  ;;  %v4422_v42 = vor.u32 %v6169_v30, %v4419_v31 }
 0x12d   :  { %v6517_v41 = vld [vmem:[#allocation8 + $0xb64] sm:$0xf0]  ;;  %3120 = vmatmul.bf16.vlgmr.msrb.gmra.mxu0 %v7096_v6  ;;  %v4675_v35 = vld [vmem:[#allocation8 + $0x2a8] sm:$0xf0] }
 0x12e   :  { %v5794_v47 = vor.u32 %v6517_v41, %v5793_v40  ;;  %v5505_v18 = vld [vmem:[#allocation8 + $0x908] sm:$0xf]  ;;  %3168 = vmatpush.bf16.msra.mxu0 %v4582_v39  ;;  %3142 = vmatpush.bf16.msrb.mxu2 %v5538_v44  ;;  %v5091_v44 = vld [vmem:[#allocation8 + $0x5e8] sm:$0xf0]  ;;  %v4678_v46 = vor.u32 %v6233_v33, %v4675_v35 }
 0x12f   :  { %v6445_v49 = vld [vmem:[#allocation8 + $0x924] sm:$0xf0]  ;;  %3134 = vmatmul.bf16.vlgmr.msrb.gmra.mxu1 %v7098_v10  ;;  %v5094_v55 = vor.u32 %v6337_v43, %v5091_v44  ;;  %v5603_v4 = vld [vmem:[#allocation8 + $0x9e8] sm:$0xf0] }
 0x130   :  { %v5761_v51 = vld [vmem:[#allocation8 + $0xb08] sm:$0xf]  ;;  %3182 = vmatpush.bf16.msra.mxu1 %v4838_v38  ;;  %v5506_v57 = vor.u32 %v6445_v49, %v5505_v18  ;;  %3156 = vmatpush.bf16.msrb.mxu3 %v5794_v47  ;;  %v5347_v47 = vld [vmem:[#allocation8 + $0x7e8] sm:$0xf0] }
 0x131   :  { %v6509_v53 = vld [vmem:[#allocation8 + $0xb24] sm:$0xf0]  ;;  %v6161_v18 = vld [vmem:[#allocation8 + $0x4c] sm:$0xf] }
 0x132   :  { %v5762_v60 = vor.u32 %v6509_v53, %v5761_v51  ;;  %v5473_v61 = vld [vmem:[#allocation8 + $0x8c8] sm:$0xf]  ;;  %3169 = vmatpush.bf16.msra.mxu0 %v4550_v50  ;;  %3143 = vmatpush.bf16.msrb.mxu2 %v5506_v57  ;;  %v4387_v49 = vld [vmem:[#allocation8 + $0x68] sm:$0xf0]  ;;  %v5350_v57 = vor.u32 %v6401_v45, %v5347_v47 }
 0x133   :  { %v6437_v62 = vld [vmem:[#allocation8 + $0x8e4] sm:$0xf0]  ;;  %v6225_v51 = vld [vmem:[#allocation8 + $0x24c] sm:$0xf]  ;;  %v4390_v58 = vor.u32 %v6161_v18, %v4387_v49 }
 0x134   :  { %v5729_v0 = vld [vmem:[#allocation8 + $0xac8] sm:$0xf]  ;;  %3183 = vmatpush.bf16.msra.mxu1 %v4806_v54  ;;  %v5474_v5 = vor.u32 %v6437_v62, %v5473_v61  ;;  %3157 = vmatpush.bf16.msrb.mxu3 %v5762_v60  ;;  %v4643_v53 = vld [vmem:[#allocation8 + $0x268] sm:$0xf0] }
 0x135   :  { %v6501_v1 = vld [vmem:[#allocation8 + $0xae4] sm:$0xf0]  ;;  %v6393_v60 = vld [vmem:[#allocation8 + $0x78c] sm:$0xf]  ;;  %v4646_v62 = vor.u32 %v6225_v51, %v4643_v53 }
 0x136   :  { %v5730_v9 = vor.u32 %v6501_v1, %v5729_v0  ;;  %v5441_v11 = vld [vmem:[#allocation8 + $0x888] sm:$0xf]  ;;  %3170 = vmatpush.bf16.msra.mxu0 %v4518_v63  ;;  %3144 = vmatpush.bf16.msrb.mxu2 %v5474_v5  ;;  %v5315_v61 = vld [vmem:[#allocation8 + $0x7a8] sm:$0xf0]  ;;  %v5062_v5 = vor.u32 %v6329_v56, %v5059_v59 }
 0x137   :  { %v6429_v12 = vld [vmem:[#allocation8 + $0x8a4] sm:$0xf0]  ;;  %v6153_v63 = vld [vmem:[#allocation8 + $0xc] sm:$0xf] }
 0x138   :  { %v5697_v14 = vld [vmem:[#allocation8 + $0xa88] sm:$0xf]  ;;  %3184 = vmatpush.bf16.msra.mxu1 %v4774_v2  ;;  %v5442_v20 = vor.u32 %v6429_v12, %v5441_v11  ;;  %3158 = vmatpush.bf16.msrb.mxu3 %v5730_v9  ;;  %v4355_v0 = vld [vmem:[#allocation8 + $0x28] sm:$0xf0]  ;;  %v5318_v9 = vor.u32 %v6393_v60, %v5315_v61 }
 0x139   :  { %v6493_v15 = vld [vmem:[#allocation8 + $0xaa4] sm:$0xf0]  ;;  %v6217_v1 = vld [vmem:[#allocation8 + $0x20c] sm:$0xf]  ;;  %v4358_v11 = vor.u32 %v6153_v63, %v4355_v0 }
 0x13a   :  { %v5698_v23 = vor.u32 %v6493_v15, %v5697_v14  ;;  %v5409_v24 = vld [vmem:[#allocation8 + $0x848] sm:$0xf]  ;;  %3171 = vmatpush.bf16.msra.mxu0 %v4486_v13  ;;  %3145 = vmatpush.bf16.msrb.mxu2 %v5442_v20  ;;  %v4611_v2 = vld [vmem:[#allocation8 + $0x228] sm:$0xf0]  ;;  %v5606_v15 = vor.u32 %v6465_v3, %v5603_v4 }
 0x13b   :  { %v6421_v25 = vld [vmem:[#allocation8 + $0x864] sm:$0xf0]  ;;  %v6529_v7 = vld [vmem:[#allocation8 + $0xbcc] sm:$0xf]  ;;  %v4614_v14 = vor.u32 %v6217_v1, %v4611_v2 }
 0x13c   :  { %v5665_v27 = vld [vmem:[#allocation8 + $0xa48] sm:$0xf]  ;;  %3185 = vmatpush.bf16.msra.mxu1 %v4742_v16  ;;  %v5410_v32 = vor.u32 %v6421_v25, %v5409_v24  ;;  %3159 = vmatpush.bf16.msrb.mxu3 %v5698_v23  ;;  %v5859_v8 = vld [vmem:[#allocation8 + $0xbe8] sm:$0xf0] }
 0x13d   :  { %v6485_v28 = vld [vmem:[#allocation8 + $0xa64] sm:$0xf0]  ;;  %v6321_v12 = vld [vmem:[#allocation8 + $0x54c] sm:$0xf]  ;;  %v5862_v19 = vor.u32 %v6529_v7, %v5859_v8 }
 0x13e   :  { %v5377_v36 = vld [vmem:[#allocation8 + $0x808] sm:$0xf]  ;;  %v5666_v39 = vor.u32 %v6485_v28, %v5665_v27  ;;  %3172 = vmatpush.bf16.msra.mxu0 %v4454_v26  ;;  %3146 = vmatpush.bf16.msrb.mxu2 %v5410_v32  ;;  %v5027_v13 = vld [vmem:[#allocation8 + $0x568] sm:$0xf0] }
 0x13f   :  { %v6413_v40 = vld [vmem:[#allocation8 + $0x824] sm:$0xf0]  ;;  %v6385_v16 = vld [vmem:[#allocation8 + $0x74c] sm:$0xf]  ;;  %v5030_v22 = vor.u32 %v6321_v12, %v5027_v13 }
 0x140   :  { %v5633_v41 = vld [vmem:[#allocation8 + $0xa08] sm:$0xf]  ;;  %3186 = vmatpush.bf16.msra.mxu1 %v4710_v29  ;;  %v5378_v50 = vor.u32 %v6413_v40, %v5377_v36  ;;  %3160 = vmatpush.bf16.msrb.mxu3 %v5666_v39  ;;  %v5283_v17 = vld [vmem:[#allocation8 + $0x768] sm:$0xf0] }
 0x141   :  { %v6477_v38 = vld [vmem:[#allocation8 + $0xa24] sm:$0xf0]  ;;  %v6457_v20 = vld [vmem:[#allocation8 + $0x98c] sm:$0xf]  ;;  %v5286_v25 = vor.u32 %v6385_v16, %v5283_v17 }
 0x142   :  { %v5634_v54 = vor.u32 %v6477_v38, %v5633_v41  ;;  %3173 = vmatpush.bf16.msra.mxu0 %v4422_v42  ;;  %3147 = vmatpush.bf16.msrb.mxu2 %v5378_v50  ;;  %v5571_v21 = vld [vmem:[#allocation8 + $0x9a8] sm:$0xf0] }
 0x143   :  { %v6521_v23 = vld [vmem:[#allocation8 + $0xb8c] sm:$0xf]  ;;  %v5574_v28 = vor.u32 %v6457_v20, %v5571_v21  ;;  %v4585_v21 = vld [vmem:[#allocation8 + $0x1d0] sm:$0xf] }
 0x144   :  { %3187 = vmatpush.bf16.msra.mxu1 %v4678_v46  ;;  %3161 = vmatpush.bf16.msrb.mxu3 %v5634_v54  ;;  %v5827_v24 = vld [vmem:[#allocation8 + $0xba8] sm:$0xf0] }
 0x145   :  { %3148 = vmatmul.bf16.vlgmr.msrb.gmra.mxu2 %v7106_v34  ;;  %v6313_v26 = vld [vmem:[#allocation8 + $0x50c] sm:$0xf]  ;;  %v5830_v31 = vor.u32 %v6521_v23, %v5827_v24  ;;  %v4841_v23 = vld [vmem:[#allocation8 + $0x3d0] sm:$0xf] }
 0x146   :  { %3196 = vmatpush.bf16.msra.mxu2 %v5094_v55  ;;  %3174 = vmatpush.bf16.msra.mxu0 %v4390_v58  ;;  %v4995_v27 = vld [vmem:[#allocation8 + $0x528] sm:$0xf0] }
 0x147   :  { %3162 = vmatmul.bf16.vlgmr.msrb.gmra.mxu3 %v7108_v37  ;;  %v6377_v29 = vld [vmem:[#allocation8 + $0x70c] sm:$0xf]  ;;  %v4998_v35 = vor.u32 %v6313_v26, %v4995_v27 }
 0x148   :  { %3210 = vmatpush.bf16.msra.mxu3 %v5350_v57  ;;  %3188 = vmatpush.bf16.msra.mxu1 %v4646_v62  ;;  %v5251_v30 = vld [vmem:[#allocation8 + $0x728] sm:$0xf0] }
 0x149   :  { %v6449_v32 = vld [vmem:[#allocation8 + $0x94c] sm:$0xf]  ;;  %v5254_v40 = vor.u32 %v6377_v29, %v5251_v30 }
 0x14a   :  { %3197 = vmatpush.bf16.msra.mxu2 %v5062_v5  ;;  %3175 = vmatpush.bf16.msra.mxu0 %v4358_v11  ;;  %v5539_v33 = vld [vmem:[#allocation8 + $0x968] sm:$0xf0] }
 0x14b   :  { %v6513_v36 = vld [vmem:[#allocation8 + $0xb4c] sm:$0xf]  ;;  %v5542_v42 = vor.u32 %v6449_v32, %v5539_v33  ;;  %v4553_v33 = vld [vmem:[#allocation8 + $0x190] sm:$0xf] }
 0x14c   :  { %3211 = vmatpush.bf16.msra.mxu3 %v5318_v9  ;;  %3189 = vmatpush.bf16.msra.mxu1 %v4614_v14  ;;  %v5795_v39 = vld [vmem:[#allocation8 + $0xb68] sm:$0xf0] }
 0x14d   :  { %3176 = vmatmul.bf16.vlgmr.msra.gmra.mxu0 %v7090_v48  ;;  %v6305_v41 = vld [vmem:[#allocation8 + $0x4cc] sm:$0xf]  ;;  %v5798_v45 = vor.u32 %v6513_v36, %v5795_v39  ;;  %v6206_v39 = vld [vmem:[#allocation8 + $0x1ac] sm:$0xf0] }
 0x14e   :  { %3224 = vmatpush.bf16.msrb.mxu0 %v5606_v15  ;;  %3198 = vmatpush.bf16.msra.mxu2 %v5030_v22  ;;  %v4963_v38 = vld [vmem:[#allocation8 + $0x4e8] sm:$0xf0]  ;;  %v6214_v22 = vld [vmem:[#allocation8 + $0x1ec] sm:$0xf0] }
 0x14f   :  { %3190 = vmatmul.bf16.vlgmr.msra.gmra.mxu1 %v7092_v52  ;;  %v6369_v43 = vld [vmem:[#allocation8 + $0x6cc] sm:$0xf]  ;;  %v4966_v18 = vor.u32 %v6305_v41, %v4963_v38  ;;  %v4586_v32 = vor.u32 %v6214_v22, %v4585_v21  ;;  %v6270_v41 = vld [vmem:[#allocation8 + $0x3ac] sm:$0xf0] }
 0x150   :  { %3238 = vmatpush.bf16.msrb.mxu1 %v5862_v19  ;;  %3212 = vmatpush.bf16.msra.mxu3 %v5286_v25  ;;  %v5219_v44 = vld [vmem:[#allocation8 + $0x6e8] sm:$0xf0]  ;;  %v6278_v25 = vld [vmem:[#allocation8 + $0x3ec] sm:$0xf0] }
 0x151   :  { %v6441_v46 = vld [vmem:[#allocation8 + $0x90c] sm:$0xf]  ;;  %v5222_v51 = vor.u32 %v6369_v43, %v5219_v44  ;;  %v4713_v21 = vld [vmem:[#allocation8 + $0x2d0] sm:$0xf] }
 0x152   :  { %3225 = vmatpush.bf16.msrb.mxu0 %v5574_v28  ;;  %v5507_v47 = vld [vmem:[#allocation8 + $0x928] sm:$0xf0]  ;;  %3199 = vmatpush.bf16.msra.mxu2 %v4998_v35  ;;  %v4842_v35 = vor.u32 %v6278_v25, %v4841_v23  ;;  %v6246_v22 = vld [vmem:[#allocation8 + $0x2ec] sm:$0xf0] }
 0x153   :  { %v6505_v49 = vld [vmem:[#allocation8 + $0xb0c] sm:$0xf]  ;;  %v5510_v55 = vor.u32 %v6441_v46, %v5507_v47  ;;  %v5097_v46 = vld [vmem:[#allocation8 + $0x5d0] sm:$0xf] }
 0x154   :  { %3239 = vmatpush.bf16.msrb.mxu1 %v5830_v31  ;;  %v5763_v50 = vld [vmem:[#allocation8 + $0xb28] sm:$0xf0]  ;;  %3213 = vmatpush.bf16.msra.mxu3 %v5254_v40  ;;  %v4809_v40 = vld [vmem:[#allocation8 + $0x390] sm:$0xf] }
 0x155   :  { %v6297_v53 = vld [vmem:[#allocation8 + $0x48c] sm:$0xf]  ;;  %v5766_v58 = vor.u32 %v6505_v49, %v5763_v50  ;;  %v6342_v47 = vld [vmem:[#allocation8 + $0x5ec] sm:$0xf0] }
 0x156   :  { %v4931_v54 = vld [vmem:[#allocation8 + $0x4a8] sm:$0xf0]  ;;  %3226 = vmatpush.bf16.msrb.mxu0 %v5542_v42  ;;  %3200 = vmatpush.bf16.msra.mxu2 %v4966_v18  ;;  %v4554_v18 = vor.u32 %v6206_v39, %v4553_v33  ;;  %v5353_v49 = vld [vmem:[#allocation8 + $0x7d0] sm:$0xf] }
 0x157   :  { %v6361_v56 = vld [vmem:[#allocation8 + $0x68c] sm:$0xf]  ;;  %v4934_v61 = vor.u32 %v6297_v53, %v4931_v54  ;;  %v6406_v50 = vld [vmem:[#allocation8 + $0x7ec] sm:$0xf0] }
 0x158   :  { %v5187_v57 = vld [vmem:[#allocation8 + $0x6a8] sm:$0xf0]  ;;  %3240 = vmatpush.bf16.msrb.mxu1 %v5798_v45  ;;  %3214 = vmatpush.bf16.msra.mxu3 %v5222_v51  ;;  %v4810_v51 = vor.u32 %v6270_v41, %v4809_v40  ;;  %v4521_v54 = vld [vmem:[#allocation8 + $0x150] sm:$0xf] }
 0x159   :  { %v6433_v59 = vld [vmem:[#allocation8 + $0x8cc] sm:$0xf]  ;;  %v5190_v0 = vor.u32 %v6361_v56, %v5187_v57  ;;  %v5098_v57 = vor.u32 %v6342_v47, %v5097_v46  ;;  %v6318_v25 = vld [vmem:[#allocation8 + $0x52c] sm:$0xf0] }
 0x15a   :  { %v5475_v60 = vld [vmem:[#allocation8 + $0x8e8] sm:$0xf0]  ;;  %3227 = vmatpush.bf16.msrb.mxu0 %v5510_v55  ;;  %3201 = vmatpush.bf16.msra.mxu2 %v4934_v61  ;;  %v6198_v55 = vld [vmem:[#allocation8 + $0x16c] sm:$0xf0] }
 0x15b   :  { %v6497_v62 = vld [vmem:[#allocation8 + $0xacc] sm:$0xf]  ;;  %v5478_v3 = vor.u32 %v6433_v59, %v5475_v60  ;;  %v6262_v59 = vld [vmem:[#allocation8 + $0x36c] sm:$0xf0]  ;;  %v5354_v60 = vor.u32 %v6406_v50, %v5353_v49 }
 0x15c   :  { %v5731_v63 = vld [vmem:[#allocation8 + $0xae8] sm:$0xf0]  ;;  %3241 = vmatpush.bf16.msrb.mxu1 %v5766_v58  ;;  %3215 = vmatpush.bf16.msra.mxu3 %v5190_v0  ;;  %v4777_v58 = vld [vmem:[#allocation8 + $0x350] sm:$0xf] }
 0x15d   :  { %v6289_v1 = vld [vmem:[#allocation8 + $0x44c] sm:$0xf]  ;;  %v5734_v7 = vor.u32 %v6497_v62, %v5731_v63  ;;  %v5065_v61 = vld [vmem:[#allocation8 + $0x590] sm:$0xf]  ;;  %v4522_v63 = vor.u32 %v6198_v55, %v4521_v54 }
 0x15e   :  { %v4899_v2 = vld [vmem:[#allocation8 + $0x468] sm:$0xf0]  ;;  %3228 = vmatpush.bf16.msrb.mxu0 %v5478_v3  ;;  %v6334_v62 = vld [vmem:[#allocation8 + $0x5ac] sm:$0xf0] }
 0x15f   :  { %v6353_v4 = vld [vmem:[#allocation8 + $0x64c] sm:$0xf]  ;;  %v4902_v11 = vor.u32 %v6289_v1, %v4899_v2  ;;  %v5321_v0 = vld [vmem:[#allocation8 + $0x790] sm:$0xf]  ;;  %v4778_v2 = vor.u32 %v6262_v59, %v4777_v58 }
 0x160   :  { %v5155_v5 = vld [vmem:[#allocation8 + $0x668] sm:$0xf0]  ;;  %3242 = vmatpush.bf16.msrb.mxu1 %v5734_v7  ;;  %v6398_v1 = vld [vmem:[#allocation8 + $0x7ac] sm:$0xf0] }
 0x161   :  { %v6425_v8 = vld [vmem:[#allocation8 + $0x88c] sm:$0xf]  ;;  %v5158_v15 = vor.u32 %v6353_v4, %v5155_v5  ;;  %3202 = vmatpush.bf16.msra.mxu2 %v4902_v11  ;;  %v4489_v3 = vld [vmem:[#allocation8 + $0x110] sm:$0xf]  ;;  %v5066_v5 = vor.u32 %v6334_v62, %v5065_v61 }
 0x162   :  { %v5443_v9 = vld [vmem:[#allocation8 + $0x8a8] sm:$0xf0]  ;;  %v6190_v4 = vld [vmem:[#allocation8 + $0x12c] sm:$0xf0] }
 0x163   :  { %v6489_v12 = vld [vmem:[#allocation8 + $0xa8c] sm:$0xf]  ;;  %v5446_v20 = vor.u32 %v6425_v8, %v5443_v9  ;;  %3216 = vmatpush.bf16.msra.mxu3 %v5158_v15  ;;  %v4745_v7 = vld [vmem:[#allocation8 + $0x310] sm:$0xf]  ;;  %v5322_v9 = vor.u32 %v6398_v1, %v5321_v0 }
 0x164   :  { %v5699_v13 = vld [vmem:[#allocation8 + $0xaa8] sm:$0xf0]  ;;  %v6254_v8 = vld [vmem:[#allocation8 + $0x32c] sm:$0xf0] }
 0x165   :  { %v6281_v14 = vld [vmem:[#allocation8 + $0x40c] sm:$0xf]  ;;  %v5702_v24 = vor.u32 %v6489_v12, %v5699_v13  ;;  %3229 = vmatpush.bf16.msrb.mxu0 %v5446_v20  ;;  %v5033_v11 = vld [vmem:[#allocation8 + $0x550] sm:$0xf]  ;;  %v4490_v13 = vor.u32 %v6190_v4, %v4489_v3 }
 0x166   :  { %v4867_v16 = vld [vmem:[#allocation8 + $0x428] sm:$0xf0]  ;;  %v6326_v12 = vld [vmem:[#allocation8 + $0x56c] sm:$0xf0] }
 0x167   :  { %v6345_v17 = vld [vmem:[#allocation8 + $0x60c] sm:$0xf]  ;;  %v4870_v28 = vor.u32 %v6281_v14, %v4867_v16  ;;  %3243 = vmatpush.bf16.msrb.mxu1 %v5702_v24  ;;  %v5289_v14 = vld [vmem:[#allocation8 + $0x750] sm:$0xf]  ;;  %v4746_v16 = vor.u32 %v6254_v8, %v4745_v7  ;;  %v5034_v20 = vor.u32 %v6326_v12, %v5033_v11 }
 0x168   :  { %v5123_v19 = vld [vmem:[#allocation8 + $0x628] sm:$0xf0]  ;;  %v6390_v15 = vld [vmem:[#allocation8 + $0x76c] sm:$0xf0] }
 0x169   :  { %v6417_v26 = vld [vmem:[#allocation8 + $0x84c] sm:$0xf]  ;;  %v5126_v31 = vor.u32 %v6345_v17, %v5123_v19  ;;  %3203 = vmatpush.bf16.msra.mxu2 %v4870_v28  ;;  %v4457_v17 = vld [vmem:[#allocation8 + $0xd0] sm:$0xf]  ;;  %v5290_v23 = vor.u32 %v6390_v15, %v5289_v14 }
 0x16a   :  { %v5411_v27 = vld [vmem:[#allocation8 + $0x868] sm:$0xf0]  ;;  %v6182_v19 = vld [vmem:[#allocation8 + $0xec] sm:$0xf0] }
 0x16b   :  { %v6481_v29 = vld [vmem:[#allocation8 + $0xa4c] sm:$0xf]  ;;  %v5414_v36 = vor.u32 %v6417_v26, %v5411_v27  ;;  %3217 = vmatpush.bf16.msra.mxu3 %v5126_v31  ;;  %v5001_v24 = vld [vmem:[#allocation8 + $0x510] sm:$0xf]  ;;  %v4458_v26 = vor.u32 %v6182_v19, %v4457_v17  ;;  %v4714_v31 = vor.u32 %v6246_v22, %v4713_v21 }
 0x16c   :  { %v5667_v30 = vld [vmem:[#allocation8 + $0xa68] sm:$0xf0]  ;;  %3204 = vmatmul.bf16.vlgmr.msra.gmra.mxu2 %v7096_v6  ;;  %v5257_v27 = vld [vmem:[#allocation8 + $0x710] sm:$0xf]  ;;  %v5002_v39 = vor.u32 %v6318_v25, %v5001_v24 }
 0x16d   :  { %v5670_v38 = vor.u32 %v6481_v29, %v5667_v30  ;;  %v6409_v42 = vld [vmem:[#allocation8 + $0x80c] sm:$0xf]  ;;  %3252 = vmatpush.bf16.msrb.mxu2 %v4586_v32  ;;  %3230 = vmatpush.bf16.msrb.mxu0 %v5414_v36  ;;  %v6382_v28 = vld [vmem:[#allocation8 + $0x72c] sm:$0xf0]  ;;  %v2925_v29 = vpop.f32.mrf.mxu2  ;;  %v2953_v30 = vpop.f32.mrf.mxu0 }
 0x16e   :  { %v5379_v43 = vld [vmem:[#allocation8 + $0x828] sm:$0xf0]  ;;  %3218 = vmatmul.bf16.vlgmr.msra.gmra.mxu3 %v7098_v10  ;;  %v4425_v32 = vld [vmem:[#allocation8 + $0x90] sm:$0xf]  ;;  %v2967_v36 = vpop.f32.mrf.mxu1 }
 0x16f   :  { %v6473_v44 = vld [vmem:[#allocation8 + $0xa0c] sm:$0xf]  ;;  %3266 = vmatpush.bf16.msrb.mxu3 %v4842_v35  ;;  %v5382_v53 = vor.u32 %v6409_v42, %v5379_v43  ;;  %3244 = vmatpush.bf16.msrb.mxu1 %v5670_v38  ;;  %v6174_v33 = vld [vmem:[#allocation8 + $0xac] sm:$0xf0]  ;;  %v2939_v35 = vpop.f32.mrf.mxu3  ;;  %v5258_v42 = vor.u32 %v6382_v28, %v5257_v27 }
 0x170   :  { %v5635_v45 = vld [vmem:[#allocation8 + $0xa28] sm:$0xf0]  ;;  %v4681_v40 = vld [vmem:[#allocation8 + $0x290] sm:$0xf]  ;;  %v2940_v38 = vadd.f32 %v2939_v35, %v2925_v29  ;;  %v4587_v35 = vld [vmem:[#allocation8 + $0x1f0] sm:$0xf0] }
 0x171   :  { %v5638_v56 = vor.u32 %v6473_v44, %v5635_v45  ;;  %3253 = vmatpush.bf16.msrb.mxu2 %v4554_v18  ;;  %3231 = vmatpush.bf16.msrb.mxu0 %v5382_v53  ;;  %v6238_v41 = vld [vmem:[#allocation8 + $0x2ac] sm:$0xf0]  ;;  %v4426_v45 = vor.u32 %v6174_v33, %v4425_v32  ;;  %v6210_v33 = vld [vmem:[#allocation8 + $0x1d4] sm:$0xf] }
 0x172   :  { %v4969_v43 = vld [vmem:[#allocation8 + $0x4d0] sm:$0xf]  ;;  %v2954_v18 = vadd.f32 %v2953_v30, %v2940_v38  ;;  %v4682_v49 = vor.u32 %v6238_v41, %v4681_v40  ;;  %v6274_v40 = vld [vmem:[#allocation8 + $0x3d4] sm:$0xf] }
 0x173   :  { %3267 = vmatpush.bf16.msrb.mxu3 %v4810_v51  ;;  %3245 = vmatpush.bf16.msrb.mxu1 %v5638_v56  ;;  %v6310_v44 = vld [vmem:[#allocation8 + $0x4ec] sm:$0xf0]  ;;  %v4843_v41 = vld [vmem:[#allocation8 + $0x3f0] sm:$0xf0] }
 0x174   :  { %3232 = vmatmul.bf16.vlgmr.msrb.gmra.mxu0 %v7106_v34  ;;  %v5225_v46 = vld [vmem:[#allocation8 + $0x6d0] sm:$0xf]  ;;  %v4970_v53 = vor.u32 %v6310_v44, %v4969_v43  ;;  %v7128_v56 = vadd.f32 %v2967_v36, %v2954_v18  ;;  %v4590_v18 = vor.u32 %v6210_v33, %v4587_v35 }
 0x175   :  { %3280 = vmatpush.bf16.msra.mxu0 %v5098_v57  ;;  %3254 = vmatpush.bf16.msrb.mxu2 %v4522_v63  ;;  %v6374_v47 = vld [vmem:[#allocation8 + $0x6ec] sm:$0xf0]  ;;  %v7130_v0 = vpop.f32.mrf.mxu0 }
 0x176   :  { %3246 = vmatmul.bf16.vlgmr.msrb.gmra.mxu1 %v7108_v37  ;;  %v4393_v50 = vld [vmem:[#allocation8 + $0x50] sm:$0xf]  ;;  %v5226_v57 = vor.u32 %v6374_v47, %v5225_v46 }
 0x177   :  { %3294 = vmatpush.bf16.msra.mxu1 %v5354_v60  ;;  %3268 = vmatpush.bf16.msrb.mxu3 %v4778_v2  ;;  %v6166_v51 = vld [vmem:[#allocation8 + $0x6c] sm:$0xf0] }
 0x178   :  { %v4649_v54 = vld [vmem:[#allocation8 + $0x250] sm:$0xf]  ;;  %v4394_v60 = vor.u32 %v6166_v51, %v4393_v50  ;;  %v4846_v51 = vor.u32 %v6274_v40, %v4843_v41  ;;  %v4459_v40 = vld [vmem:[#allocation8 + $0xf0] sm:$0xf0] }
 0x179   :  { %3281 = vmatpush.bf16.msra.mxu0 %v5066_v5  ;;  %3255 = vmatpush.bf16.msrb.mxu2 %v4490_v13  ;;  %v6230_v55 = vld [vmem:[#allocation8 + $0x26c] sm:$0xf0]  ;;  %v7132_v5 = vpop.f32.mrf.mxu1 }
 0x17a   :  { %v4937_v58 = vld [vmem:[#allocation8 + $0x490] sm:$0xf]  ;;  %v4650_v1 = vor.u32 %v6230_v55, %v4649_v54  ;;  %v4555_v54 = vld [vmem:[#allocation8 + $0x1b0] sm:$0xf0] }
 0x17b   :  { %3295 = vmatpush.bf16.msra.mxu1 %v5322_v9  ;;  %3269 = vmatpush.bf16.msrb.mxu3 %v4746_v16  ;;  %v6302_v59 = vld [vmem:[#allocation8 + $0x4ac] sm:$0xf0] }
 0x17c   :  { %v5193_v61 = vld [vmem:[#allocation8 + $0x690] sm:$0xf]  ;;  %v4938_v7 = vor.u32 %v6302_v59, %v4937_v58  ;;  %v4811_v58 = vld [vmem:[#allocation8 + $0x3b0] sm:$0xf0] }
 0x17d   :  { %3282 = vmatpush.bf16.msra.mxu0 %v5034_v20  ;;  %3256 = vmatpush.bf16.msrb.mxu2 %v4458_v26  ;;  %v6366_v62 = vld [vmem:[#allocation8 + $0x6ac] sm:$0xf0]  ;;  %v3009_v36 = vpop.f32.mrf.mxu0 }
 0x17e   :  { %v4361_v63 = vld [vmem:[#allocation8 + $0x10] sm:$0xf]  ;;  %v5194_v12 = vor.u32 %v6366_v62, %v5193_v61  ;;  %v7138_v62 = vpop.f32.mrf.mxu2 }
 0x17f   :  { %3296 = vmatpush.bf16.msra.mxu1 %v5290_v23  ;;  %3270 = vmatpush.bf16.msrb.mxu3 %v4714_v31  ;;  %v6158_v2 = vld [vmem:[#allocation8 + $0x2c] sm:$0xf0] }
 0x180   :  { %v4617_v3 = vld [vmem:[#allocation8 + $0x210] sm:$0xf]  ;;  %v4362_v16 = vor.u32 %v6158_v2, %v4361_v63 }
 0x181   :  { %3283 = vmatpush.bf16.msra.mxu0 %v5002_v39  ;;  %3257 = vmatpush.bf16.msrb.mxu2 %v4426_v45  ;;  %v6222_v4 = vld [vmem:[#allocation8 + $0x22c] sm:$0xf0]  ;;  %v3023_v38 = vpop.f32.mrf.mxu1 }
 0x182   :  { %v5609_v8 = vld [vmem:[#allocation8 + $0x9d0] sm:$0xf]  ;;  %v4618_v20 = vor.u32 %v6222_v4, %v4617_v3  ;;  %v7134_v46 = vadd.f32 %v3023_v38, %v3009_v36  ;;  %v7140_v3 = vpop.f32.mrf.mxu3  ;;  %v6242_v38 = vld [vmem:[#allocation8 + $0x2d4] sm:$0xf] }
 0x183   :  { %3297 = vmatpush.bf16.msra.mxu1 %v5258_v42  ;;  %3271 = vmatpush.bf16.msrb.mxu3 %v4682_v49  ;;  %v6470_v9 = vld [vmem:[#allocation8 + $0x9ec] sm:$0xf0] }
 0x184   :  { %v5865_v11 = vld [vmem:[#allocation8 + $0xbd0] sm:$0xf]  ;;  %v5610_v21 = vor.u32 %v6470_v9, %v5609_v8  ;;  %v4523_v8 = vld [vmem:[#allocation8 + $0x170] sm:$0xf0] }
 0x185   :  { %3284 = vmatpush.bf16.msra.mxu0 %v4970_v53  ;;  %v6534_v13 = vld [vmem:[#allocation8 + $0xbec] sm:$0xf0]  ;;  %3258 = vmatpush.bf16.msrb.mxu2 %v4394_v60  ;;  %v6202_v53 = vld [vmem:[#allocation8 + $0x194] sm:$0xf] }
 0x186   :  { %v4905_v14 = vld [vmem:[#allocation8 + $0x450] sm:$0xf]  ;;  %v5866_v23 = vor.u32 %v6534_v13, %v5865_v11  ;;  %v4558_v63 = vor.u32 %v6202_v53, %v4555_v54  ;;  %v6258_v11 = vld [vmem:[#allocation8 + $0x354] sm:$0xf] }
 0x187   :  { %3298 = vmatpush.bf16.msra.mxu1 %v5226_v57  ;;  %v6294_v15 = vld [vmem:[#allocation8 + $0x46c] sm:$0xf0]  ;;  %3272 = vmatpush.bf16.msrb.mxu3 %v4650_v1  ;;  %v6266_v57 = vld [vmem:[#allocation8 + $0x394] sm:$0xf] }
 0x188   :  { %v5161_v17 = vld [vmem:[#allocation8 + $0x650] sm:$0xf]  ;;  %v4906_v24 = vor.u32 %v6294_v15, %v4905_v14  ;;  %v4814_v4 = vor.u32 %v6266_v57, %v4811_v58  ;;  %v6170_v53 = vld [vmem:[#allocation8 + $0x94] sm:$0xf] }
 0x189   :  { %v6358_v19 = vld [vmem:[#allocation8 + $0x66c] sm:$0xf0]  ;;  %3285 = vmatpush.bf16.msra.mxu0 %v4938_v7  ;;  %3259 = vmatpush.bf16.msrb.mxu2 %v4362_v16  ;;  %v6194_v7 = vld [vmem:[#allocation8 + $0x154] sm:$0xf] }
 0x18a   :  { %v5577_v22 = vld [vmem:[#allocation8 + $0x990] sm:$0xf]  ;;  %v5162_v28 = vor.u32 %v6358_v19, %v5161_v17  ;;  %v4526_v16 = vor.u32 %v6194_v7, %v4523_v8  ;;  %v2995_v35 = vpop.f32.mrf.mxu3  ;;  %v4427_v54 = vld [vmem:[#allocation8 + $0xb0] sm:$0xf0] }
 0x18b   :  { %v6462_v25 = vld [vmem:[#allocation8 + $0x9ac] sm:$0xf0]  ;;  %3299 = vmatpush.bf16.msra.mxu1 %v5194_v12  ;;  %3273 = vmatpush.bf16.msrb.mxu3 %v4618_v20  ;;  %v4779_v12 = vld [vmem:[#allocation8 + $0x370] sm:$0xf0]  ;;  %v4430_v7 = vor.u32 %v6170_v53, %v4427_v54 }
 0x18c   :  { %v5833_v26 = vld [vmem:[#allocation8 + $0xb90] sm:$0xf]  ;;  %v5578_v39 = vor.u32 %v6462_v25, %v5577_v22  ;;  %3260 = vmatmul.bf16.vlgmr.msrb.gmra.mxu2 %v7090_v48  ;;  %v4782_v20 = vor.u32 %v6258_v11, %v4779_v12  ;;  %v4491_v22 = vld [vmem:[#allocation8 + $0x130] sm:$0xf0] }
 0x18d   :  { %v6526_v27 = vld [vmem:[#allocation8 + $0xbac] sm:$0xf0]  ;;  %3308 = vmatpush.bf16.msra.mxu2 %v5610_v21  ;;  %3286 = vmatpush.bf16.msra.mxu0 %v4906_v24  ;;  %v6186_v21 = vld [vmem:[#allocation8 + $0x114] sm:$0xf] }
 0x18e   :  { %v4873_v29 = vld [vmem:[#allocation8 + $0x410] sm:$0xf]  ;;  %v5834_v42 = vor.u32 %v6526_v27, %v5833_v26  ;;  %3274 = vmatmul.bf16.vlgmr.msrb.gmra.mxu3 %v7092_v52  ;;  %v6250_v24 = vld [vmem:[#allocation8 + $0x314] sm:$0xf] }
 0x18f   :  { %v6286_v30 = vld [vmem:[#allocation8 + $0x42c] sm:$0xf0]  ;;  %3322 = vmatpush.bf16.msra.mxu3 %v5866_v23  ;;  %3300 = vmatpush.bf16.msra.mxu1 %v5162_v28  ;;  %v4747_v25 = vld [vmem:[#allocation8 + $0x330] sm:$0xf0] }
 0x190   :  { %v5129_v31 = vld [vmem:[#allocation8 + $0x610] sm:$0xf]  ;;  %v4874_v43 = vor.u32 %v6286_v30, %v4873_v29  ;;  %v2981_v29 = vpop.f32.mrf.mxu2  ;;  %v4494_v30 = vor.u32 %v6186_v21, %v4491_v22  ;;  %v4750_v36 = vor.u32 %v6250_v24, %v4747_v25  ;;  %v6234_v57 = vld [vmem:[#allocation8 + $0x294] sm:$0xf] }
 0x191   :  { %v6350_v32 = vld [vmem:[#allocation8 + $0x62c] sm:$0xf0]  ;;  %3309 = vmatpush.bf16.msra.mxu2 %v5578_v39  ;;  %v2982_v33 = vadd.f32 %v2981_v29, %v7128_v56  ;;  %v6178_v39 = vld [vmem:[#allocation8 + $0xd4] sm:$0xf] }
 0x192   :  { %v5545_v44 = vld [vmem:[#allocation8 + $0x950] sm:$0xf]  ;;  %v5130_v47 = vor.u32 %v6350_v32, %v5129_v31  ;;  %3287 = vmatpush.bf16.msra.mxu0 %v4874_v43  ;;  %v4683_v58 = vld [vmem:[#allocation8 + $0x2b0] sm:$0xf0]  ;;  %v7153_v12 = vpop.f32.mrf.mxu3 }
 0x193   :  { %v6454_v45 = vld [vmem:[#allocation8 + $0x96c] sm:$0xf0]  ;;  %3323 = vmatpush.bf16.msra.mxu3 %v5834_v42  ;;  %v4715_v42 = vld [vmem:[#allocation8 + $0x2f0] sm:$0xf0]  ;;  %v7145_v43 = vadd.f32 %v2995_v35, %v2982_v33 }
 0x194   :  { %v5801_v49 = vld [vmem:[#allocation8 + $0xb50] sm:$0xf]  ;;  %v5546_v55 = vor.u32 %v6454_v45, %v5545_v44  ;;  %3301 = vmatpush.bf16.msra.mxu1 %v5130_v47  ;;  %v4718_v56 = vor.u32 %v6242_v38, %v4715_v42  ;;  %v6338_v8 = vld [vmem:[#allocation8 + $0x5d4] sm:$0xf] }
 0x195   :  { %v6518_v50 = vld [vmem:[#allocation8 + $0xb6c] sm:$0xf0]  ;;  %3288 = vmatmul.bf16.vlgmr.msra.gmra.mxu0 %v7096_v6  ;;  %v6402_v11 = vld [vmem:[#allocation8 + $0x7d4] sm:$0xf] }
 0x196   :  { %v5802_v59 = vor.u32 %v6518_v50, %v5801_v49  ;;  %v5513_v60 = vld [vmem:[#allocation8 + $0x910] sm:$0xf]  ;;  %3336 = vmatpush.bf16.msrb.mxu0 %v4590_v18  ;;  %3310 = vmatpush.bf16.msra.mxu2 %v5546_v55  ;;  %v4462_v18 = vor.u32 %v6178_v39, %v4459_v40  ;;  %v4619_v33 = vld [vmem:[#allocation8 + $0x230] sm:$0xf0] }
 0x197   :  { %v6446_v61 = vld [vmem:[#allocation8 + $0x92c] sm:$0xf0]  ;;  %3302 = vmatmul.bf16.vlgmr.msra.gmra.mxu1 %v7098_v10  ;;  %v6466_v35 = vld [vmem:[#allocation8 + $0x9d4] sm:$0xf] }
 0x198   :  { %v5769_v1 = vld [vmem:[#allocation8 + $0xb10] sm:$0xf]  ;;  %3350 = vmatpush.bf16.msrb.mxu1 %v4846_v51  ;;  %v5514_v9 = vor.u32 %v6446_v61, %v5513_v60  ;;  %3324 = vmatpush.bf16.msra.mxu3 %v5802_v59  ;;  %v7147_v51 = vpop.f32.mrf.mxu0  ;;  %v7149_v60 = vpop.f32.mrf.mxu1  ;;  %v5867_v38 = vld [vmem:[#allocation8 + $0xbf0] sm:$0xf0] }
 0x199   :  { %v6510_v2 = vld [vmem:[#allocation8 + $0xb2c] sm:$0xf0] }
 0x19a   :  { %v5770_v13 = vor.u32 %v6510_v2, %v5769_v1  ;;  %v5481_v14 = vld [vmem:[#allocation8 + $0x8d0] sm:$0xf]  ;;  %3337 = vmatpush.bf16.msrb.mxu0 %v4558_v63  ;;  %3311 = vmatpush.bf16.msra.mxu2 %v5514_v9  ;;  %v5099_v9 = vld [vmem:[#allocation8 + $0x5f0] sm:$0xf0] }
 0x19b   :  { %v6438_v15 = vld [vmem:[#allocation8 + $0x8ec] sm:$0xf0]  ;;  %v5102_v22 = vor.u32 %v6338_v8, %v5099_v9  ;;  %v6314_v8 = vld [vmem:[#allocation8 + $0x514] sm:$0xf] }
 0x19c   :  { %v5737_v17 = vld [vmem:[#allocation8 + $0xad0] sm:$0xf]  ;;  %3351 = vmatpush.bf16.msrb.mxu1 %v4814_v4  ;;  %v5482_v23 = vor.u32 %v6438_v15, %v5481_v14  ;;  %3325 = vmatpush.bf16.msra.mxu3 %v5770_v13  ;;  %v7151_v4 = vpop.f32.mrf.mxu2  ;;  %v4686_v13 = vor.u32 %v6234_v57, %v4683_v58  ;;  %v5355_v14 = vld [vmem:[#allocation8 + $0x7f0] sm:$0xf0] }
 0x19d   :  { %v6502_v19 = vld [vmem:[#allocation8 + $0xaec] sm:$0xf0]  ;;  %v6162_v15 = vld [vmem:[#allocation8 + $0x54] sm:$0xf]  ;;  %v5358_v24 = vor.u32 %v6402_v11, %v5355_v14 }
 0x19e   :  { %v5738_v26 = vor.u32 %v6502_v19, %v5737_v17  ;;  %v5449_v27 = vld [vmem:[#allocation8 + $0x890] sm:$0xf]  ;;  %3338 = vmatpush.bf16.msrb.mxu0 %v4526_v16  ;;  %3312 = vmatpush.bf16.msra.mxu2 %v5482_v23  ;;  %v4395_v16 = vld [vmem:[#allocation8 + $0x70] sm:$0xf0] }
 0x19f   :  { %v6430_v28 = vld [vmem:[#allocation8 + $0x8ac] sm:$0xf0]  ;;  %v6226_v19 = vld [vmem:[#allocation8 + $0x254] sm:$0xf]  ;;  %v4398_v25 = vor.u32 %v6162_v15, %v4395_v16 }
 0x1a0   :  { %v5705_v31 = vld [vmem:[#allocation8 + $0xa90] sm:$0xf]  ;;  %3352 = vmatpush.bf16.msrb.mxu1 %v4782_v20  ;;  %v5450_v41 = vor.u32 %v6430_v28, %v5449_v27  ;;  %3326 = vmatpush.bf16.msra.mxu3 %v5738_v26  ;;  %v4651_v20 = vld [vmem:[#allocation8 + $0x270] sm:$0xf0]  ;;  %v3065_v39 = vpop.f32.mrf.mxu0 }
 0x1a1   :  { %v6494_v32 = vld [vmem:[#allocation8 + $0xaac] sm:$0xf0]  ;;  %v6330_v23 = vld [vmem:[#allocation8 + $0x594] sm:$0xf]  ;;  %v4654_v29 = vor.u32 %v6226_v19, %v4651_v20  ;;  %v3026_v20 = vadd.f32 %v7149_v60, %v7147_v51 }
 0x1a2   :  { %v5706_v44 = vor.u32 %v6494_v32, %v5705_v31  ;;  %v5417_v45 = vld [vmem:[#allocation8 + $0x850] sm:$0xf]  ;;  %3339 = vmatpush.bf16.msrb.mxu0 %v4494_v30  ;;  %3313 = vmatpush.bf16.msra.mxu2 %v5450_v41  ;;  %v5067_v26 = vld [vmem:[#allocation8 + $0x5b0] sm:$0xf0] }
 0x1a3   :  { %v6422_v47 = vld [vmem:[#allocation8 + $0x86c] sm:$0xf0]  ;;  %v6394_v27 = vld [vmem:[#allocation8 + $0x794] sm:$0xf]  ;;  %v5070_v40 = vor.u32 %v6330_v23, %v5067_v26 }
 0x1a4   :  { %v5673_v49 = vld [vmem:[#allocation8 + $0xa50] sm:$0xf]  ;;  %3353 = vmatpush.bf16.msrb.mxu1 %v4750_v36  ;;  %v5418_v55 = vor.u32 %v6422_v47, %v5417_v45  ;;  %3327 = vmatpush.bf16.msra.mxu3 %v5706_v44  ;;  %v5323_v28 = vld [vmem:[#allocation8 + $0x7b0] sm:$0xf0]  ;;  %v3037_v42 = vpop.f32.mrf.mxu2 }
 0x1a5   :  { %v6486_v50 = vld [vmem:[#allocation8 + $0xa6c] sm:$0xf0]  ;;  %v6154_v30 = vld [vmem:[#allocation8 + $0x14] sm:$0xf]  ;;  %v5326_v44 = vor.u32 %v6394_v27, %v5323_v28 }
 0x1a6   :  { %v5385_v59 = vld [vmem:[#allocation8 + $0x810] sm:$0xf]  ;;  %v5674_v61 = vor.u32 %v6486_v50, %v5673_v49  ;;  %3340 = vmatpush.bf16.msrb.mxu0 %v4462_v18  ;;  %3314 = vmatpush.bf16.msra.mxu2 %v5418_v55  ;;  %v4363_v31 = vld [vmem:[#allocation8 + $0x30] sm:$0xf0]  ;;  %v3079_v49 = vpop.f32.mrf.mxu1  ;;  %v3038_v50 = vadd.f32 %v3037_v42, %v7134_v46 }
 0x1a7   :  { %v6414_v63 = vld [vmem:[#allocation8 + $0x82c] sm:$0xf0]  ;;  %v6218_v32 = vld [vmem:[#allocation8 + $0x214] sm:$0xf]  ;;  %v4366_v45 = vor.u32 %v6154_v30, %v4363_v31 }
 0x1a8   :  { %v5641_v1 = vld [vmem:[#allocation8 + $0xa10] sm:$0xf]  ;;  %3354 = vmatpush.bf16.msrb.mxu1 %v4718_v56  ;;  %v5386_v17 = vor.u32 %v6414_v63, %v5385_v59  ;;  %3328 = vmatpush.bf16.msra.mxu3 %v5674_v61  ;;  %v5611_v36 = vld [vmem:[#allocation8 + $0x9f0] sm:$0xf0]  ;;  %v3051_v56 = vpop.f32.mrf.mxu3  ;;  %v4622_v53 = vor.u32 %v6218_v32, %v4619_v33 }
 0x1a9   :  { %v6478_v2 = vld [vmem:[#allocation8 + $0xa2c] sm:$0xf0]  ;;  %v6530_v41 = vld [vmem:[#allocation8 + $0xbd4] sm:$0xf]  ;;  %v5614_v54 = vor.u32 %v6466_v35, %v5611_v36  ;;  %v3052_v63 = vadd.f32 %v3051_v56, %v3038_v50 }
 0x1aa   :  { %v5642_v21 = vor.u32 %v6478_v2, %v5641_v1  ;;  %3341 = vmatpush.bf16.msrb.mxu0 %v4430_v7  ;;  %3315 = vmatpush.bf16.msra.mxu2 %v5386_v17  ;;  %v6322_v47 = vld [vmem:[#allocation8 + $0x554] sm:$0xf]  ;;  %v5870_v58 = vor.u32 %v6530_v41, %v5867_v38 }
 0x1ab   :  { %v5035_v18 = vld [vmem:[#allocation8 + $0x570] sm:$0xf0]  ;;  %v3066_v11 = vadd.f32 %v3065_v39, %v3052_v63 }
 0x1ac   :  { %3355 = vmatpush.bf16.msrb.mxu1 %v4686_v13  ;;  %3329 = vmatpush.bf16.msra.mxu3 %v5642_v21  ;;  %v6386_v55 = vld [vmem:[#allocation8 + $0x754] sm:$0xf]  ;;  %v5038_v1 = vor.u32 %v6322_v47, %v5035_v18 }
 0x1ad   :  { %3316 = vmatmul.bf16.vlgmr.msra.gmra.mxu2 %v7106_v34  ;;  %v5291_v57 = vld [vmem:[#allocation8 + $0x770] sm:$0xf0] }
 0x1ae   :  { %3364 = vmatpush.bf16.msrb.mxu2 %v5102_v22  ;;  %3342 = vmatpush.bf16.msrb.mxu0 %v4398_v25  ;;  %v6458_v59 = vld [vmem:[#allocation8 + $0x994] sm:$0xf]  ;;  %v5294_v46 = vor.u32 %v6386_v55, %v5291_v57  ;;  %v3039_v25 = vpop.f32.mrf.mxu2  ;;  %v3081_v39 = vpop.f32.mrf.mxu1 }
 0x1af   :  { %3330 = vmatmul.bf16.vlgmr.msra.gmra.mxu3 %v7108_v37  ;;  %v5579_v61 = vld [vmem:[#allocation8 + $0x9b0] sm:$0xf0]  ;;  %v3040_v30 = vadd.f32 %v3039_v25, %v3026_v20 }
 0x1b0   :  { %3378 = vmatpush.bf16.msrb.mxu3 %v5358_v24  ;;  %3356 = vmatpush.bf16.msrb.mxu1 %v4654_v29  ;;  %v6522_v2 = vld [vmem:[#allocation8 + $0xb94] sm:$0xf]  ;;  %v5582_v13 = vor.u32 %v6458_v59, %v5579_v61  ;;  %v7161_v24 = vadd.f32 %v3079_v49, %v3066_v11  ;;  %v3067_v29 = vpop.f32.mrf.mxu0  ;;  %v3053_v31 = vpop.f32.mrf.mxu3 }
 0x1b1   :  { %v5835_v7 = vld [vmem:[#allocation8 + $0xbb0] sm:$0xf0] }
 0x1b2   :  { %3365 = vmatpush.bf16.msrb.mxu2 %v5070_v40  ;;  %3343 = vmatpush.bf16.msrb.mxu0 %v4366_v45  ;;  %v5003_v9 = vld [vmem:[#allocation8 + $0x530] sm:$0xf0]  ;;  %v5838_v16 = vor.u32 %v6522_v2, %v5835_v7  ;;  %v3054_v40 = vadd.f32 %v3053_v31, %v3040_v30  ;;  %v4593_v31 = vld [vmem:[#allocation8 + $0x1d8] sm:$0xf] }
 0x1b3   :  { %v6378_v14 = vld [vmem:[#allocation8 + $0x714] sm:$0xf]  ;;  %v5006_v21 = vor.u32 %v6314_v8, %v5003_v9 }
 0x1b4   :  { %3379 = vmatpush.bf16.msrb.mxu3 %v5326_v44  ;;  %3357 = vmatpush.bf16.msrb.mxu1 %v4622_v53  ;;  %v5259_v15 = vld [vmem:[#allocation8 + $0x730] sm:$0xf0]  ;;  %v3068_v18 = vadd.f32 %v3067_v29, %v3054_v40 }
 0x1b5   :  { %v6450_v17 = vld [vmem:[#allocation8 + $0x954] sm:$0xf]  ;;  %3344 = vmatmul.bf16.vlgmr.msrb.gmra.mxu0 %v7090_v48  ;;  %v5262_v26 = vor.u32 %v6378_v14, %v5259_v15 }
 0x1b6   :  { %3392 = vmatpush.bf16.msra.mxu0 %v5614_v54  ;;  %v5547_v19 = vld [vmem:[#allocation8 + $0x970] sm:$0xf0]  ;;  %3366 = vmatpush.bf16.msrb.mxu2 %v5038_v1  ;;  %v7164_v61 = vadd.f32 %v3081_v39, %v3068_v18  ;;  %v3093_v63 = vpop.f32.mrf.mxu2 }
 0x1b7   :  { %v6514_v22 = vld [vmem:[#allocation8 + $0xb54] sm:$0xf]  ;;  %3358 = vmatmul.bf16.vlgmr.msrb.gmra.mxu1 %v7092_v52  ;;  %v5550_v51 = vor.u32 %v6450_v17, %v5547_v19  ;;  %v3135_v19 = vpop.f32.mrf.mxu1 }
 0x1b8   :  { %3406 = vmatpush.bf16.msra.mxu1 %v5870_v58  ;;  %v5803_v23 = vld [vmem:[#allocation8 + $0xb70] sm:$0xf0]  ;;  %3380 = vmatpush.bf16.msrb.mxu3 %v5294_v46  ;;  %v3121_v46 = vpop.f32.mrf.mxu0  ;;  %v3107_v8 = vpop.f32.mrf.mxu3 }
 0x1b9   :  { %v6306_v27 = vld [vmem:[#allocation8 + $0x4d4] sm:$0xf]  ;;  %v5806_v33 = vor.u32 %v6514_v22, %v5803_v23  ;;  %v3108_v14 = vadd.f32 %v3107_v8, %v3093_v63 }
 0x1ba   :  { %v4971_v28 = vld [vmem:[#allocation8 + $0x4f0] sm:$0xf0]  ;;  %3393 = vmatpush.bf16.msra.mxu0 %v5582_v13  ;;  %3367 = vmatpush.bf16.msrb.mxu2 %v5006_v21 }
 0x1bb   :  { %v6370_v60 = vld [vmem:[#allocation8 + $0x6d4] sm:$0xf]  ;;  %v4974_v41 = vor.u32 %v6306_v27, %v4971_v28  ;;  %v3122_v25 = vadd.f32 %v3121_v46, %v3108_v14  ;;  %v6343_v46 = vld [vmem:[#allocation8 + $0x5f4] sm:$0xf0] }
 0x1bc   :  { %v5227_v32 = vld [vmem:[#allocation8 + $0x6f0] sm:$0xf0]  ;;  %3407 = vmatpush.bf16.msra.mxu1 %v5838_v16  ;;  %3381 = vmatpush.bf16.msrb.mxu3 %v5262_v26 }
 0x1bd   :  { %v6442_v35 = vld [vmem:[#allocation8 + $0x914] sm:$0xf]  ;;  %v5230_v44 = vor.u32 %v6370_v60, %v5227_v32  ;;  %v4849_v60 = vld [vmem:[#allocation8 + $0x3d8] sm:$0xf]  ;;  %v7166_v39 = vadd.f32 %v3135_v19, %v3122_v25 }
 0x1be   :  { %v5515_v36 = vld [vmem:[#allocation8 + $0x930] sm:$0xf0]  ;;  %3394 = vmatpush.bf16.msra.mxu0 %v5550_v51  ;;  %3368 = vmatpush.bf16.msrb.mxu2 %v4974_v41  ;;  %v6215_v51 = vld [vmem:[#allocation8 + $0x1f4] sm:$0xf0] }
 0x1bf   :  { %v6506_v38 = vld [vmem:[#allocation8 + $0xb14] sm:$0xf]  ;;  %v5518_v49 = vor.u32 %v6442_v35, %v5515_v36  ;;  %v3137_v14 = vpop.f32.mrf.mxu1  ;;  %v6199_v19 = vld [vmem:[#allocation8 + $0x174] sm:$0xf0] }
 0x1c0   :  { %v5771_v42 = vld [vmem:[#allocation8 + $0xb30] sm:$0xf0]  ;;  %3408 = vmatpush.bf16.msra.mxu1 %v5806_v33  ;;  %3382 = vmatpush.bf16.msrb.mxu3 %v5230_v44  ;;  %v6279_v33 = vld [vmem:[#allocation8 + $0x3f4] sm:$0xf0]  ;;  %v3109_v18 = vpop.f32.mrf.mxu3 }
 0x1c1   :  { %v6298_v45 = vld [vmem:[#allocation8 + $0x494] sm:$0xf]  ;;  %v5774_v53 = vor.u32 %v6506_v38, %v5771_v42  ;;  %v3095_v42 = vpop.f32.mrf.mxu2 }
 0x1c2   :  { %v4939_v47 = vld [vmem:[#allocation8 + $0x4b0] sm:$0xf0]  ;;  %3395 = vmatpush.bf16.msra.mxu0 %v5518_v49  ;;  %v4850_v49 = vor.u32 %v6279_v33, %v4849_v60  ;;  %v4497_v60 = vld [vmem:[#allocation8 + $0x118] sm:$0xf] }
 0x1c3   :  { %v6362_v50 = vld [vmem:[#allocation8 + $0x694] sm:$0xf]  ;;  %v4942_v57 = vor.u32 %v6298_v45, %v4939_v47  ;;  %v4594_v45 = vor.u32 %v6215_v51, %v4593_v31  ;;  %v4561_v47 = vld [vmem:[#allocation8 + $0x198] sm:$0xf] }
 0x1c4   :  { %v5195_v56 = vld [vmem:[#allocation8 + $0x6b0] sm:$0xf0]  ;;  %3409 = vmatpush.bf16.msra.mxu1 %v5774_v53  ;;  %v4817_v53 = vld [vmem:[#allocation8 + $0x398] sm:$0xf] }
 0x1c5   :  { %v6434_v54 = vld [vmem:[#allocation8 + $0x8d4] sm:$0xf]  ;;  %v5198_v1 = vor.u32 %v6362_v50, %v5195_v56  ;;  %3369 = vmatpush.bf16.msrb.mxu2 %v4942_v57  ;;  %v6207_v56 = vld [vmem:[#allocation8 + $0x1b4] sm:$0xf0] }
 0x1c6   :  { %v5483_v55 = vld [vmem:[#allocation8 + $0x8f0] sm:$0xf0]  ;;  %v6399_v31 = vld [vmem:[#allocation8 + $0x7b4] sm:$0xf0] }
 0x1c7   :  { %v6498_v58 = vld [vmem:[#allocation8 + $0xad4] sm:$0xf]  ;;  %v5486_v9 = vor.u32 %v6434_v54, %v5483_v55  ;;  %3383 = vmatpush.bf16.msrb.mxu3 %v5198_v1  ;;  %v6271_v54 = vld [vmem:[#allocation8 + $0x3b4] sm:$0xf0]  ;;  %v3110_v55 = vadd.f32 %v3109_v18, %v3095_v42  ;;  %v3123_v1 = vpop.f32.mrf.mxu0 }
 0x1c8   :  { %v5739_v59 = vld [vmem:[#allocation8 + $0xaf0] sm:$0xf0]  ;;  %v4465_v18 = vld [vmem:[#allocation8 + $0xd8] sm:$0xf] }
 0x1c9   :  { %v6290_v2 = vld [vmem:[#allocation8 + $0x454] sm:$0xf]  ;;  %v5742_v15 = vor.u32 %v6498_v58, %v5739_v59  ;;  %3396 = vmatpush.bf16.msra.mxu0 %v5486_v9  ;;  %v3124_v8 = vadd.f32 %v3123_v1, %v3110_v55  ;;  %v4562_v9 = vor.u32 %v6207_v56, %v4561_v47  ;;  %v4721_v56 = vld [vmem:[#allocation8 + $0x2d8] sm:$0xf] }
 0x1ca   :  { %v4907_v7 = vld [vmem:[#allocation8 + $0x470] sm:$0xf0]  ;;  %v5009_v55 = vld [vmem:[#allocation8 + $0x518] sm:$0xf] }
 0x1cb   :  { %v6354_v11 = vld [vmem:[#allocation8 + $0x654] sm:$0xf]  ;;  %v4910_v20 = vor.u32 %v6290_v2, %v4907_v7  ;;  %3410 = vmatpush.bf16.msra.mxu1 %v5742_v15  ;;  %v5105_v7 = vld [vmem:[#allocation8 + $0x5d8] sm:$0xf]  ;;  %v4818_v15 = vor.u32 %v6271_v54, %v4817_v53  ;;  %v7169_v25 = vadd.f32 %v3137_v14, %v3124_v8 }
 0x1cc   :  { %v5163_v13 = vld [vmem:[#allocation8 + $0x670] sm:$0xf0]  ;;  %v6247_v53 = vld [vmem:[#allocation8 + $0x2f4] sm:$0xf0] }
 0x1cd   :  { %v6426_v16 = vld [vmem:[#allocation8 + $0x894] sm:$0xf]  ;;  %v5166_v26 = vor.u32 %v6354_v11, %v5163_v13  ;;  %3370 = vmatpush.bf16.msrb.mxu2 %v4910_v20  ;;  %v5361_v11 = vld [vmem:[#allocation8 + $0x7d8] sm:$0xf]  ;;  %v4722_v1 = vor.u32 %v6247_v53, %v4721_v56 }
 0x1ce   :  { %v5451_v17 = vld [vmem:[#allocation8 + $0x8b0] sm:$0xf0]  ;;  %v6407_v13 = vld [vmem:[#allocation8 + $0x7f4] sm:$0xf0] }
 0x1cf   :  { %v6490_v21 = vld [vmem:[#allocation8 + $0xa94] sm:$0xf]  ;;  %v5454_v30 = vor.u32 %v6426_v16, %v5451_v17  ;;  %3384 = vmatpush.bf16.msrb.mxu3 %v5166_v26  ;;  %v4529_v17 = vld [vmem:[#allocation8 + $0x158] sm:$0xf]  ;;  %v5362_v26 = vor.u32 %v6407_v13, %v5361_v11 }
 0x1d0   :  { %v5707_v22 = vld [vmem:[#allocation8 + $0xab0] sm:$0xf0]  ;;  %v4689_v8 = vld [vmem:[#allocation8 + $0x298] sm:$0xf] }
 0x1d1   :  { %v6282_v23 = vld [vmem:[#allocation8 + $0x414] sm:$0xf]  ;;  %v5710_v32 = vor.u32 %v6490_v21, %v5707_v22  ;;  %3397 = vmatpush.bf16.msra.mxu0 %v5454_v30  ;;  %v5106_v21 = vor.u32 %v6343_v46, %v5105_v7  ;;  %v4785_v22 = vld [vmem:[#allocation8 + $0x358] sm:$0xf] }
 0x1d2   :  { %v4875_v27 = vld [vmem:[#allocation8 + $0x430] sm:$0xf0]  ;;  %v5329_v30 = vld [vmem:[#allocation8 + $0x798] sm:$0xf] }
 0x1d3   :  { %v6346_v28 = vld [vmem:[#allocation8 + $0x614] sm:$0xf]  ;;  %v4878_v40 = vor.u32 %v6282_v23, %v4875_v27  ;;  %3411 = vmatpush.bf16.msra.mxu1 %v5710_v32  ;;  %v6263_v23 = vld [vmem:[#allocation8 + $0x374] sm:$0xf0] }
 0x1d4   :  { %v5131_v29 = vld [vmem:[#allocation8 + $0x630] sm:$0xf0]  ;;  %v5073_v27 = vld [vmem:[#allocation8 + $0x598] sm:$0xf]  ;;  %v4786_v51 = vor.u32 %v6263_v23, %v4785_v22 }
 0x1d5   :  { %v6418_v35 = vld [vmem:[#allocation8 + $0x854] sm:$0xf]  ;;  %v5134_v44 = vor.u32 %v6346_v28, %v5131_v29  ;;  %3371 = vmatpush.bf16.msrb.mxu2 %v4878_v40  ;;  %v6335_v28 = vld [vmem:[#allocation8 + $0x5b4] sm:$0xf0]  ;;  %v4530_v29 = vor.u32 %v6199_v19, %v4529_v17  ;;  %v5330_v40 = vor.u32 %v6399_v31, %v5329_v30  ;;  %v3149_v19 = vpop.f32.mrf.mxu2 }
 0x1d6   :  { %v5419_v36 = vld [vmem:[#allocation8 + $0x870] sm:$0xf0]  ;;  %v6191_v32 = vld [vmem:[#allocation8 + $0x134] sm:$0xf0]  ;;  %v5074_v33 = vor.u32 %v6335_v28, %v5073_v27  ;;  %v3163_v27 = vpop.f32.mrf.mxu3  ;;  %v3191_v28 = vpop.f32.mrf.mxu1 }
 0x1d7   :  { %v6482_v41 = vld [vmem:[#allocation8 + $0xa54] sm:$0xf]  ;;  %v5422_v50 = vor.u32 %v6418_v35, %v5419_v36  ;;  %3385 = vmatpush.bf16.msrb.mxu3 %v5134_v44  ;;  %v4753_v35 = vld [vmem:[#allocation8 + $0x318] sm:$0xf]  ;;  %v4498_v42 = vor.u32 %v6191_v32, %v4497_v60 }
 0x1d8   :  { %v5675_v38 = vld [vmem:[#allocation8 + $0xa70] sm:$0xf0]  ;;  %3372 = vmatmul.bf16.vlgmr.msrb.gmra.mxu2 %v7096_v6  ;;  %v6255_v36 = vld [vmem:[#allocation8 + $0x334] sm:$0xf0] }
 0x1d9   :  { %v5678_v57 = vor.u32 %v6482_v41, %v5675_v38  ;;  %v6410_v58 = vld [vmem:[#allocation8 + $0x814] sm:$0xf]  ;;  %3420 = vmatpush.bf16.msra.mxu2 %v4594_v45  ;;  %3398 = vmatpush.bf16.msra.mxu0 %v5422_v50  ;;  %v5041_v41 = vld [vmem:[#allocation8 + $0x558] sm:$0xf]  ;;  %v4754_v47 = vor.u32 %v6255_v36, %v4753_v35 }
 0x1da   :  { %v5387_v59 = vld [vmem:[#allocation8 + $0x830] sm:$0xf0]  ;;  %3386 = vmatmul.bf16.vlgmr.msrb.gmra.mxu3 %v7098_v10  ;;  %v6327_v38 = vld [vmem:[#allocation8 + $0x574] sm:$0xf0] }
 0x1db   :  { %v6474_v63 = vld [vmem:[#allocation8 + $0xa14] sm:$0xf]  ;;  %3434 = vmatpush.bf16.msra.mxu3 %v4850_v49  ;;  %v5390_v16 = vor.u32 %v6410_v58, %v5387_v59  ;;  %3412 = vmatpush.bf16.msra.mxu1 %v5678_v57  ;;  %v5297_v44 = vld [vmem:[#allocation8 + $0x758] sm:$0xf]  ;;  %v5042_v50 = vor.u32 %v6327_v38, %v5041_v41 }
 0x1dc   :  { %v5643_v2 = vld [vmem:[#allocation8 + $0xa30] sm:$0xf0]  ;;  %v6391_v45 = vld [vmem:[#allocation8 + $0x774] sm:$0xf0] }
 0x1dd   :  { %v5646_v20 = vor.u32 %v6474_v63, %v5643_v2  ;;  %3421 = vmatpush.bf16.msra.mxu2 %v4562_v9  ;;  %3399 = vmatpush.bf16.msra.mxu0 %v5390_v16  ;;  %v6183_v49 = vld [vmem:[#allocation8 + $0xf4] sm:$0xf0]  ;;  %v5298_v54 = vor.u32 %v6391_v45, %v5297_v44 }
 0x1de   :  { %v6319_v57 = vld [vmem:[#allocation8 + $0x534] sm:$0xf0]  ;;  %v4466_v58 = vor.u32 %v6183_v49, %v4465_v18 }
 0x1df   :  { %3435 = vmatpush.bf16.msra.mxu3 %v4818_v15  ;;  %3413 = vmatpush.bf16.msra.mxu1 %v5646_v20  ;;  %v5265_v59 = vld [vmem:[#allocation8 + $0x718] sm:$0xf]  ;;  %v5010_v46 = vor.u32 %v6319_v57, %v5009_v55  ;;  %v3177_v20 = vpop.f32.mrf.mxu0 }
 0x1e0   :  { %3400 = vmatmul.bf16.vlgmr.msra.gmra.mxu0 %v7106_v34  ;;  %v6383_v63 = vld [vmem:[#allocation8 + $0x734] sm:$0xf0] }
 0x1e1   :  { %3448 = vmatpush.bf16.msrb.mxu0 %v5106_v21  ;;  %3422 = vmatpush.bf16.msra.mxu2 %v4530_v29  ;;  %v4433_v2 = vld [vmem:[#allocation8 + $0x98] sm:$0xf]  ;;  %v5266_v11 = vor.u32 %v6383_v63, %v5265_v59 }
 0x1e2   :  { %3414 = vmatmul.bf16.vlgmr.msra.gmra.mxu1 %v7108_v37  ;;  %v6175_v7 = vld [vmem:[#allocation8 + $0xb4] sm:$0xf0] }
 0x1e3   :  { %3462 = vmatpush.bf16.msrb.mxu1 %v5362_v26  ;;  %3436 = vmatpush.bf16.msra.mxu3 %v4786_v51  ;;  %v6239_v9 = vld [vmem:[#allocation8 + $0x2b4] sm:$0xf0]  ;;  %v4434_v15 = vor.u32 %v6175_v7, %v4433_v2  ;;  %v3150_v26 = vadd.f32 %v3149_v19, %v7166_v39  ;;  %v7175_v51 = vadd.f32 %v3191_v28, %v3177_v20  ;;  %v3165_v19 = vpop.f32.mrf.mxu3 }
 0x1e4   :  { %v4977_v13 = vld [vmem:[#allocation8 + $0x4d8] sm:$0xf]  ;;  %v4690_v21 = vor.u32 %v6239_v9, %v4689_v8 }
 0x1e5   :  { %3449 = vmatpush.bf16.msrb.mxu0 %v5074_v33  ;;  %3423 = vmatpush.bf16.msra.mxu2 %v4498_v42  ;;  %v6311_v14 = vld [vmem:[#allocation8 + $0x4f4] sm:$0xf0]  ;;  %v7177_v35 = vadd.f32 %v3163_v27, %v3150_v26 }
 0x1e6   :  { %v5233_v16 = vld [vmem:[#allocation8 + $0x6d8] sm:$0xf]  ;;  %v4978_v29 = vor.u32 %v6311_v14, %v4977_v13 }
 0x1e7   :  { %3463 = vmatpush.bf16.msrb.mxu1 %v5330_v40  ;;  %3437 = vmatpush.bf16.msra.mxu3 %v4754_v47  ;;  %v6375_v17 = vld [vmem:[#allocation8 + $0x6f4] sm:$0xf0]  ;;  %v3588_v47 = vmax.f32 %v7145_v43, %v7177_v35  ;;  %v3179_v2 = vpop.f32.mrf.mxu0 }
 0x1e8   :  { %v4401_v22 = vld [vmem:[#allocation8 + $0x58] sm:$0xf]  ;;  %v5234_v60 = vor.u32 %v6375_v17, %v5233_v16 }
 0x1e9   :  { %3450 = vmatpush.bf16.msrb.mxu0 %v5042_v50  ;;  %3424 = vmatpush.bf16.msra.mxu2 %v4466_v58  ;;  %v6167_v23 = vld [vmem:[#allocation8 + $0x74] sm:$0xf0] }
 0x1ea   :  { %v4657_v30 = vld [vmem:[#allocation8 + $0x258] sm:$0xf]  ;;  %v4402_v36 = vor.u32 %v6167_v23, %v4401_v22 }
 0x1eb   :  { %3464 = vmatpush.bf16.msrb.mxu1 %v5298_v54  ;;  %3438 = vmatpush.bf16.msra.mxu3 %v4722_v1  ;;  %v6231_v31 = vld [vmem:[#allocation8 + $0x274] sm:$0xf0]  ;;  %v3151_v1 = vpop.f32.mrf.mxu2 }
 0x1ec   :  { %v4945_v32 = vld [vmem:[#allocation8 + $0x498] sm:$0xf]  ;;  %v4658_v39 = vor.u32 %v6231_v31, %v4657_v30  ;;  %v3152_v9 = vadd.f32 %v3151_v1, %v7169_v25  ;;  %v6211_v25 = vld [vmem:[#allocation8 + $0x1dc] sm:$0xf] }
 0x1ed   :  { %3451 = vmatpush.bf16.msrb.mxu0 %v5010_v46  ;;  %v6303_v33 = vld [vmem:[#allocation8 + $0x4b4] sm:$0xf0]  ;;  %3425 = vmatpush.bf16.msra.mxu2 %v4434_v15  ;;  %v6275_v31 = vld [vmem:[#allocation8 + $0x3dc] sm:$0xf] }
 0x1ee   :  { %v5201_v40 = vld [vmem:[#allocation8 + $0x698] sm:$0xf]  ;;  %v4946_v18 = vor.u32 %v6303_v33, %v4945_v32  ;;  %v7184_v27 = vadd.f32 %v3165_v19, %v3152_v9  ;;  %v6195_v1 = vld [vmem:[#allocation8 + $0x15c] sm:$0xf] }
 0x1ef   :  { %3465 = vmatpush.bf16.msrb.mxu1 %v5266_v11  ;;  %v6367_v41 = vld [vmem:[#allocation8 + $0x6b4] sm:$0xf0]  ;;  %3439 = vmatpush.bf16.msra.mxu3 %v4690_v21  ;;  %v3193_v11 = vpop.f32.mrf.mxu1  ;;  %v6187_v19 = vld [vmem:[#allocation8 + $0x11c] sm:$0xf] }
 0x1f0   :  { %v4369_v38 = vld [vmem:[#allocation8 + $0x18] sm:$0xf]  ;;  %v5202_v53 = vor.u32 %v6367_v41, %v5201_v40  ;;  %v7182_v20 = vadd.f32 %v3193_v11, %v3179_v2  ;;  %v4531_v2 = vld [vmem:[#allocation8 + $0x178] sm:$0xf0] }
 0x1f1   :  { %v6159_v42 = vld [vmem:[#allocation8 + $0x34] sm:$0xf0]  ;;  %3452 = vmatpush.bf16.msrb.mxu0 %v4978_v29  ;;  %3426 = vmatpush.bf16.msra.mxu2 %v4402_v36  ;;  %v4595_v29 = vld [vmem:[#allocation8 + $0x1f8] sm:$0xf0] }
 0x1f2   :  { %v4625_v44 = vld [vmem:[#allocation8 + $0x218] sm:$0xf]  ;;  %v4370_v58 = vor.u32 %v6159_v42, %v4369_v38  ;;  %v4598_v38 = vor.u32 %v6211_v25, %v4595_v29 }
 0x1f3   :  { %v6223_v45 = vld [vmem:[#allocation8 + $0x234] sm:$0xf0]  ;;  %3466 = vmatpush.bf16.msrb.mxu1 %v5234_v60  ;;  %3440 = vmatpush.bf16.msra.mxu3 %v4658_v39  ;;  %v4851_v60 = vld [vmem:[#allocation8 + $0x3f8] sm:$0xf0] }
 0x1f4   :  { %v5617_v49 = vld [vmem:[#allocation8 + $0x9d8] sm:$0xf]  ;;  %v4626_v7 = vor.u32 %v6223_v45, %v4625_v44  ;;  %v4854_v44 = vor.u32 %v6275_v31, %v4851_v60  ;;  %v6203_v45 = vld [vmem:[#allocation8 + $0x19c] sm:$0xf] }
 0x1f5   :  { %v6471_v50 = vld [vmem:[#allocation8 + $0x9f4] sm:$0xf0]  ;;  %3453 = vmatpush.bf16.msrb.mxu0 %v4946_v18  ;;  %3427 = vmatpush.bf16.msra.mxu2 %v4370_v58  ;;  %v4563_v18 = vld [vmem:[#allocation8 + $0x1b8] sm:$0xf0] }
 0x1f6   :  { %v5873_v56 = vld [vmem:[#allocation8 + $0xbd8] sm:$0xf]  ;;  %v5618_v46 = vor.u32 %v6471_v50, %v5617_v49  ;;  %v6267_v50 = vld [vmem:[#allocation8 + $0x39c] sm:$0xf] }
 0x1f7   :  { %v6535_v54 = vld [vmem:[#allocation8 + $0xbf4] sm:$0xf0]  ;;  %3467 = vmatpush.bf16.msrb.mxu1 %v5202_v53  ;;  %3441 = vmatpush.bf16.msra.mxu3 %v4626_v7 }
 0x1f8   :  { %v4913_v55 = vld [vmem:[#allocation8 + $0x458] sm:$0xf]  ;;  %v5874_v13 = vor.u32 %v6535_v54, %v5873_v56  ;;  %3428 = vmatmul.bf16.vlgmr.msra.gmra.mxu2 %v7090_v48  ;;  %v4819_v56 = vld [vmem:[#allocation8 + $0x3b8] sm:$0xf0] }
 0x1f9   :  { %v6295_v57 = vld [vmem:[#allocation8 + $0x474] sm:$0xf0]  ;;  %3476 = vmatpush.bf16.msrb.mxu2 %v5618_v46  ;;  %v6259_v46 = vld [vmem:[#allocation8 + $0x35c] sm:$0xf] }
 0x1fa   :  { %v5169_v59 = vld [vmem:[#allocation8 + $0x658] sm:$0xf]  ;;  %v4914_v14 = vor.u32 %v6295_v57, %v4913_v55  ;;  %3442 = vmatmul.bf16.vlgmr.msra.gmra.mxu3 %v7092_v52  ;;  %v4566_v57 = vor.u32 %v6203_v45, %v4563_v18 }
 0x1fb   :  { %v6359_v63 = vld [vmem:[#allocation8 + $0x674] sm:$0xf0]  ;;  %3490 = vmatpush.bf16.msrb.mxu3 %v5874_v13 }
 0x1fc   :  { %v5585_v8 = vld [vmem:[#allocation8 + $0x998] sm:$0xf]  ;;  %v5170_v21 = vor.u32 %v6359_v63, %v5169_v59  ;;  %3454 = vmatpush.bf16.msrb.mxu0 %v4914_v14  ;;  %v4822_v63 = vor.u32 %v6267_v50, %v4819_v56  ;;  %v4534_v14 = vor.u32 %v6195_v1, %v4531_v2  ;;  %v6235_v1 = vld [vmem:[#allocation8 + $0x29c] sm:$0xf] }
 0x1fd   :  { %v6463_v15 = vld [vmem:[#allocation8 + $0x9b4] sm:$0xf0]  ;;  %v4691_v2 = vld [vmem:[#allocation8 + $0x2b8] sm:$0xf0] }
 0x1fe   :  { %v5841_v16 = vld [vmem:[#allocation8 + $0xb98] sm:$0xf]  ;;  %v5586_v30 = vor.u32 %v6463_v15, %v5585_v8  ;;  %3468 = vmatpush.bf16.msrb.mxu1 %v5170_v21  ;;  %v4787_v8 = vld [vmem:[#allocation8 + $0x378] sm:$0xf0] }
 0x1ff   :  { %v6527_v17 = vld [vmem:[#allocation8 + $0xbb4] sm:$0xf0]  ;;  %v4499_v21 = vld [vmem:[#allocation8 + $0x138] sm:$0xf0] }
 0x200   :  { %v4881_v22 = vld [vmem:[#allocation8 + $0x418] sm:$0xf]  ;;  %v5842_v32 = vor.u32 %v6527_v17, %v5841_v16  ;;  %3477 = vmatpush.bf16.msrb.mxu2 %v5586_v30  ;;  %v4790_v17 = vor.u32 %v6259_v46, %v4787_v8  ;;  %v4502_v30 = vor.u32 %v6187_v19, %v4499_v21  ;;  %v3247_v46 = vpop.f32.mrf.mxu1  ;;  %v4694_v19 = vor.u32 %v6235_v1, %v4691_v2  ;;  %v5363_v21 = vld [vmem:[#allocation8 + $0x7f8] sm:$0xf0] }
 0x201   :  { %v6287_v23 = vld [vmem:[#allocation8 + $0x434] sm:$0xf0] }
 0x202   :  { %v5137_v26 = vld [vmem:[#allocation8 + $0x618] sm:$0xf]  ;;  %v4882_v33 = vor.u32 %v6287_v23, %v4881_v22  ;;  %3491 = vmatpush.bf16.msrb.mxu3 %v5842_v32  ;;  %v6251_v23 = vld [vmem:[#allocation8 + $0x31c] sm:$0xf] }
 0x203   :  { %v6351_v28 = vld [vmem:[#allocation8 + $0x634] sm:$0xf0] }
 0x204   :  { %v5553_v36 = vld [vmem:[#allocation8 + $0x958] sm:$0xf]  ;;  %v5138_v41 = vor.u32 %v6351_v28, %v5137_v26  ;;  %3455 = vmatpush.bf16.msrb.mxu0 %v4882_v33  ;;  %v4755_v26 = vld [vmem:[#allocation8 + $0x338] sm:$0xf0] }
 0x205   :  { %v6455_v40 = vld [vmem:[#allocation8 + $0x974] sm:$0xf0]  ;;  %v4758_v32 = vor.u32 %v6251_v23, %v4755_v26  ;;  %v6179_v33 = vld [vmem:[#allocation8 + $0xdc] sm:$0xf] }
 0x206   :  { %v5809_v39 = vld [vmem:[#allocation8 + $0xb58] sm:$0xf]  ;;  %v5554_v49 = vor.u32 %v6455_v40, %v5553_v36  ;;  %3469 = vmatpush.bf16.msrb.mxu1 %v5138_v41  ;;  %v4467_v36 = vld [vmem:[#allocation8 + $0xf8] sm:$0xf0] }
 0x207   :  { %v6519_v42 = vld [vmem:[#allocation8 + $0xb74] sm:$0xf0]  ;;  %3456 = vmatmul.bf16.vlgmr.msrb.gmra.mxu0 %v7096_v6  ;;  %v6243_v41 = vld [vmem:[#allocation8 + $0x2dc] sm:$0xf]  ;;  %v4470_v50 = vor.u32 %v6179_v33, %v4467_v36 }
 0x208   :  { %v5810_v53 = vor.u32 %v6519_v42, %v5809_v39  ;;  %v5521_v54 = vld [vmem:[#allocation8 + $0x918] sm:$0xf]  ;;  %3504 = vmatpush.bf16.msra.mxu0 %v4598_v38  ;;  %3478 = vmatpush.bf16.msrb.mxu2 %v5554_v49  ;;  %v4723_v38 = vld [vmem:[#allocation8 + $0x2f8] sm:$0xf0]  ;;  %v3205_v39 = vpop.f32.mrf.mxu2  ;;  %v3219_v49 = vpop.f32.mrf.mxu3 }
 0x209   :  { %v6447_v55 = vld [vmem:[#allocation8 + $0x934] sm:$0xf0]  ;;  %3470 = vmatmul.bf16.vlgmr.msrb.gmra.mxu1 %v7098_v10  ;;  %v3206_v18 = vadd.f32 %v3205_v39, %v7175_v51  ;;  %v4403_v23 = vld [vmem:[#allocation8 + $0x78] sm:$0xf0] }
 0x20a   :  { %v5777_v58 = vld [vmem:[#allocation8 + $0xb18] sm:$0xf]  ;;  %3518 = vmatpush.bf16.msra.mxu1 %v4854_v44  ;;  %v5522_v7 = vor.u32 %v6447_v55, %v5521_v54  ;;  %3492 = vmatpush.bf16.msrb.mxu3 %v5810_v53  ;;  %v3233_v54 = vpop.f32.mrf.mxu0  ;;  %v4726_v55 = vor.u32 %v6243_v41, %v4723_v38  ;;  %v5075_v38 = vld [vmem:[#allocation8 + $0x5b8] sm:$0xf0] }
 0x20b   :  { %v6511_v59 = vld [vmem:[#allocation8 + $0xb34] sm:$0xf0]  ;;  %v6395_v39 = vld [vmem:[#allocation8 + $0x79c] sm:$0xf] }
 0x20c   :  { %v5778_v9 = vor.u32 %v6511_v59, %v5777_v58  ;;  %v5489_v11 = vld [vmem:[#allocation8 + $0x8d8] sm:$0xf]  ;;  %3505 = vmatpush.bf16.msra.mxu0 %v4566_v57  ;;  %3479 = vmatpush.bf16.msrb.mxu2 %v5522_v7  ;;  %v6171_v57 = vld [vmem:[#allocation8 + $0x9c] sm:$0xf]  ;;  %v3220_v59 = vadd.f32 %v3219_v49, %v3206_v18 }
 0x20d   :  { %v6439_v13 = vld [vmem:[#allocation8 + $0x8f4] sm:$0xf0]  ;;  %v4435_v58 = vld [vmem:[#allocation8 + $0xb8] sm:$0xf0] }
 0x20e   :  { %v5745_v15 = vld [vmem:[#allocation8 + $0xad8] sm:$0xf]  ;;  %3519 = vmatpush.bf16.msra.mxu1 %v4822_v63  ;;  %v5490_v22 = vor.u32 %v6439_v13, %v5489_v11  ;;  %3493 = vmatpush.bf16.msrb.mxu3 %v5778_v9  ;;  %v3234_v13 = vadd.f32 %v3233_v54, %v3220_v59  ;;  %v6155_v18 = vld [vmem:[#allocation8 + $0x1c] sm:$0xf] }
 0x20f   :  { %v6503_v16 = vld [vmem:[#allocation8 + $0xaf4] sm:$0xf0]  ;;  %v4371_v49 = vld [vmem:[#allocation8 + $0x38] sm:$0xf0] }
 0x210   :  { %v5746_v28 = vor.u32 %v6503_v16, %v5745_v15  ;;  %v5457_v25 = vld [vmem:[#allocation8 + $0x898] sm:$0xf]  ;;  %3506 = vmatpush.bf16.msra.mxu0 %v4534_v14  ;;  %3480 = vmatpush.bf16.msrb.mxu2 %v5490_v22  ;;  %v4438_v14 = vor.u32 %v6171_v57, %v4435_v58  ;;  %v6339_v15 = vld [vmem:[#allocation8 + $0x5dc] sm:$0xf]  ;;  %v7191_v26 = vadd.f32 %v3247_v46, %v3234_v13 }
 0x211   :  { %v6431_v29 = vld [vmem:[#allocation8 + $0x8b4] sm:$0xf0]  ;;  %v5107_v16 = vld [vmem:[#allocation8 + $0x5f8] sm:$0xf0]  ;;  %v4374_v2 = vor.u32 %v6155_v18, %v4371_v49 }
 0x212   :  { %v5713_v31 = vld [vmem:[#allocation8 + $0xa98] sm:$0xf]  ;;  %3520 = vmatpush.bf16.msra.mxu1 %v4790_v17  ;;  %v5458_v40 = vor.u32 %v6431_v29, %v5457_v25  ;;  %3494 = vmatpush.bf16.msrb.mxu3 %v5746_v28  ;;  %v6403_v17 = vld [vmem:[#allocation8 + $0x7dc] sm:$0xf]  ;;  %v3589_v33 = vmax.f32 %v7161_v24, %v7191_v26  ;;  %v3235_v57 = vpop.f32.mrf.mxu0 }
 0x213   :  { %v6495_v60 = vld [vmem:[#allocation8 + $0xab4] sm:$0xf0]  ;;  %v6163_v22 = vld [vmem:[#allocation8 + $0x5c] sm:$0xf] }
 0x214   :  { %v5714_v42 = vor.u32 %v6495_v60, %v5713_v31  ;;  %v5425_v44 = vld [vmem:[#allocation8 + $0x858] sm:$0xf]  ;;  %3507 = vmatpush.bf16.msra.mxu0 %v4502_v30  ;;  %3481 = vmatpush.bf16.msrb.mxu2 %v5458_v40  ;;  %v6227_v25 = vld [vmem:[#allocation8 + $0x25c] sm:$0xf]  ;;  %v3207_v30 = vpop.f32.mrf.mxu2  ;;  %v5110_v60 = vor.u32 %v6339_v15, %v5107_v16  ;;  %v5366_v40 = vor.u32 %v6403_v17, %v5363_v21 }
 0x215   :  { %v6423_v45 = vld [vmem:[#allocation8 + $0x874] sm:$0xf0]  ;;  %v4659_v29 = vld [vmem:[#allocation8 + $0x278] sm:$0xf0]  ;;  %v3208_v36 = vadd.f32 %v3207_v30, %v7182_v20  ;;  %v4406_v41 = vor.u32 %v6163_v22, %v4403_v23 }
 0x216   :  { %v5681_v56 = vld [vmem:[#allocation8 + $0xa58] sm:$0xf]  ;;  %3521 = vmatpush.bf16.msra.mxu1 %v4758_v32  ;;  %v5426_v63 = vor.u32 %v6423_v45, %v5425_v44  ;;  %3495 = vmatpush.bf16.msrb.mxu3 %v5714_v42  ;;  %v6331_v32 = vld [vmem:[#allocation8 + $0x59c] sm:$0xf]  ;;  %v3221_v44 = vpop.f32.mrf.mxu3  ;;  %v4662_v45 = vor.u32 %v6227_v25, %v4659_v29 }
 0x217   :  { %v6487_v53 = vld [vmem:[#allocation8 + $0xa74] sm:$0xf0]  ;;  %v5331_v42 = vld [vmem:[#allocation8 + $0x7b8] sm:$0xf0]  ;;  %v5078_v20 = vor.u32 %v6331_v32, %v5075_v38 }
 0x218   :  { %v5393_v7 = vld [vmem:[#allocation8 + $0x818] sm:$0xf]  ;;  %v5682_v8 = vor.u32 %v6487_v53, %v5681_v56  ;;  %3508 = vmatpush.bf16.msra.mxu0 %v4470_v50  ;;  %3482 = vmatpush.bf16.msrb.mxu2 %v5426_v63  ;;  %v6219_v50 = vld [vmem:[#allocation8 + $0x21c] sm:$0xf]  ;;  %v3222_v56 = vadd.f32 %v3221_v44, %v3208_v36  ;;  %v5334_v1 = vor.u32 %v6395_v39, %v5331_v42 }
 0x219   :  { %v6415_v51 = vld [vmem:[#allocation8 + $0x834] sm:$0xf0]  ;;  %v4627_v53 = vld [vmem:[#allocation8 + $0x238] sm:$0xf0] }
 0x21a   :  { %v5649_v9 = vld [vmem:[#allocation8 + $0xa18] sm:$0xf]  ;;  %3522 = vmatpush.bf16.msra.mxu1 %v4726_v55  ;;  %v5394_v28 = vor.u32 %v6415_v51, %v5393_v7  ;;  %3496 = vmatpush.bf16.msrb.mxu3 %v5682_v8  ;;  %v6467_v54 = vld [vmem:[#allocation8 + $0x9dc] sm:$0xf]  ;;  %v3236_v63 = vadd.f32 %v3235_v57, %v3222_v56  ;;  %v3249_v8 = vpop.f32.mrf.mxu1  ;;  %v4630_v51 = vor.u32 %v6219_v50, %v4627_v53 }
 0x21b   :  { %v6479_v11 = vld [vmem:[#allocation8 + $0xa34] sm:$0xf0]  ;;  %v5619_v55 = vld [vmem:[#allocation8 + $0x9f8] sm:$0xf0] }
 0x21c   :  { %v5650_v31 = vor.u32 %v6479_v11, %v5649_v9  ;;  %3509 = vmatpush.bf16.msra.mxu0 %v4438_v14  ;;  %3483 = vmatpush.bf16.msrb.mxu2 %v5394_v28  ;;  %v6531_v58 = vld [vmem:[#allocation8 + $0xbdc] sm:$0xf]  ;;  %v5622_v9 = vor.u32 %v6467_v54, %v5619_v55  ;;  %v7197_v14 = vadd.f32 %v3249_v8, %v3236_v63 }
 0x21d   :  { %v5875_v59 = vld [vmem:[#allocation8 + $0xbf8] sm:$0xf0] }
 0x21e   :  { %3523 = vmatpush.bf16.msra.mxu1 %v4694_v19  ;;  %3497 = vmatpush.bf16.msrb.mxu3 %v5650_v31  ;;  %v6323_v7 = vld [vmem:[#allocation8 + $0x55c] sm:$0xf]  ;;  %v5878_v15 = vor.u32 %v6531_v58, %v5875_v59  ;;  %v3591_v23 = vmax.f32 %v7164_v61, %v7197_v14  ;;  %v6580_v61 = vld [vmem:[#allocation14 + $0x60] sm:$0xff]  ;;  %v6573_v14 = vld [vmem:[#allocation14 + $0x28] sm:$0xff] }
 0x21f   :  { %v5043_v46 = vld [vmem:[#allocation8 + $0x578] sm:$0xf0]  ;;  %3484 = vmatmul.bf16.vlgmr.msrb.gmra.mxu2 %v7106_v34 }
 0x220   :  { %3532 = vmatpush.bf16.msra.mxu2 %v5110_v60  ;;  %3510 = vmatpush.bf16.msra.mxu0 %v4406_v41  ;;  %v6387_v11 = vld [vmem:[#allocation8 + $0x75c] sm:$0xf]  ;;  %v5046_v19 = vor.u32 %v6323_v7, %v5043_v46 }
 0x221   :  { %v5299_v13 = vld [vmem:[#allocation8 + $0x778] sm:$0xf0]  ;;  %3498 = vmatmul.bf16.vlgmr.msrb.gmra.mxu3 %v7108_v37 }
 0x222   :  { %3546 = vmatpush.bf16.msra.mxu3 %v5366_v40  ;;  %3524 = vmatpush.bf16.msra.mxu1 %v4662_v45  ;;  %v6459_v16 = vld [vmem:[#allocation8 + $0x99c] sm:$0xf]  ;;  %v5302_v28 = vor.u32 %v6387_v11, %v5299_v13  ;;  %v3261_v11 = vpop.f32.mrf.mxu2 }
 0x223   :  { %v5587_v17 = vld [vmem:[#allocation8 + $0x9b8] sm:$0xf0] }
 0x224   :  { %3533 = vmatpush.bf16.msra.mxu2 %v5078_v20  ;;  %v6523_v21 = vld [vmem:[#allocation8 + $0xb9c] sm:$0xf]  ;;  %3511 = vmatpush.bf16.msra.mxu0 %v4374_v2  ;;  %v5590_v30 = vor.u32 %v6459_v16, %v5587_v17  ;;  %v3275_v17 = vpop.f32.mrf.mxu3 }
 0x225   :  { %v5843_v22 = vld [vmem:[#allocation8 + $0xbb8] sm:$0xf0] }
 0x226   :  { %3547 = vmatpush.bf16.msra.mxu3 %v5334_v1  ;;  %v6315_v25 = vld [vmem:[#allocation8 + $0x51c] sm:$0xf]  ;;  %3525 = vmatpush.bf16.msra.mxu1 %v4630_v51  ;;  %v5846_v32 = vor.u32 %v6523_v21, %v5843_v22 }
 0x227   :  { %v5011_v29 = vld [vmem:[#allocation8 + $0x538] sm:$0xf0]  ;;  %3512 = vmatmul.bf16.vlgmr.msra.gmra.mxu0 %v7090_v48 }
 0x228   :  { %3560 = vmatpush.bf16.msrb.mxu0 %v5622_v9  ;;  %v6379_v31 = vld [vmem:[#allocation8 + $0x71c] sm:$0xf]  ;;  %3534 = vmatpush.bf16.msra.mxu2 %v5046_v19  ;;  %v5014_v41 = vor.u32 %v6315_v25, %v5011_v29 }
 0x229   :  { %v5267_v60 = vld [vmem:[#allocation8 + $0x738] sm:$0xf0]  ;;  %3526 = vmatmul.bf16.vlgmr.msra.gmra.mxu1 %v7092_v52 }
 0x22a   :  { %3574 = vmatpush.bf16.msrb.mxu1 %v5878_v15  ;;  %v6451_v36 = vld [vmem:[#allocation8 + $0x95c] sm:$0xf]  ;;  %3548 = vmatpush.bf16.msra.mxu3 %v5302_v28  ;;  %v5270_v42 = vor.u32 %v6379_v31, %v5267_v60  ;;  %v7204_v28 = vadd.f32 %v3275_v17, %v3261_v11 }
 0x22b   :  { %v5555_v40 = vld [vmem:[#allocation8 + $0x978] sm:$0xf0] }
 0x22c   :  { %v6515_v38 = vld [vmem:[#allocation8 + $0xb5c] sm:$0xf]  ;;  %3561 = vmatpush.bf16.msrb.mxu0 %v5590_v30  ;;  %v5558_v18 = vor.u32 %v6451_v36, %v5555_v40  ;;  %3535 = vmatpush.bf16.msra.mxu2 %v5014_v41  ;;  %v7220_v11 = vpop.f32.mrf.mxu3 }
 0x22d   :  { %v5811_v39 = vld [vmem:[#allocation8 + $0xb78] sm:$0xf0] }
 0x22e   :  { %v6307_v44 = vld [vmem:[#allocation8 + $0x4dc] sm:$0xf]  ;;  %3575 = vmatpush.bf16.msrb.mxu1 %v5846_v32  ;;  %v5814_v56 = vor.u32 %v6515_v38, %v5811_v39  ;;  %3549 = vmatpush.bf16.msra.mxu3 %v5270_v42 }
 0x22f   :  { %v4979_v45 = vld [vmem:[#allocation8 + $0x4f8] sm:$0xf0] }
 0x230   :  { %v6371_v49 = vld [vmem:[#allocation8 + $0x6dc] sm:$0xf]  ;;  %v4982_v48 = vor.u32 %v6307_v44, %v4979_v45  ;;  %3562 = vmatpush.bf16.msrb.mxu0 %v5558_v18 }
 0x231   :  { %v5235_v50 = vld [vmem:[#allocation8 + $0x6f8] sm:$0xf0] }
 0x232   :  { %v6443_v53 = vld [vmem:[#allocation8 + $0x91c] sm:$0xf]  ;;  %v5238_v20 = vor.u32 %v6371_v49, %v5235_v50  ;;  %3576 = vmatpush.bf16.msrb.mxu1 %v5814_v56  ;;  %3536 = vmatpush.bf16.msra.mxu2 %v4982_v48 }
 0x233   :  { %v5523_v54 = vld [vmem:[#allocation8 + $0x938] sm:$0xf0] }
 0x234   :  { %v6507_v55 = vld [vmem:[#allocation8 + $0xb1c] sm:$0xf]  ;;  %v5526_v59 = vor.u32 %v6443_v53, %v5523_v54  ;;  %3550 = vmatpush.bf16.msra.mxu3 %v5238_v20  ;;  %v7206_v20 = vpop.f32.mrf.mxu0 }
 0x235   :  { %v5779_v57 = vld [vmem:[#allocation8 + $0xb38] sm:$0xf0] }
 0x236   :  { %v6299_v58 = vld [vmem:[#allocation8 + $0x49c] sm:$0xf]  ;;  %v5782_v2 = vor.u32 %v6507_v55, %v5779_v57  ;;  %3563 = vmatpush.bf16.msrb.mxu0 %v5526_v59  ;;  %v7208_v59 = vpop.f32.mrf.mxu1 }
 0x237   :  { %v4947_v52 = vld [vmem:[#allocation8 + $0x4b8] sm:$0xf0] }
 0x238   :  { %v6363_v63 = vld [vmem:[#allocation8 + $0x69c] sm:$0xf]  ;;  %v4950_v8 = vor.u32 %v6299_v58, %v4947_v52  ;;  %3577 = vmatpush.bf16.msrb.mxu1 %v5782_v2 }
 0x239   :  { %v5203_v1 = vld [vmem:[#allocation8 + $0x6b8] sm:$0xf0] }
 0x23a   :  { %v6435_v7 = vld [vmem:[#allocation8 + $0x8dc] sm:$0xf]  ;;  %v5206_v13 = vor.u32 %v6363_v63, %v5203_v1  ;;  %3537 = vmatpush.bf16.msra.mxu2 %v4950_v8 }
 0x23b   :  { %v5491_v46 = vld [vmem:[#allocation8 + $0x8f8] sm:$0xf0] }
 0x23c   :  { %v6499_v51 = vld [vmem:[#allocation8 + $0xadc] sm:$0xf]  ;;  %v5494_v19 = vor.u32 %v6435_v7, %v5491_v46  ;;  %3551 = vmatpush.bf16.msra.mxu3 %v5206_v13  ;;  %v7213_v2 = vpop.f32.mrf.mxu0 }
 0x23d   :  { %v5747_v9 = vld [vmem:[#allocation8 + $0xaf8] sm:$0xf0] }
 0x23e   :  { %v6291_v15 = vld [vmem:[#allocation8 + $0x45c] sm:$0xf]  ;;  %v5750_v25 = vor.u32 %v6499_v51, %v5747_v9  ;;  %3564 = vmatpush.bf16.msrb.mxu0 %v5494_v19  ;;  %v7216_v7 = vpop.f32.mrf.mxu1  ;;  %v7218_v9 = vpop.f32.mrf.mxu2  ;;  %v5937_v19 = vld [vmem:[#allocation11 + $0x70] sm:$0xf] }
 0x23f   :  { %v4915_v16 = vld [vmem:[#allocation8 + $0x478] sm:$0xf0] }
 0x240   :  { %v6355_v21 = vld [vmem:[#allocation8 + $0x65c] sm:$0xf]  ;;  %v4918_v31 = vor.u32 %v6291_v15, %v4915_v16  ;;  %3578 = vmatpush.bf16.msrb.mxu1 %v5750_v25 }
 0x241   :  { %v5171_v22 = vld [vmem:[#allocation8 + $0x678] sm:$0xf0] }
 0x242   :  { %v6427_v29 = vld [vmem:[#allocation8 + $0x89c] sm:$0xf]  ;;  %v5174_v36 = vor.u32 %v6355_v21, %v5171_v22  ;;  %3538 = vmatpush.bf16.msra.mxu2 %v4918_v31  ;;  %v6550_v22 = vld [vmem:[#allocation11 + $0x74] sm:$0xf] }
 0x243   :  { %v5459_v30 = vld [vmem:[#allocation8 + $0x8b8] sm:$0xf0] }
 0x244   :  { %v6491_v60 = vld [vmem:[#allocation8 + $0xa9c] sm:$0xf]  ;;  %v5462_v38 = vor.u32 %v6427_v29, %v5459_v30  ;;  %3552 = vmatpush.bf16.msra.mxu3 %v5174_v36  ;;  %v3345_v46 = vpop.f32.mrf.mxu0  ;;  %v6548_v36 = vld [vmem:[#allocation11 + $0x64] sm:$0xf] }
 0x245   :  { %v5715_v32 = vld [vmem:[#allocation8 + $0xab8] sm:$0xf0] }
 0x246   :  { %v6283_v40 = vld [vmem:[#allocation8 + $0x41c] sm:$0xf]  ;;  %v5718_v44 = vor.u32 %v6491_v60, %v5715_v32  ;;  %3565 = vmatpush.bf16.msrb.mxu0 %v5462_v38  ;;  %v3359_v8 = vpop.f32.mrf.mxu1  ;;  %v5929_v60 = vld [vmem:[#allocation11 + $0x60] sm:$0xf]  ;;  %v6549_v32 = vld [vmem:[#allocation11 + $0x64] sm:$0xf0] }
 0x247   :  { %v4883_v41 = vld [vmem:[#allocation8 + $0x438] sm:$0xf0]  ;;  %v3360_v51 = vadd.f32 %v3359_v8, %v3345_v46  ;;  %v5905_v46 = vld [vmem:[#allocation11 + $0x30] sm:$0xf] }
 0x248   :  { %v6347_v39 = vld [vmem:[#allocation8 + $0x61c] sm:$0xf]  ;;  %v4886_v49 = vor.u32 %v6283_v40, %v4883_v41  ;;  %3579 = vmatpush.bf16.msrb.mxu1 %v5718_v44  ;;  %v5930_v40 = vor.u32 %v6549_v32, %v5929_v60  ;;  %v5931_v41 = vld [vmem:[#allocation11 + $0x68] sm:$0xf0] }
 0x249   :  { %v5139_v42 = vld [vmem:[#allocation8 + $0x638] sm:$0xf0]  ;;  %v5934_v38 = vor.u32 %v6548_v36, %v5931_v41  ;;  %v5899_v32 = vld [vmem:[#allocation11 + $0x28] sm:$0xf0] }
 0x24a   :  { %v6419_v45 = vld [vmem:[#allocation8 + $0x85c] sm:$0xf]  ;;  %v5142_v53 = vor.u32 %v6347_v39, %v5139_v42  ;;  %3539 = vmatpush.bf16.msra.mxu2 %v4886_v49  ;;  %v5921_v42 = vld [vmem:[#allocation11 + $0x50] sm:$0xf] }
 0x24b   :  { %v5427_v18 = vld [vmem:[#allocation8 + $0x878] sm:$0xf0] }
 0x24c   :  { %v6483_v50 = vld [vmem:[#allocation8 + $0xa5c] sm:$0xf]  ;;  %v5430_v54 = vor.u32 %v6419_v45, %v5427_v18  ;;  %3553 = vmatpush.bf16.msra.mxu3 %v5142_v53  ;;  %v7232_v31 = vpop.f32.mrf.mxu0  ;;  %v6546_v45 = vld [vmem:[#allocation11 + $0x54] sm:$0xf] }
 0x24d   :  { %v5683_v56 = vld [vmem:[#allocation8 + $0xa78] sm:$0xf0]  ;;  %3540 = vmatmul.bf16.vlgmr.msra.gmra.mxu2 %v7096_v6  ;;  %v7222_v6 = vpop.f32.mrf.mxu2 }
 0x24e   :  { %v5686_v48 = vor.u32 %v6483_v50, %v5683_v56  ;;  %v6411_v55 = vld [vmem:[#allocation8 + $0x81c] sm:$0xf]  ;;  %3566 = vmatpush.bf16.msrb.mxu0 %v5430_v54  ;;  %v7234_v39 = vpop.f32.mrf.mxu1 }
 0x24f   :  { %v5395_v57 = vld [vmem:[#allocation8 + $0x838] sm:$0xf0]  ;;  %3554 = vmatmul.bf16.vlgmr.msra.gmra.mxu3 %v7098_v10  ;;  %v7224_v10 = vpop.f32.mrf.mxu3 }
 0x250   :  { %v6475_v58 = vld [vmem:[#allocation8 + $0xa1c] sm:$0xf]  ;;  %v5398_v63 = vor.u32 %v6411_v55, %v5395_v57  ;;  %3580 = vmatpush.bf16.msrb.mxu1 %v5686_v48  ;;  %v5913_v48 = vld [vmem:[#allocation11 + $0x40] sm:$0xf]  ;;  %v6545_v55 = vld [vmem:[#allocation11 + $0x44] sm:$0xf0] }
 0x251   :  { %v5651_v52 = vld [vmem:[#allocation8 + $0xa38] sm:$0xf0]  ;;  %v5914_v57 = vor.u32 %v6545_v55, %v5913_v48  ;;  %v6536_v48 = vld [vmem:[#allocation11 + $0x4] sm:$0xf]  ;;  %v5883_v55 = vld [vmem:[#allocation11 + $0x8] sm:$0xf0] }
 0x252   :  { %v5654_v1 = vor.u32 %v6475_v58, %v5651_v52  ;;  %3567 = vmatpush.bf16.msrb.mxu0 %v5398_v63  ;;  %v6551_v21 = vld [vmem:[#allocation11 + $0x74] sm:$0xf0]  ;;  %v5939_v29 = vld [vmem:[#allocation11 + $0x78] sm:$0xf0]  ;;  %v6544_v58 = vld [vmem:[#allocation11 + $0x44] sm:$0xf] }
 0x253   :  { %v5938_v25 = vor.u32 %v6551_v21, %v5937_v19  ;;  %v5942_v30 = vor.u32 %v6550_v22, %v5939_v29  ;;  %v6547_v44 = vld [vmem:[#allocation11 + $0x54] sm:$0xf0]  ;;  %v5923_v49 = vld [vmem:[#allocation11 + $0x58] sm:$0xf0]  ;;  %v5915_v52 = vld [vmem:[#allocation11 + $0x48] sm:$0xf0] }
 0x254   :  { %3581 = vmatpush.bf16.msrb.mxu1 %v5654_v1  ;;  %v5922_v18 = vor.u32 %v6547_v44, %v5921_v42  ;;  %v5926_v50 = vor.u32 %v6546_v45, %v5923_v49  ;;  %v5918_v63 = vor.u32 %v6544_v58, %v5915_v52  ;;  %v6543_v8 = vld [vmem:[#allocation11 + $0x34] sm:$0xf0]  ;;  %v5897_v22 = vld [vmem:[#allocation11 + $0x20] sm:$0xf]  ;;  %v6540_v29 = vld [vmem:[#allocation11 + $0x24] sm:$0xf]  ;;  %v5886_v52 = vor.u32 %v6536_v48, %v5883_v55 }
 0x255   :  { %3568 = vmatmul.bf16.vlgmr.msrb.gmra.mxu0 %v7106_v34  ;;  %v7226_v13 = vpop.f32.mrf.mxu2  ;;  %3814 = vmatpush.bf16.msrb.mxu2 %v5938_v25  ;;  %v6541_v25 = vld [vmem:[#allocation11 + $0x24] sm:$0xf0]  ;;  %v5902_v36 = vor.u32 %v6540_v29, %v5899_v32  ;;  %v6539_v41 = vld [vmem:[#allocation11 + $0x14] sm:$0xf0]  ;;  %v5891_v45 = vld [vmem:[#allocation11 + $0x18] sm:$0xf0]  ;;  %v2942_v29 = vadd.f32 %v7140_v3, %v7138_v62 }
 0x256   :  { %3842 = vmatpush.bf16.msra.mxu0 %v5942_v30  ;;  %v5898_v60 = vor.u32 %v6541_v25, %v5897_v22  ;;  %v6537_v49 = vld [vmem:[#allocation11 + $0x4] sm:$0xf0]  ;;  %v6567_v22 = vld [vmem:[#allocation11 + $0xf4] sm:$0xf0]  ;;  %v6566_v25 = vld [vmem:[#allocation11 + $0xf4] sm:$0xf] }
 0x257   :  { %3582 = vmatmul.bf16.vlgmr.msrb.gmra.mxu1 %v7108_v37  ;;  %v7228_v34 = vpop.f32.mrf.mxu3  ;;  %v6003_v32 = vld [vmem:[#allocation11 + $0xf8] sm:$0xf0]  ;;  %v2956_v62 = vadd.f32 %v7130_v0, %v2942_v29  ;;  %v6561_v29 = vld [vmem:[#allocation11 + $0xc4] sm:$0xf0] }
 0x259   :  { %3815 = vmatpush.bf16.msrb.mxu2 %v5930_v40  ;;  %v5889_v40 = vld [vmem:[#allocation11 + $0x10] sm:$0xf] }
 0x25a   :  { %3843 = vmatpush.bf16.msra.mxu0 %v5934_v38  ;;  %v6538_v38 = vld [vmem:[#allocation11 + $0x14] sm:$0xf]  ;;  %v5890_v44 = vor.u32 %v6539_v41, %v5889_v40 }
 0x25d   :  { %v3373_v15 = vpop.f32.mrf.mxu2  ;;  %v7236_v56 = vpop.f32.mrf.mxu0  ;;  %3816 = vmatpush.bf16.msrb.mxu2 %v5922_v18  ;;  %v5881_v18 = vld [vmem:[#allocation11] sm:$0xf] }
 0x25e   :  { %v3374_v16 = vadd.f32 %v3373_v15, %v3360_v51  ;;  %3844 = vmatpush.bf16.msra.mxu0 %v5926_v50  ;;  %v6542_v51 = vld [vmem:[#allocation11 + $0x34] sm:$0xf]  ;;  %v5906_v15 = vor.u32 %v6543_v8, %v5905_v46  ;;  %v5894_v50 = vor.u32 %v6538_v38, %v5891_v45  ;;  %v3290_v8 = vadd.f32 %v7206_v20, %v7204_v28  ;;  %v5993_v38 = vld [vmem:[#allocation11 + $0xe0] sm:$0xf]  ;;  %v6564_v45 = vld [vmem:[#allocation11 + $0xe4] sm:$0xf] }
 0x25f   :  { %v3387_v37 = vpop.f32.mrf.mxu3  ;;  %v7242_v1 = vpop.f32.mrf.mxu1 }
 0x260   :  { %v7230_v17 = vadd.f32 %v3387_v37, %v3374_v16  ;;  %v5907_v16 = vld [vmem:[#allocation11 + $0x38] sm:$0xf0] }
 0x261   :  { %3817 = vmatpush.bf16.msrb.mxu2 %v5914_v57  ;;  %v5910_v37 = vor.u32 %v6542_v51, %v5907_v16  ;;  %v5882_v57 = vor.u32 %v6537_v49, %v5881_v18 }
 0x262   :  { %3845 = vmatpush.bf16.msra.mxu0 %v5918_v63 }
 0x265   :  { %v7238_v53 = vpop.f32.mrf.mxu2  ;;  %3818 = vmatpush.bf16.msrb.mxu2 %v5906_v15  ;;  %v7244_v30 = vpop.f32.mrf.mxu0 }
 0x266   :  { %3846 = vmatpush.bf16.msra.mxu0 %v5910_v37  ;;  %v6001_v37 = vld [vmem:[#allocation11 + $0xf0] sm:$0xf] }
 0x267   :  { %v7240_v54 = vpop.f32.mrf.mxu3  ;;  %v7246_v42 = vpop.f32.mrf.mxu1 }
 0x269   :  { %3819 = vmatpush.bf16.msrb.mxu2 %v5898_v60  ;;  %v6002_v60 = vor.u32 %v6567_v22, %v6001_v37 }
 0x26a   :  { %3847 = vmatpush.bf16.msra.mxu0 %v5902_v36  ;;  %v6006_v36 = vor.u32 %v6566_v25, %v6003_v32  ;;  %v7266_v25 = vld [vmem:[#allocation10] sm:$0x3]  ;;  %v5979_v32 = vld [vmem:[#allocation11 + $0xc8] sm:$0xf0] }
 0x26b   :  { %3828 = vmatpush.bf16.msrb.mxu3 %v6002_v60  ;;  %v6560_v60 = vld [vmem:[#allocation11 + $0xc4] sm:$0xf] }
 0x26c   :  { %3856 = vmatpush.bf16.msra.mxu1 %v6006_v36 }
 0x26d   :  { %3820 = vmatpush.bf16.msrb.mxu2 %v5890_v44  ;;  %v6565_v44 = vld [vmem:[#allocation11 + $0xe4] sm:$0xf0] }
 0x26e   :  { %3848 = vmatpush.bf16.msra.mxu0 %v5894_v50 }
 0x271   :  { %3821 = vmatpush.bf16.msrb.mxu2 %v5882_v57  ;;  %v5985_v57 = vld [vmem:[#allocation11 + $0xd0] sm:$0xf] }
 0x272   :  { %3849 = vmatpush.bf16.msra.mxu0 %v5886_v52  ;;  %v6562_v52 = vld [vmem:[#allocation11 + $0xd4] sm:$0xf] }
 0x27b   :  { %v3429_v19 = vpop.f32.mrf.mxu2 }
 0x27d   :  { %v3443_v21 = vpop.f32.mrf.mxu3 }
 0x27e   :  { %v3444_v58 = vadd.f32 %v3443_v21, %v3429_v19  ;;  %v3304_v19 = vadd.f32 %v7208_v59, %v3290_v8  ;;  %v3278_v21 = vadd.f32 %v7220_v11, %v7218_v9  ;;  %v5994_v9 = vor.u32 %v6565_v44, %v5993_v38  ;;  %v5995_v11 = vld [vmem:[#allocation11 + $0xe8] sm:$0xf0]  ;;  %v5987_v8 = vld [vmem:[#allocation11 + $0xd8] sm:$0xf0] }
 0x27f   :  { %v5998_v50 = vor.u32 %v6564_v45, %v5995_v11  ;;  %v6556_v11 = vld [vmem:[#allocation11 + $0xa4] sm:$0xf] }
 0x280   :  { %v3318_v28 = vadd.f32 %v7222_v6, %v3304_v19  ;;  %v3292_v3 = vadd.f32 %v7213_v2, %v3278_v21  ;;  %3829 = vmatpush.bf16.msrb.mxu3 %v5994_v9 }
 0x281   :  { %3857 = vmatpush.bf16.msra.mxu1 %v5998_v50 }
 0x282   :  { %v3332_v6 = vadd.f32 %v7224_v10, %v3318_v28  ;;  %v3306_v0 = vadd.f32 %v7216_v7, %v3292_v3  ;;  %v5977_v7 = vld [vmem:[#allocation11 + $0xc0] sm:$0xf] }
 0x283   :  { %v3431_v46 = vpop.f32.mrf.mxu2  ;;  %v5978_v21 = vor.u32 %v6561_v29, %v5977_v7 }
 0x284   :  { %v3457_v63 = vpop.f32.mrf.mxu0  ;;  %v3320_v10 = vadd.f32 %v7226_v13, %v3306_v0  ;;  %v5982_v13 = vor.u32 %v6560_v60, %v5979_v32  ;;  %v6553_v0 = vld [vmem:[#allocation11 + $0x84] sm:$0xf0] }
 0x285   :  { %v3445_v51 = vpop.f32.mrf.mxu3  ;;  %v3458_v15 = vadd.f32 %v3457_v63, %v3444_v58  ;;  %v6563_v58 = vld [vmem:[#allocation11 + $0xd4] sm:$0xf0]  ;;  %v2970_v63 = vadd.f32 %v7132_v5, %v2956_v62  ;;  %v5971_v62 = vld [vmem:[#allocation11 + $0xb8] sm:$0xf0] }
 0x286   :  { %v3471_v16 = vpop.f32.mrf.mxu1  ;;  %v3446_v40 = vadd.f32 %v3445_v51, %v3431_v46  ;;  %v5986_v46 = vor.u32 %v6563_v58, %v5985_v57  ;;  %v3334_v43 = vadd.f32 %v7228_v34, %v3320_v10  ;;  %v6557_v34 = vld [vmem:[#allocation11 + $0xa4] sm:$0xf0]  ;;  %v6554_v57 = vld [vmem:[#allocation11 + $0x94] sm:$0xf] }
 0x287   :  { %v3472_v20 = vadd.f32 %v3471_v16, %v3458_v15  ;;  %v5990_v15 = vor.u32 %v6562_v52, %v5987_v8  ;;  %v2984_v16 = vadd.f32 %v7151_v4, %v2970_v63  ;;  %v3602_v4 = vperm.slane %v7266_v25, 0  ;;  %v5955_v52 = vld [vmem:[#allocation11 + $0x98] sm:$0xf0]  ;;  %v5945_v63 = vld [vmem:[#allocation11 + $0x80] sm:$0xf] }
 0x288   :  { %3830 = vmatpush.bf16.msrb.mxu3 %v5986_v46  ;;  %v6552_v46 = vld [vmem:[#allocation11 + $0x84] sm:$0xf]  ;;  %v5947_v8 = vld [vmem:[#allocation11 + $0x88] sm:$0xf0] }
 0x289   :  { %3858 = vmatpush.bf16.msra.mxu1 %v5990_v15  ;;  %v2998_v28 = vadd.f32 %v7153_v12, %v2984_v16  ;;  %v5961_v12 = vld [vmem:[#allocation11 + $0xa0] sm:$0xf]  ;;  %v5946_v15 = vor.u32 %v6553_v0, %v5945_v63 }
 0x28a   :  { %v5962_v50 = vor.u32 %v6557_v34, %v5961_v12  ;;  %v6583_v12 = vld [vmem:[#allocation14 + $0x78] sm:$0xff]  ;;  %v6582_v34 = vld [vmem:[#allocation14 + $0x70] sm:$0xff] }
 0x28b   :  { %v6591_v63 = vld [vmem:[#allocation17 + $0x38] sm:$0xff] }
 0x28c   :  { %v3459_v49 = vpop.f32.mrf.mxu0  ;;  %3831 = vmatpush.bf16.msrb.mxu3 %v5978_v21  ;;  %4107 = vmatpush.bf16.msrb.mxu0 %v6591_v63  ;;  %v3648_v0 = vld [vmem:[#allocation13] sm:$0x3] }
 0x28d   :  { %v3460_v48 = vadd.f32 %v3459_v49, %v3446_v40  ;;  %3859 = vmatpush.bf16.msra.mxu1 %v5982_v13  ;;  %v6558_v40 = vld [vmem:[#allocation11 + $0xb4] sm:$0xf] }
 0x28e   :  { %v3473_v51 = vpop.f32.mrf.mxu1 }
 0x28f   :  { %v3474_v37 = vadd.f32 %v3473_v51, %v3460_v48 }
 0x2a2   :  { %v3485_v41 = vpop.f32.mrf.mxu2 }
 0x2a3   :  { %v3486_v59 = vadd.f32 %v3485_v41, %v3472_v20  ;;  %v6559_v20 = vld [vmem:[#allocation11 + $0xb4] sm:$0xf0]  ;;  %v3590_v41 = vmax.f32 %v2998_v28, %v7184_v27  ;;  %v5953_v27 = vld [vmem:[#allocation11 + $0x90] sm:$0xf] }
 0x2a4   :  { %v3499_v18 = vpop.f32.mrf.mxu3  ;;  %v3513_v38 = vpop.f32.mrf.mxu0 }
 0x2a5   :  { %v3500_v55 = vadd.f32 %v3499_v18, %v3486_v59  ;;  %v5974_v59 = vor.u32 %v6558_v40, %v5971_v62  ;;  %v3603_v62 = vperm.slane %v7266_v25, 1  ;;  %v6575_v25 = vld [vmem:[#allocation14 + $0x38] sm:$0xff] }
 0x2a6   :  { %v3527_v18 = vpop.f32.mrf.mxu1  ;;  %4008 = vmatpush.bf16.msra.mxu2 %v6575_v25 }
 0x2a7   :  { %v3592_v2 = vmax.f32 %v3332_v6, %v3500_v55  ;;  %3860 = vmatpush.bf16.msra.mxu1 %v5974_v59  ;;  %v5963_v6 = vld [vmem:[#allocation11 + $0xa8] sm:$0xf0]  ;;  %v6555_v55 = vld [vmem:[#allocation11 + $0x94] sm:$0xf0]  ;;  %v3528_v7 = vadd.f32 %v3527_v18, %v3513_v38 }
 0x2a8   :  { %v5966_v48 = vor.u32 %v6556_v11, %v5963_v6  ;;  %v5954_v58 = vor.u32 %v6555_v55, %v5953_v27  ;;  %v6581_v11 = vld [vmem:[#allocation14 + $0x68] sm:$0xff]  ;;  %v6571_v6 = vld [vmem:[#allocation14 + $0x18] sm:$0xff]  ;;  %v6570_v27 = vld [vmem:[#allocation14 + $0x10] sm:$0xff] }
 0x2a9   :  { %v3596_v22 = vmax.f32 %v3588_v47, %v3592_v2  ;;  %v5969_v47 = vld [vmem:[#allocation11 + $0xb0] sm:$0xf]  ;;  %v5958_v2 = vor.u32 %v6554_v57, %v5955_v52  ;;  %v6576_v55 = vld [vmem:[#allocation14 + $0x40] sm:$0xff] }
 0x2aa   :  { %v3487_v5 = vpop.f32.mrf.mxu2  ;;  %v5970_v45 = vor.u32 %v6559_v20, %v5969_v47  ;;  %v6569_v57 = vld [vmem:[#allocation14 + $0x8] sm:$0xff] }
 0x2ab   :  { %v3488_v19 = vadd.f32 %v3487_v5, %v3474_v37  ;;  %v3606_v3 = vadd.f32 %v3602_v4, %v3596_v22  ;;  %3861 = vmatpush.bf16.msra.mxu1 %v5966_v48  ;;  %v5950_v22 = vor.u32 %v6552_v46, %v5947_v8  ;;  %v6577_v48 = vld [vmem:[#allocation14 + $0x48] sm:$0xff] }
 0x2ac   :  { %v3501_v36 = vpop.f32.mrf.mxu3  ;;  %3832 = vmatpush.bf16.msrb.mxu3 %v5970_v45  ;;  %v3515_v51 = vpop.f32.mrf.mxu0 }
 0x2ad   :  { %v3502_v35 = vadd.f32 %v3501_v36, %v3488_v19  ;;  %6638 = vtanh.f32 %v3606_v3  ;;  %v3362_v19 = vadd.f32 %v7234_v39, %v7232_v31 }
 0x2ae   :  { %v3529_v37 = vpop.f32.mrf.mxu1 }
 0x2af   :  { %v3594_v44 = vmax.f32 %v3334_v43, %v3502_v35  ;;  %3862 = vmatpush.bf16.msra.mxu1 %v5958_v2  ;;  %v3376_v36 = vadd.f32 %v7238_v53, %v3362_v19  ;;  %v3530_v20 = vadd.f32 %v3529_v37, %v3515_v51  ;;  %v3651_v2 = vperm.slane %v3648_v0, 1 }
 0x2b0   :  { %3833 = vmatpush.bf16.msrb.mxu3 %v5962_v50  ;;  %v6578_v50 = vld [vmem:[#allocation14 + $0x50] sm:$0xff] }
 0x2b1   :  { %v3598_v9 = vmax.f32 %v3590_v41, %v3594_v44  ;;  %v3390_v47 = vadd.f32 %v7240_v54, %v3376_v36 }
 0x2b3   :  { %v3608_v49 = vadd.f32 %v3602_v4, %v3598_v9  ;;  %v6639_v16 = vpop.eup %6638  ;;  %3863 = vmatpush.bf16.msra.mxu1 %v5950_v22  ;;  %v3402_v4 = vadd.f32 %v7236_v56, %v7230_v17  ;;  %v3404_v44 = vadd.f32 %v7244_v30, %v3390_v47 }
 0x2b4   :  { %3834 = vmatpush.bf16.msrb.mxu3 %v5954_v58  ;;  %v6568_v58 = vld [vmem:[#allocation14] sm:$0xff] }
 0x2b5   :  { %6640 = vtanh.f32 %v3608_v49  ;;  %v3416_v35 = vadd.f32 %v7242_v1, %v3402_v4  ;;  %v3418_v54 = vadd.f32 %v7246_v42, %v3404_v44  ;;  %v6574_v42 = vld [vmem:[#allocation14 + $0x30] sm:$0xff]  ;;  %v6572_v49 = vld [vmem:[#allocation14 + $0x20] sm:$0xff] }
 0x2b6   :  { %4009 = vmatpush.bf16.msra.mxu2 %v6574_v42  ;;  %v6584_v44 = vld [vmem:[#allocation17] sm:$0xff] }
 0x2b8   :  { %3835 = vmatpush.bf16.msrb.mxu3 %v5946_v15 }
 0x2ba   :  { %4010 = vmatpush.bf16.msra.mxu2 %v6573_v14 }
 0x2bb   :  { %v6641_v10 = vpop.eup %6640 }
 0x2bc   :  { %v3614_v5 = vpack.c.bf16 %v6641_v10, %v6639_v16  ;;  %4022 = vmatpush.bf16.msra.mxu3 %v6583_v12  ;;  %v3650_v16 = vperm.slane %v3648_v0, 0 }
 0x2be   :  { %3822 = vmatmul.bf16.vlgmr.msrb.gmra.mxu2 %v3614_v5  ;;  %3850 = vmatmul.bf16.vlgmr.msra.gmra.mxu0 %v3614_v5 }
 0x2bf   :  { %4011 = vmatpush.bf16.msra.mxu2 %v6572_v49 }
 0x2c0   :  { %4023 = vmatpush.bf16.msra.mxu3 %v6582_v34 }
 0x2c3   :  { %4012 = vmatpush.bf16.msra.mxu2 %v6571_v6 }
 0x2c4   :  { %4024 = vmatpush.bf16.msra.mxu3 %v6581_v11 }
 0x2c7   :  { %4013 = vmatpush.bf16.msra.mxu2 %v6570_v27 }
 0x2c8   :  { %4025 = vmatpush.bf16.msra.mxu3 %v6580_v61 }
 0x2cb   :  { %4014 = vmatpush.bf16.msra.mxu2 %v6569_v57 }
 0x2cf   :  { %4015 = vmatpush.bf16.msra.mxu2 %v6568_v58 }
 0x2d0   :  { %v3541_v29 = vpop.f32.mrf.mxu2 }
 0x2d1   :  { %v3542_v21 = vadd.f32 %v3541_v29, %v3528_v7 }
 0x2d2   :  { %v3555_v60 = vpop.f32.mrf.mxu3  ;;  %v3569_v32 = vpop.f32.mrf.mxu0 }
 0x2d3   :  { %v3556_v13 = vadd.f32 %v3555_v60, %v3542_v21 }
 0x2d4   :  { %v3583_v28 = vpop.f32.mrf.mxu1 }
 0x2d5   :  { %v3570_v43 = vadd.f32 %v3569_v32, %v3556_v13 }
 0x2d7   :  { %v3584_v40 = vadd.f32 %v3583_v28, %v3570_v43 }
 0x2d8   :  { %v3543_v41 = vpop.f32.mrf.mxu2 }
 0x2d9   :  { %v3593_v38 = vmax.f32 %v3416_v35, %v3584_v40  ;;  %v3544_v31 = vadd.f32 %v3543_v41, %v3530_v20  ;;  %v6590_v20 = vld [vmem:[#allocation17 + $0x30] sm:$0xff]  ;;  %v6589_v40 = vld [vmem:[#allocation17 + $0x28] sm:$0xff]  ;;  %v6588_v41 = vld [vmem:[#allocation17 + $0x20] sm:$0xff] }
 0x2da   :  { %v3557_v39 = vpop.f32.mrf.mxu3  ;;  %v3571_v53 = vpop.f32.mrf.mxu0  ;;  %4108 = vmatpush.bf16.msrb.mxu0 %v6590_v20 }
 0x2db   :  { %v3597_v17 = vmax.f32 %v3589_v33, %v3593_v38  ;;  %v3558_v56 = vadd.f32 %v3557_v39, %v3544_v31  ;;  %v6587_v38 = vld [vmem:[#allocation17 + $0x18] sm:$0xff]  ;;  %v6586_v31 = vld [vmem:[#allocation17 + $0x10] sm:$0xff]  ;;  %v6585_v39 = vld [vmem:[#allocation17 + $0x8] sm:$0xff] }
 0x2dc   :  { %v3585_v1 = vpop.f32.mrf.mxu1 }
 0x2dd   :  { %v3572_v45 = vadd.f32 %v3571_v53, %v3558_v56  ;;  %v3607_v18 = vadd.f32 %v3603_v62, %v3597_v17  ;;  %v6612_v56 = vld [vmem:[#allocation16] ss:$0 sm:$0xff] }
 0x2de   :  { %4109 = vmatpush.bf16.msrb.mxu0 %v6589_v40 }
 0x2df   :  { %v3586_v3 = vadd.f32 %v3585_v1, %v3572_v45  ;;  %6642 = vtanh.f32 %v3607_v18 }
 0x2e1   :  { %v3595_v59 = vmax.f32 %v3418_v54, %v3586_v3 }
 0x2e2   :  { %4110 = vmatpush.bf16.msrb.mxu0 %v6588_v41 }
 0x2e3   :  { %v3599_v9 = vmax.f32 %v3591_v23, %v3595_v59  ;;  %v6579_v23 = vld [vmem:[#allocation14 + $0x58] sm:$0xff] }
 0x2e4   :  { %4026 = vmatpush.bf16.msra.mxu3 %v6579_v23 }
 0x2e5   :  { %v3609_v30 = vadd.f32 %v3603_v62, %v3599_v9  ;;  %v6643_v24 = vpop.eup %6642 }
 0x2e6   :  { %4111 = vmatpush.bf16.msrb.mxu0 %v6587_v38 }
 0x2e7   :  { %6644 = vtanh.f32 %v3609_v30 }
 0x2e8   :  { %4027 = vmatpush.bf16.msra.mxu3 %v6578_v50 }
 0x2ea   :  { %4112 = vmatpush.bf16.msrb.mxu0 %v6586_v31 }
 0x2ec   :  { %4028 = vmatpush.bf16.msra.mxu3 %v6577_v48 }
 0x2ed   :  { %v6645_v26 = vpop.eup %6644 }
 0x2ee   :  { %v3615_v33 = vpack.c.bf16 %v6645_v26, %v6643_v24  ;;  %4113 = vmatpush.bf16.msrb.mxu0 %v6585_v39  ;;  %v6613_v24 = vld [vmem:[#allocation19] ss:$0 sm:$0xff] }
 0x2f0   :  { %3836 = vmatmul.bf16.vlgmr.msrb.gmra.mxu3 %v3615_v33  ;;  %3864 = vmatmul.bf16.vlgmr.msra.gmra.mxu1 %v3615_v33 }
 0x2f1   :  { %4029 = vmatpush.bf16.msra.mxu3 %v6576_v55 }
 0x2f2   :  { %4114 = vmatpush.bf16.msrb.mxu0 %v6584_v44 }
 0x33b   :  { %v3851_v52 = vpop.f32.mrf.mxu0 }
 0x33c   :  { %v3852_v51 = vadd.f32 %v3851_v52, %v3651_v2 }
 0x341   :  { %v3823_v46 = vpop.f32.mrf.mxu2 }
 0x342   :  { %v3824_v29 = vadd.f32 %v3823_v46, %v3650_v16 }
 0x343   :  { %v3853_v15 = vpop.f32.mrf.mxu0 }
 0x344   :  { %v3854_v22 = vadd.f32 %v3853_v15, %v3651_v2 }
 0x349   :  { %v3825_v19 = vpop.f32.mrf.mxu2 }
 0x34a   :  { %v3826_v60 = vadd.f32 %v3825_v19, %v3650_v16 }
 0x36d   :  { %v3865_v8 = vpop.f32.mrf.mxu1 }
 0x36e   :  { %v3866_v10 = vadd.f32 %v3865_v8, %v3852_v51 }
 0x370   :  { %6646 = vtanh.f32 %v3866_v10 }
 0x373   :  { %v3837_v37 = vpop.f32.mrf.mxu3 }
 0x374   :  { %v3838_v21 = vadd.f32 %v3837_v37, %v3824_v29 }
 0x375   :  { %v3867_v5 = vpop.f32.mrf.mxu1 }
 0x376   :  { %v3868_v7 = vadd.f32 %v3867_v5, %v3854_v22  ;;  %v6647_v36 = vpop.eup %6646 }
 0x378   :  { %6648 = vtanh.f32 %v3868_v7 }
 0x379   :  { %6650 = vtanh.f32 %v3838_v21 }
 0x37b   :  { %v3839_v32 = vpop.f32.mrf.mxu3 }
 0x37c   :  { %v3840_v4 = vadd.f32 %v3839_v32, %v3826_v60 }
 0x37e   :  { %v6649_v13 = vpop.eup %6648  ;;  %6652 = vtanh.f32 %v3840_v4 }
 0x37f   :  { %v3875_v28 = vpack.c.bf16 %v6649_v13, %v6647_v36  ;;  %v6651_v43 = vpop.eup %6650 }
 0x381   :  { %4030 = vmatmul.bf16.vlgmr.msra.gmra.mxu3 %v3875_v28 }
 0x384   :  { %v6653_v35 = vpop.eup %6652 }
 0x385   :  { %v3874_v47 = vpack.c.bf16 %v6653_v35, %v6651_v43 }
 0x387   :  { %4016 = vmatmul.bf16.vlgmr.msra.gmra.mxu2 %v3874_v47 }
 0x404   :  { %v4031_v17 = vpop.f32.mrf.mxu3 }
 0x40a   :  { %v4017_v53 = vpop.f32.mrf.mxu2 }
 0x40b   :  { %v4018_v45 = vadd.f32 %v6612_v56, %v4017_v53 }
 0x40c   :  { %v4033_v3 = vpop.f32.mrf.mxu3 }
 0x40d   :  { %v4032_v62 = vadd.f32 %v4031_v17, %v4018_v45 }
 0x40f   :  { %6654 = vtanh.f32 %v4032_v62 }
 0x412   :  { %v4019_v1 = vpop.f32.mrf.mxu2 }
 0x413   :  { %v4020_v54 = vadd.f32 %v6612_v56, %v4019_v1 }
 0x415   :  { %v4034_v59 = vadd.f32 %v4033_v3, %v4020_v54  ;;  %v6655_v18 = vpop.eup %6654 }
 0x417   :  { %6656 = vtanh.f32 %v4034_v59 }
 0x41d   :  { %v6657_v9 = vpop.eup %6656 }
 0x41e   :  { %v4038_v30 = vpack.c.bf16 %v6657_v9, %v6655_v18 }
 0x420   :  { %4115 = vmatmul.bf16.vlgmr.msrb.gmra.mxu0 %v4038_v30 }
 0x49d   :  { %v4116_v26 = vpop.f32.mrf.mxu0 }
 0x49e   :  { %v4117_v33 = vadd.f32 %v6613_v24, %v4116_v26 }
 0x4a0   :  { %4121 = vst [vmem:[#allocation20] sm:$0xff] %v4117_v33 }
 0x4a5   :  { %v4118_v12 = vpop.f32.mrf.mxu0 }
 0x4a6   :  { %v4119_v25 = vadd.f32 %v6613_v24, %v4118_v12 }
 0x4a8   :  { %4122 = vst [vmem:[#allocation20 + $0x8] sm:$0xff] %v4119_v25 }
 0x4a9   :  { %4135 = dma.vmem_to_hbm [thread:$0]  %s4128_s10, 256, %s4130_s13, [#allocation4], %s6967_s16, %s6967_s16, %s6968_s3  }
 0x4aa   :  { %6958 = dma.done.wait [#allocation4], 256  }
 0x4ab   :  { %6959 = vsyncadd [#allocation4], 4294967040 }
 0x4ac   :  { %4140 = vsyncpa [#allocation3], 1 }
 0x4ad   :  { %4141 = vsyncpa [#allocation6], 1 }
 0x4ae   :  { %4142 = vsyncpa [#allocation9], 1 }
 0x4af   :  { %4143 = vsyncpa [#allocation12], 1 }
 0x4b0   :  { %4144 = vsyncpa [#allocation15], 1 }
 0x4b1   :  { %4145 = vsyncpa [#allocation18], 1 }
 0x4b2   :  { %4146 = vsyncpa [#allocation4], 1 }

</bundles_post_ra>
